<compile_context>
chip_gen: v7x
topology: tpu7x:2x2x1
jax: 0.10.0
libtpu: 0.0.40
codegen_flags: <defaults>
</compile_context>

<pallas_src>
import jax
import jax.numpy as jnp
from jax.experimental import pallas as pl
from jax.experimental.pallas import tpu as pltpu


def _round_up(x, m):
    return (x + m - 1) // m * m


def _pick_tile(n, t_max, align):
    """Largest tile <= t_max (multiple of `align`) minimizing pair-grid padding.

    Only searches down to t_max/2 so tiles never shrink enough to hurt per-step
    pipeline overhead; ties go to the larger tile."""
    t_max = max(align, min(t_max, _round_up(n, align)))
    t_min = max(align, _round_up(t_max // 2, align))
    best_t, best_pad = t_max, _round_up(n, t_max)
    t = t_max - align
    while t >= t_min:
        pad = _round_up(n, t)
        if pad < best_pad:
            best_t, best_pad = t, pad
        t -= align
    return best_t


def _make_kernel(n_hidden, compute_dtype):
    """Kernel: (hoisted) first struct layer + n_hidden struct layers + final dist layer."""

    def kernel(pc_ref, pr_ref, *refs):
        # refs = [w1, b1, ..., w_n, b_n, wf, bf, out_ref]
        out_ref = refs[-1]
        bf_ref = refs[-2]            # (1, 1)   f32
        wf_ref = refs[-3]            # (1, Hl)  f32
        layer_refs = refs[:-3]

        tm, h0 = pc_ref.shape        # row tile of the pair grid
        tn = pr_ref.shape[0]         # col tile of the pair grid

        # First 1x1 conv on pairs[i, j] = concat(z[j], z[i]) reduces to a broadcast add
        # of the two hoisted projections (b0 already folded into pc) + ReLU, done in
        # compute_dtype (pc/pr were cast once in the wrapper -> no in-kernel f32 blowup).
        h = jax.nn.relu(pc_ref[...][:, None, :] + pr_ref[...][None, :, :])   # (TM, TN, H0)
        h = h.reshape(tm * tn, h0)                                           # layout-preserving

        # Remaining struct layers: 1x1 convs -> MXU matmuls, f32 accumulation,
        # exactly one f32 -> compute_dtype cast per layer.
        for k in range(n_hidden):
            w_ref = layer_refs[2 * k]
            b_ref = layer_refs[2 * k + 1]
            acc = jnp.dot(h, w_ref[...], preferred_element_type=jnp.float32)
            h = jax.nn.relu(acc + b_ref[...]).astype(compute_dtype)

        # Final 1-output-channel 1x1 conv: weighted lane reduction + bias, squared (f32).
        hl = wf_ref.shape[1]
        h3 = h.reshape(tm, tn, hl).astype(jnp.float32)
        d = jnp.sum(h3 * wf_ref[...][None, :, :], axis=-1) + bf_ref[...]     # (TM, TN)
        out_ref[...] = d * d

    return kernel


def struct_pairwise_n(z, w0, b0, hidden, wf, bf, *, tm=128, tn=128,
                      compute_dtype=jnp.bfloat16,
                      vmem_limit_bytes=48 * 1024 * 1024):
    """Pallas forward of StructPairwiseN (eval mode).

    z      : (N, C) float32 cell embeddings
    w0, b0 : (2C, H0), (H0,)    first struct layer (Conv2d 1x1, weight stored (in, out))
    hidden : list of (w, b) with shapes (H_{k-1}, H_k), (H_k,)
    wf, bf : (H_last,), scalar  final_dist_layer (Conv2d 1x1 -> 1 channel)
    returns {'dists': (N, N) float32}, dists[i, j] = final(h([z[j], z[i]]))**2
    """
    n, c = z.shape
    h0 = w0.shape[1]
    assert w0.shape[0] == 2 * c

    # ---- tile selection: minimize padding, keep sublane/lane alignment, >=2 blocks ----
    tm = _round_up(max(tm, 8), 8)
    tn = _round_up(max(tn, 128), 128)
    tm_eff = _pick_tile(n, tm, 8)
    tn_eff = _pick_tile(n, tn, 128)
    n_pad_r = _round_up(n, tm_eff)
    n_pad_c = _round_up(n, tn_eff)
    # v7x megacore: make sure the (parallel, parallel) grid has at least 2 blocks.
    if (n_pad_r // tm_eff) * (n_pad_c // tn_eff) < 2 and tm_eff > 8:
        tm_eff = max(8, _round_up((n + 1) // 2, 8))
        n_pad_r = _round_up(n, tm_eff)

    # ---- hoisted, grid-invariant first-layer projections (computed once by XLA) ----
    z32 = z.astype(jnp.float32)
    pr = (z32 @ w0[:c].astype(jnp.float32)).astype(compute_dtype)                 # col term (z[j])
    pc = (z32 @ w0[c:].astype(jnp.float32)
          + b0[None, :].astype(jnp.float32)).astype(compute_dtype)                # row term (z[i]) + b0

    # Pad each pair-grid axis independently (no lcm padding -> no fully-garbage tiles).
    if n_pad_c != n:
        pr = jnp.pad(pr, ((0, n_pad_c - n), (0, 0)))
    if n_pad_r != n:
        pc = jnp.pad(pc, ((0, n_pad_r - n), (0, 0)))

    args = [pc, pr]
    in_specs = [
        pl.BlockSpec((tm_eff, h0), lambda i, j: (i, 0)),   # rows i of the pair grid
        pl.BlockSpec((tn_eff, h0), lambda i, j: (j, 0)),   # cols j of the pair grid
    ]
    for w, b in hidden:
        hin, hout = w.shape
        args += [w.astype(compute_dtype), b.reshape(1, hout).astype(jnp.float32)]
        in_specs += [pl.BlockSpec((hin, hout), lambda i, j: (0, 0)),
                     pl.BlockSpec((1, hout), lambda i, j: (0, 0))]
    hl = wf.shape[0]
    args += [wf.reshape(1, hl).astype(jnp.float32),
             jnp.reshape(bf, (1, 1)).astype(jnp.float32)]
    in_specs += [pl.BlockSpec((1, hl), lambda i, j: (0, 0)),
                 pl.BlockSpec((1, 1), lambda i, j: (0, 0))]

    kernel = _make_kernel(len(hidden), compute_dtype)
    dists_padded = pl.pallas_call(
        kernel,
        out_shape=jax.ShapeDtypeStruct((n_pad_r, n_pad_c), jnp.float32),
        grid=(n_pad_r // tm_eff, n_pad_c // tn_eff),
        in_specs=in_specs,
        out_specs=pl.BlockSpec((tm_eff, tn_eff), lambda i, j: (i, j)),
        compiler_params=pltpu.CompilerParams(
            dimension_semantics=("parallel", "parallel"),
            vmem_limit_bytes=vmem_limit_bytes,
        ),
    )(*args)
    return {"dists": dists_padded[:n, :n]}


def ref_torch(z, ws, bs, wf, bf):
    """Pure-f32 reference of the PyTorch eval-mode forward (non-hoisted formula)."""
    n, c = z.shape
    rtile = jnp.broadcast_to(z[None, :, :], (n, n, c))   # rtile[i, j] = z[j]
    ctile = jnp.broadcast_to(z[:, None, :], (n, n, c))   # ctile[i, j] = z[i]
    pairs = jnp.concatenate([rtile, ctile], axis=2).reshape(n * n, 2 * c)
    h = pairs
    for w, b in zip(ws, bs):
        h = jax.nn.relu(h @ w + b)
    d = h @ wf + bf
    return (d * d).reshape(n, n)


def ref_mirror(z, w0, b0, hidden, wf, bf, compute_dtype):
    """Pure-JAX reference mirroring the kernel's exact cast points (for bf16 checks)."""
    n, c = z.shape
    z32 = z.astype(jnp.float32)
    pr = (z32 @ w0[:c].astype(jnp.float32)).astype(compute_dtype)
    pc = (z32 @ w0[c:].astype(jnp.float32)
          + b0[None, :].astype(jnp.float32)).astype(compute_dtype)
    h = jax.nn.relu(pc[:, None, :] + pr[None, :, :]).reshape(n * n, -1)
    for w, b in hidden:
        h = jax.nn.relu(
            jnp.dot(h, w.astype(compute_dtype), preferred_element_type=jnp.float32)
            + b[None, :].astype(jnp.float32)).astype(compute_dtype)
    d = jnp.sum(h.astype(jnp.float32) * wf[None, :].astype(jnp.float32), axis=-1) + bf
    return (d * d).reshape(n, n)


def make_params(key, in_channels, layer_widths):
    """Conv2d 1x1 weights stored as (in, out) matrices, deterministic init."""
    prev = 2 * in_channels
    ws, bs = [], []
    keys = jax.random.split(key, 2 * len(layer_widths) + 2)
    ki = 0
    for out_c in layer_widths:
        ws.append(jax.random.normal(keys[ki], (prev, out_c), jnp.float32) * 0.2); ki += 1
        bs.append(jax.random.normal(keys[ki], (out_c,), jnp.float32) * 0.1); ki += 1
        prev = out_c
    wf = jax.random.normal(keys[ki], (prev,), jnp.float32) * 0.2; ki += 1
    bf = jax.random.normal(keys[ki], (), jnp.float32) * 0.1
    return ws, bs, wf, bf


if __name__ == "__main__":
    key = jax.random.PRNGKey(0)
    in_channels = 8
    struct_layers_out_chnls = [32, 16]
    dropout_prop = 0.1  # unused: eval-mode forward

    k_param, k_z1, k_z2 = jax.random.split(key, 3)
    ws, bs, wf, bf = make_params(k_param, in_channels, struct_layers_out_chnls)
    w0, b0 = ws[0], bs[0]
    hidden = list(zip(ws[1:], bs[1:]))

    # Case 1: tiny N (auto-shrunk 8-row tiles -> 2x1 grid), f32 compute; must match the
    # exact (non-hoisted) torch formula tightly.
    n1 = 16
    z1 = jax.random.normal(k_z1, (n1, in_channels), jnp.float32)
    d1 = jax.block_until_ready(
        struct_pairwise_n(z1, w0, b0, hidden, wf, bf, compute_dtype=jnp.float32)["dists"])
    ref1 = ref_torch(z1, ws, bs, wf, bf)
    assert d1.shape == (n1, n1)
    err1 = float(jnp.max(jnp.abs(d1 - ref1)))
    assert jnp.allclose(d1, ref1, rtol=1e-4, atol=1e-4), f"f32 max abs err {err1}"

    # Case 2: non-tile-aligned N on a 2x2 grid (104x128 tiles) with the default bf16
    # compute path; checked against a reference that mirrors the kernel's cast points.
    n2 = 200
    z2 = jax.random.normal(k_z2, (n2, in_channels), jnp.float32)
    d2 = jax.block_until_ready(
        struct_pairwise_n(z2, w0, b0, hidden, wf, bf)["dists"])
    ref2 = ref_mirror(z2, w0, b0, hidden, wf, bf, jnp.bfloat16)
    assert d2.shape == (n2, n2)
    err2 = float(jnp.max(jnp.abs(d2 - ref2)))
    assert jnp.allclose(d2, ref2, rtol=1e-2, atol=1e-2), f"bf16 max abs err {err2}"

    print("KERNEL_OK")
</pallas_src>

<mosaic_0001>
module attributes {stable_mosaic.version = 11 : i64} {
  func.func @kernel(%arg0: i32, %arg1: i32, %arg2: memref<8x32xf32, #tpu.memory_space<vmem>>, %arg3: memref<128x32xf32, #tpu.memory_space<vmem>>, %arg4: memref<32x16xf32, #tpu.memory_space<vmem>>, %arg5: memref<1x16xf32, #tpu.memory_space<vmem>>, %arg6: memref<1x16xf32, #tpu.memory_space<vmem>>, %arg7: memref<1x1xf32, #tpu.memory_space<vmem>>, %arg8: memref<8x128xf32, #tpu.memory_space<vmem>>) attributes {dimension_semantics = [#tpu.dimension_semantics<parallel>, #tpu.dimension_semantics<parallel>], iteration_bounds = array<i64: 2, 1>, scalar_prefetch = 0 : i64, scratch_operands = 0 : i64, tpu.core_type = #tpu.core_type<tc>, window_params = [{transform_indices = @transform_0, window_bounds = array<i64: 8, 32>}, {transform_indices = @transform_1, window_bounds = array<i64: 128, 32>}, {pipeline_mode = #tpu.pipeline_mode<synchronous>, transform_indices = @transform_2, window_bounds = array<i64: 32, 16>}, {pipeline_mode = #tpu.pipeline_mode<synchronous>, transform_indices = @transform_3, window_bounds = array<i64: 1, 16>}, {pipeline_mode = #tpu.pipeline_mode<synchronous>, transform_indices = @transform_4, window_bounds = array<i64: 1, 16>}, {pipeline_mode = #tpu.pipeline_mode<synchronous>, transform_indices = @transform_5, window_bounds = array<i64: 1, 1>}, {transform_indices = @transform_6, window_bounds = array<i64: 8, 128>}]} {
    %c0 = arith.constant 0 : index
    %c0_0 = arith.constant 0 : index
    %0 = vector.load %arg2[%c0, %c0_0] : memref<8x32xf32, #tpu.memory_space<vmem>>, vector<8x32xf32>
    %1 = vector.shape_cast %0 : vector<8x32xf32> to vector<8x1x32xf32>
    %c0_1 = arith.constant 0 : index
    %c0_2 = arith.constant 0 : index
    %2 = vector.load %arg3[%c0_1, %c0_2] : memref<128x32xf32, #tpu.memory_space<vmem>>, vector<128x32xf32>
    %3 = vector.shape_cast %2 : vector<128x32xf32> to vector<1x128x32xf32>
    %4 = vector.broadcast %1 : vector<8x1x32xf32> to vector<8x128x32xf32>
    %5 = vector.broadcast %3 : vector<1x128x32xf32> to vector<8x128x32xf32>
    %6 = arith.addf %4, %5 : vector<8x128x32xf32>
    %cst = arith.constant 0.000000e+00 : f32
    %7 = vector.broadcast %cst : f32 to vector<8x128x32xf32>
    %8 = arith.maximumf %6, %7 : vector<8x128x32xf32>
    %9 = vector.shape_cast %8 : vector<8x128x32xf32> to vector<1024x32xf32>
    %c0_3 = arith.constant 0 : index
    %c0_4 = arith.constant 0 : index
    %10 = vector.load %arg4[%c0_3, %c0_4] : memref<32x16xf32, #tpu.memory_space<vmem>>, vector<32x16xf32>
    %cst_5 = arith.constant dense<0.000000e+00> : vector<1024x16xf32>
    %11 = tpu.matmul %9, %10, %cst_5 {dimension_numbers = #tpu.dot_dimension_numbers<[1], [0], [0], [1], [0, 0, 1, 1], [], []>} : vector<1024x32xf32>, vector<32x16xf32>, vector<1024x16xf32> -> vector<1024x16xf32>
    %c0_6 = arith.constant 0 : index
    %c0_7 = arith.constant 0 : index
    %12 = vector.load %arg5[%c0_6, %c0_7] : memref<1x16xf32, #tpu.memory_space<vmem>>, vector<1x16xf32>
    %13 = vector.broadcast %12 : vector<1x16xf32> to vector<1024x16xf32>
    %14 = arith.addf %11, %13 : vector<1024x16xf32>
    %cst_8 = arith.constant 0.000000e+00 : f32
    %15 = vector.broadcast %cst_8 : f32 to vector<1024x16xf32>
    %16 = arith.maximumf %14, %15 : vector<1024x16xf32>
    %17 = vector.shape_cast %16 : vector<1024x16xf32> to vector<8x128x16xf32>
    %c0_9 = arith.constant 0 : index
    %c0_10 = arith.constant 0 : index
    %18 = vector.load %arg6[%c0_9, %c0_10] : memref<1x16xf32, #tpu.memory_space<vmem>>, vector<1x16xf32>
    %19 = vector.shape_cast %18 : vector<1x16xf32> to vector<1x1x16xf32>
    %20 = vector.broadcast %19 : vector<1x1x16xf32> to vector<8x128x16xf32>
    %21 = arith.mulf %17, %20 : vector<8x128x16xf32>
    %cst_11 = arith.constant dense<0.000000e+00> : vector<8x128xf32>
    %22 = vector.multi_reduction <add>, %21, %cst_11 [2] : vector<8x128x16xf32> to vector<8x128xf32>
    %c0_12 = arith.constant 0 : index
    %c0_13 = arith.constant 0 : index
    %23 = vector.load %arg7[%c0_12, %c0_13] : memref<1x1xf32, #tpu.memory_space<vmem>>, vector<1x1xf32>
    %24 = vector.broadcast %23 : vector<1x1xf32> to vector<8x128xf32>
    %25 = arith.addf %22, %24 : vector<8x128xf32>
    %26 = arith.mulf %25, %25 : vector<8x128xf32>
    %c0_14 = arith.constant 0 : index
    %c0_15 = arith.constant 0 : index
    %27 = vector.load %arg8[%c0_14, %c0_15] : memref<8x128xf32, #tpu.memory_space<vmem>>, vector<8x128xf32>
    tpu.vector_store %arg8[%c0_14, %c0_15], %26 {strides = array<i32>} : memref<8x128xf32, #tpu.memory_space<vmem>>, vector<8x128xf32>,
    return
  }
  func.func @transform_0(%arg0: i32, %arg1: i32) -> (i32, i32) {
    %c0_i32 = arith.constant 0 : i32
    %c0_i32_0 = arith.constant 0 : i32
    return %arg0, %c0_i32 : i32, i32
  }
  func.func @transform_1(%arg0: i32, %arg1: i32) -> (i32, i32) {
    %c0_i32 = arith.constant 0 : i32
    %c0_i32_0 = arith.constant 0 : i32
    return %arg1, %c0_i32 : i32, i32
  }
  func.func @transform_2(%arg0: i32, %arg1: i32) -> (i32, i32) {
    %c0_i32 = arith.constant 0 : i32
    %c0_i32_0 = arith.constant 0 : i32
    %c0_i32_1 = arith.constant 0 : i32
    return %c0_i32, %c0_i32_0 : i32, i32
  }
  func.func @transform_3(%arg0: i32, %arg1: i32) -> (i32, i32) {
    %c0_i32 = arith.constant 0 : i32
    %c0_i32_0 = arith.constant 0 : i32
    %c0_i32_1 = arith.constant 0 : i32
    return %c0_i32, %c0_i32_0 : i32, i32
  }
  func.func @transform_4(%arg0: i32, %arg1: i32) -> (i32, i32) {
    %c0_i32 = arith.constant 0 : i32
    %c0_i32_0 = arith.constant 0 : i32
    %c0_i32_1 = arith.constant 0 : i32
    return %c0_i32, %c0_i32_0 : i32, i32
  }
  func.func @transform_5(%arg0: i32, %arg1: i32) -> (i32, i32) {
    %c0_i32 = arith.constant 0 : i32
    %c0_i32_0 = arith.constant 0 : i32
    %c0_i32_1 = arith.constant 0 : i32
    return %c0_i32, %c0_i32_0 : i32, i32
  }
  func.func @transform_6(%arg0: i32, %arg1: i32) -> (i32, i32) {
    %c0_i32 = arith.constant 0 : i32
    return %arg0, %arg1 : i32, i32
  }
}

</mosaic_0001>

<bundles_post_ra>
// kernel: tpu_custom_call.1
= control target key start
LH: loop header
LB: loop body
LE: loop exit
PB: predicated region body
PF: predicated region fallthrough
CT: control target
= control target key end

     0   :  { %s6282_s0 = inlined_call_operand.vmem [shape: f32[16,32], index: 0, kind: input, shape index: {}]   ;;  %s6283_s1 = inlined_call_operand.vmem [shape: f32[128,32], index: 1, kind: input, shape index: {}]   ;;  %s6284_s2 = inlined_call_operand.vmem [shape: f32[32,16], index: 2, kind: input, shape index: {}]   ;;  %s6285_s3 = inlined_call_operand.vmem [shape: f32[1,16], index: 3, kind: input, shape index: {}]   ;;  %s6286_s4 = inlined_call_operand.vmem [shape: f32[1,16], index: 4, kind: input, shape index: {}]   ;;  %s6287_s5 = inlined_call_operand.<no memory space> [shape: f32[1,1], index: 5, kind: input, shape index: {}]   ;;  %s6288_s6 = inlined_call_operand.hbm [shape: f32[16,128], index: 6, kind: output, shape index: {}]  }
   0x1   :  { %v11_v0 = vstv %s6287_s5 }
   0x2   :  { %12 = vst [vmem:[#allocation2] sm:$0x1] %v11_v0 }
   0x3   :  { %13 = vsyncpa [#allocation4], 0 }
   0x4   :  { %15 = vsyncpa [#allocation4 + $0x1], 0  ;;  %s4240_s23 = smov 0   ;;  %s4242_s24 = smov 0  }
   0x5   :  { %s4244_s25 = smov 0   ;;  %s4246_s26 = smov 0  }
   0x6   :  { %s4248_s27 = smov 0   ;;  %s4250_s28 = smov 0  }
   0x7 LB: > { %s3569_s5 = sadd.s32 4294967295, %s4197_s28   ;;  %s3570_s29 = sadd.s32 4294967294, %s4197_s28   ;;  %s4197_s28 = sphi %s4250_s28, %s21_s28   ;;  %s4193_s27 = sphi %s4248_s27, %s6363_s27   ;;  %s4189_s26 = sphi %s4246_s26, %s6362_s26   ;;  %s4185_s25 = sphi %s4244_s25, %s6361_s25   ;;  %s4181_s24 = sphi %s4242_s24, %s6360_s24   ;;  %s4177_s23 = sphi %s4240_s23, %s6359_s23  }
   0x8   : > { %s33_s30 = sadd.s32 1, %s4193_s27  ;;  %s178_s7 = sadd.s32 1, %s4185_s25 }
   0x9   : > { %p35_p0 = scmp.ge.s32.totalorder %s33_s30, 2  ;;  %p188_p1 = scmp.ne.s32.totalorder %s4185_s25, %s4181_s24 }
   0xa   : > { %p189_p2 = scmp.eq.s32.totalorder %s3569_s5, 1  ;;  %p194_p3 = scmp.ne.s32.totalorder %s4181_s24, %s4177_s23 }
   0xb   : > { %s6365_s30 = smov (%p35_p0, %s33_s30), 0  ;;  %p195_p5 = scmp.eq.s32.totalorder %s3570_s29, 1 }
   0xc   : > { %p4280_p4 = por %p189_p2, %p188_p1  ;;  %s173_s9 = ssub.s32 %s4193_s27, %s6365_s30 }
   0xd   : > { %p3574_p6 = scmp.ge.s32.totalorder %s4197_s28, 1  ;;  %p176_p7 = scmp.eq.s32.totalorder %s173_s9, 0 }
   0xe   : > { %p4287_p8 = por %p195_p5, %p194_p3  ;;  %p241_p9 = scmp.lt.s32.totalorder %s4197_s28, 3 }
   0xf   : > { %s4293_s11 = scalar_select %p176_p7, %s4185_s25, %s178_s7  }
  0x10   : > { %p242_p10 = pnand %p3574_p6, %p241_p9 }
  0x12   : > { %245 = sbr.rel (%p242_p10) target bundleno = 716 (0x2cc), region = 44 }
  0x19   : > { %v648_v1 = vld [vmem:[%s6284_s2] sm:$0xff]  ;;  %v649_v2 = vld [vmem:[%s6284_s2 + $0x8] sm:$0xff]  ;;  %v650_v3 = vld [vmem:[%s6284_s2 + $0x10] sm:$0xff]  ;;  %p275_p11 = scmp.lt.s32.totalorder %s4189_s26, 1  ;;  %v6289_v4 = vlaneseq  ;;  %v4199_v7 = vmov 1966171168  }
  0x1a   : > { %v4044_v5 = vpack.c.bf16 %v649_v2, %v648_v1  ;;  %v651_v6 = vld [vmem:[%s6284_s2 + $0x18] sm:$0xff]  ;;  %v289_v8 = vunpack.c.l.s4 %v4199_v7  ;;  %v4200_v11 = vmov 0   ;;  %v3707_v18 = vld [vmem:[#allocation2] ss:$0 sm:$0xff]  ;;  %v4339_v22 = vld [vmem:[%s6283_s1 + $0x8] sm:$0xff]  ;;  %vm659_vm0 = vcmask 261120  }
  0x1b   : > { %v4048_v9 = vpack.c.bf16 %v651_v6, %v650_v3  ;;  %s276_s20 = scalar_select %p275_p11, %s4189_s26, 1  ;;  %v4310_v10 = vshrl.u32 %v6289_v4, 7  ;;  %4113 = vset.pattern.permute.xlu0 %v4200_v11  ;;  %v4334_v21 = vld [vmem:[%s6283_s1] sm:$0xff]  ;;  %v4352_v25 = vld [vmem:[%s6283_s1 + $0x10] sm:$0xff]  ;;  %v4357_v26 = vld [vmem:[%s6283_s1 + $0x18] sm:$0xff]  ;;  %vm2012_vm1 = vcmask 130048  }
  0x1c   : > { %4045 = vmatprep.subr.bf16.mxu0 %v4044_v5  ;;  %4052 = vmatprep.subr.bf16.mxu1 %v4044_v5  ;;  %v290_v12 = vunpack.c.0.s8 %v289_v8  ;;  %v4362_v27 = vld [vmem:[%s6283_s1 + $0x20] sm:$0xff]  ;;  %v4385_v38 = vld [vmem:[%s6283_s1 + $0x28] sm:$0xff]  ;;  %v4394_v42 = vld [vmem:[%s6283_s1 + $0x30] sm:$0xff]  ;;  %vm2802_vm2 = vcmask 130112   ;;  %vm2809_vm3 = vcmask 195712   ;;  %vm2816_vm4 = vcmask 261312  }
  0x1d   : > { %6295 = vst [vmem:[#allocation6_spill] sm:$0xff] %v4310_v10  ;;  %4047 = vmatpush3.bf16.msra.mxu0 %v4044_v5  ;;  %4054 = vmatpush3.bf16.msra.mxu1 %v4044_v5  ;;  %s3576_s21 = sshll.u32 %s276_s20, 3  ;;  %v4322_v16 = vsub.s32 0, %v4310_v10  ;;  %v4409_v51 = vld [vmem:[%s6283_s1 + $0x38] sm:$0xff]  ;;  %v4417_v54 = vld [vmem:[%s6283_s1 + $0x40] sm:$0xff]  ;;  %v4431_v61 = vld [vmem:[%s6283_s1 + $0x48] sm:$0xff] }
  0x1e   : > { %4049 = vmatprep.subr.bf16.mxu0 %v4048_v9  ;;  %4053 = vmatprep.subr.bf16.mxu1 %v4048_v9  ;;  %s278_s29 = scalar_lea.vmem %s6282_s0, %s3576_s21  ;;  %v4316_v13 = vsub.s32 %v290_v12, %v4310_v10  ;;  %v4439_v0 = vld [vmem:[%s6283_s1 + $0x50] sm:$0xff]  ;;  %vm2823_vm5 = vcmask 326912   ;;  %vm2830_vm6 = vcmask 392512   ;;  %vm2837_vm7 = vcmask 458112   ;;  %s3709_s9 = sshll.u32 %s4189_s26, 7 }
  0x1f   : > { %v285_v14 = vld [vmem:[%s278_s29] sm:$0xff]  ;;  %2404 = vperm.xlu0 %4113, %v3707_v18   ;;  %vm2844_vm8 = vcmask 523712   ;;  %vm2851_vm9 = vcmask 589312   ;;  %vm2858_vm10 = vcmask 654912   ;;  %vm2865_vm11 = vcmask 720512   ;;  %s272_s29 = sand.u32 1, %s4181_s24   ;;  %s6233_s26 = scalar_lea.hbm %s6288_s6, %s3709_s9 }
  0x20   : > { %v4319_v15 = vrot.slane %v285_v14, %v4316_v13  ;;  %v287_v17 = vcombine.high %v285_v14, %v285_v14  ;;  %v4463_v14 = vld [vmem:[%s6283_s1 + $0x60] sm:$0xff]  ;;  %vm6292_vm12 = vcmask 786112   ;;  %vm2879_vm13 = vcmask 851712   ;;  %s6208_s7 = sshll.u32 %s272_s29, 3  ;;  %s3472_s16 = scalar_lea.sflag [#allocation4], %s272_s29 }
  0x21   : > { %4051 = vmatpush3.bf16.msra.mxu0 %v4048_v9  ;;  %4055 = vmatpush3.bf16.msra.mxu1 %v4048_v9  ;;  %v4455_v9 = vld [vmem:[%s6283_s1 + $0x58] sm:$0xff]  ;;  %vm2886_vm14 = vcmask 917312   ;;  %vm2893_vm15 = vcmask 982912   ;;  %s274_s12 = scalar_lea.vmem [#allocation3], %s6208_s7  ;;  %s4201_s18 = smov [#allocation3]  }
  0x22   : > { %v4326_v19 = vrot.slane %v4319_v15, %v4316_v13  ;;  %v4329_v20 = vrot.slane %v287_v17, %v4316_v13  ;;  %v302_v6 = vcombine.high %v4319_v15, %v4319_v15  ;;  %s3486_s13 = sshll.u32 %s274_s12, 4  ;;  %s4123_s19 = sshll.u32 %s4201_s18, 4  ;;  %s6235_s13 = int_to_ptr.vmem [resolvable:$true] %s3486_s13  ;;  %s4124_s19 = int_to_ptr.vmem [resolvable:$false] %s4123_s19 }
  0x23   : > { %s4119_s17 = scalar_lea.vmem %s6235_s13, 128  ;;  %s4125_s20 = scalar_lea.vmem %s4124_s19, 256 }
  0x24   : > { %v4343_v23 = vrot.slane %v4326_v19, %v4322_v16  ;;  %v4347_v24 = vrot.slane %v4329_v20, %v4316_v13  ;;  %v303_v15 = vcombine.high %v4329_v20, %v4329_v20  ;;  %v4479_v20 = vld [vmem:[%s6283_s1 + $0x68] sm:$0xff]  ;;  %p4120_p12 = scmp.ne.s32.totalorder %s6235_s13, %s4119_s17  ;;  %p4126_p1 = scmp.lt.s32.totalorder %s6235_s13, %s4124_s19 }
  0x25   : > { %p4127_p2 = scmp.lt.s32.totalorder %s4125_s20, %s4119_s17 }
  0x26   : > { %v392_v28 = vadd.f32 %v4343_v23, %v4334_v21  ;;  %v393_v29 = vadd.f32 %v4343_v23, %v4339_v22  ;;  %v4370_v30 = vrot.slane %v4347_v24, %v4322_v16  ;;  %v394_v31 = vadd.f32 %v4343_v23, %v4352_v25  ;;  %p4121_p13 = pnand %p4120_p12, %p4280_p4 }
  0x27   : > { %v395_v32 = vadd.f32 %v4343_v23, %v4357_v26  ;;  %v396_v33 = vadd.f32 %v4343_v23, %v4362_v27  ;;  %v397_v47 = vadd.f32 %v4343_v23, %v4385_v38  ;;  %v398_v50 = vadd.f32 %v4343_v23, %v4394_v42  ;;  %p4128_p3 = por %p4127_p2, %p4126_p1 }
  0x28   : > { %v520_v34 = vmax.f32 %v392_v28, 0.0  ;;  %v521_v35 = vmax.f32 %v393_v29, 0.0  ;;  %v456_v36 = vadd.f32 %v4370_v30, %v4334_v21  ;;  %v457_v37 = vadd.f32 %v4370_v30, %v4339_v22  ;;  %p4122_p0 = pneg %p4121_p13 }
  0x29   : > { %v522_v39 = vmax.f32 %v394_v31, 0.0  ;;  %v458_v40 = vadd.f32 %v4370_v30, %v4352_v25  ;;  %v459_v41 = vadd.f32 %v4370_v30, %v4357_v26  ;;  %v523_v45 = vmax.f32 %v395_v32, 0.0 }
  0x2a   : > { %3852 = vmatprep.mubr.msk.f32.mxu0 %vm659_vm0, %v520_v34  ;;  %v584_v43 = vmax.f32 %v456_v36, 0.0  ;;  %v585_v44 = vmax.f32 %v457_v37, 0.0  ;;  %v460_v48 = vadd.f32 %v4370_v30, %v4362_v27  ;;  %v524_v49 = vmax.f32 %v396_v33, 0.0  ;;  %v4490_v36 = vld [vmem:[%s6283_s1 + $0x70] sm:$0xff]  ;;  %p4129_p5 = pnand %p4128_p3, %p4122_p0 }
  0x2b   : > { %3853 = vmatmul.mubr.msk.f32.vlgmr.msra.gmra.mrb[0].mxu0 %vm659_vm0, %v521_v35  ;;  %v586_v46 = vmax.f32 %v458_v40, 0.0  ;;  %v587_v52 = vmax.f32 %v459_v41, 0.0  ;;  %v461_v53 = vadd.f32 %v4370_v30, %v4385_v38  ;;  %v462_v56 = vadd.f32 %v4370_v30, %v4394_v42 }
  0x2c   : > { %3948 = vmatprep.mubr.msk.f32.mxu1 %vm659_vm0, %v584_v43  ;;  %3855 = vmatprep.mubr.msk.f32.mxu0 %vm659_vm0, %v522_v39  ;;  %v588_v55 = vmax.f32 %v460_v48, 0.0  ;;  %v525_v57 = vmax.f32 %v397_v47, 0.0  ;;  %v399_v58 = vadd.f32 %v4343_v23, %v4409_v51  ;;  %v526_v59 = vmax.f32 %v398_v50, 0.0 }
  0x2d   : > { %3949 = vmatmul.mubr.msk.f32.vlgmr.msra.gmra.mrb[0].mxu1 %vm659_vm0, %v585_v44  ;;  %v400_v60 = vadd.f32 %v4343_v23, %v4417_v54  ;;  %v589_v62 = vmax.f32 %v461_v53, 0.0  ;;  %v463_v63 = vadd.f32 %v4370_v30, %v4409_v51  ;;  %v590_v1 = vmax.f32 %v462_v56, 0.0 }
  0x2e   : > { %3951 = vmatprep.mubr.msk.f32.mxu1 %vm659_vm0, %v586_v46  ;;  %v464_v2 = vadd.f32 %v4370_v30, %v4417_v54  ;;  %v527_v3 = vmax.f32 %v399_v58, 0.0  ;;  %v401_v5 = vadd.f32 %v4343_v23, %v4431_v61  ;;  %v402_v8 = vadd.f32 %v4343_v23, %v4439_v0  ;;  %v4507_v46 = vld [vmem:[%s6283_s1 + $0x78] sm:$0xff] }
  0x2f   : > { %3856 = vmatmul.mubr.msk.f32.gmra.mrb[2].mxu0 %vm659_vm0, %v523_v45  ;;  %v528_v7 = vmax.f32 %v400_v60, 0.0  ;;  %v591_v11 = vmax.f32 %v463_v63, 0.0  ;;  %v465_v12 = vadd.f32 %v4370_v30, %v4431_v61  ;;  %v466_v18 = vadd.f32 %v4370_v30, %v4439_v0 }
  0x30   : > { %3858 = vmatprep.mubr.msk.f32.mxu0 %vm659_vm0, %v524_v49  ;;  %v592_v17 = vmax.f32 %v464_v2, 0.0  ;;  %v529_v28 = vmax.f32 %v401_v5, 0.0  ;;  %v403_v29 = vadd.f32 %v4343_v23, %v4455_v9  ;;  %v530_v31 = vmax.f32 %v402_v8, 0.0 }
  0x31   : > { %3952 = vmatmul.mubr.msk.f32.gmra.mrb[2].mxu1 %vm659_vm0, %v587_v52  ;;  %v404_v32 = vadd.f32 %v4343_v23, %v4463_v14  ;;  %v4482_v33 = vrot.slane %v302_v6, %v4316_v13  ;;  %v593_v34 = vmax.f32 %v465_v12, 0.0  ;;  %v467_v35 = vadd.f32 %v4370_v30, %v4455_v9 }
  0x32   : > { %3954 = vmatprep.mubr.msk.f32.mxu1 %vm659_vm0, %v588_v55  ;;  %v594_v37 = vmax.f32 %v466_v18, 0.0  ;;  %v468_v39 = vadd.f32 %v4370_v30, %v4463_v14  ;;  %v4496_v40 = vrot.slane %v303_v15, %v4316_v13  ;;  %v531_v41 = vmax.f32 %v403_v29, 0.0 }
  0x33   : > { %3859 = vmatmul.mubr.msk.f32.gmra.mrb[4].mxu0 %vm659_vm0, %v525_v57  ;;  %v405_v43 = vadd.f32 %v4343_v23, %v4479_v20  ;;  %v532_v44 = vmax.f32 %v404_v32, 0.0  ;;  %v406_v45 = vadd.f32 %v4343_v23, %v4490_v36  ;;  %v4511_v13 = vrot.slane %v4482_v33, %v4322_v16 }
  0x34   : > { %3861 = vmatprep.mubr.msk.f32.mxu0 %vm659_vm0, %v526_v59  ;;  %v595_v47 = vmax.f32 %v467_v35, 0.0  ;;  %v469_v48 = vadd.f32 %v4370_v30, %v4479_v20  ;;  %v596_v49 = vmax.f32 %v468_v39, 0.0  ;;  %v470_v50 = vadd.f32 %v4370_v30, %v4490_v36 }
  0x35   : > { %3955 = vmatmul.mubr.msk.f32.gmra.mrb[4].mxu1 %vm659_vm0, %v589_v62  ;;  %v4521_v52 = vrot.slane %v4496_v40, %v4322_v16  ;;  %v533_v53 = vmax.f32 %v405_v43, 0.0  ;;  %v407_v55 = vadd.f32 %v4343_v23, %v4507_v46  ;;  %v534_v56 = vmax.f32 %v406_v45, 0.0 }
  0x36   : > { %3957 = vmatprep.mubr.msk.f32.mxu1 %vm659_vm0, %v590_v1  ;;  %v408_v57 = vadd.f32 %v4511_v13, %v4334_v21  ;;  %v597_v58 = vmax.f32 %v469_v48, 0.0  ;;  %v471_v59 = vadd.f32 %v4370_v30, %v4507_v46  ;;  %v598_v60 = vmax.f32 %v470_v50, 0.0 }
  0x37   : > { %3862 = vmatmul.mubr.msk.f32.gmra.mrb[6].mxu0 %vm659_vm0, %v527_v3  ;;  %v472_v62 = vadd.f32 %v4521_v52, %v4334_v21  ;;  %v333_v23 = vcombine.high %v4347_v24, %v4347_v24  ;;  %v535_v63 = vmax.f32 %v407_v55, 0.0  ;;  %v409_v1 = vadd.f32 %v4511_v13, %v4339_v22 }
  0x38   : > { %3864 = vmatprep.mubr.msk.f32.mxu0 %vm659_vm0, %v528_v7  ;;  %v536_v2 = vmax.f32 %v408_v57, 0.0  ;;  %v410_v30 = vadd.f32 %v4511_v13, %v4352_v25  ;;  %v599_v3 = vmax.f32 %v471_v59, 0.0  ;;  %v473_v5 = vadd.f32 %v4521_v52, %v4339_v22 }
  0x39   : > { %3958 = vmatmul.mubr.msk.f32.gmra.mrb[6].mxu1 %vm659_vm0, %v591_v11  ;;  %v600_v24 = vmax.f32 %v472_v62, 0.0  ;;  %v474_v6 = vadd.f32 %v4521_v52, %v4352_v25  ;;  %v537_v7 = vmax.f32 %v409_v1, 0.0  ;;  %v411_v8 = vadd.f32 %v4511_v13, %v4357_v26 }
  0x3a   : > { %3960 = vmatprep.mubr.msk.f32.mxu1 %vm659_vm0, %v592_v17  ;;  %v4553_v11 = vrot.slane %v333_v23, %v4322_v16  ;;  %v538_v12 = vmax.f32 %v410_v30, 0.0  ;;  %v412_v15 = vadd.f32 %v4511_v13, %v4362_v27  ;;  %v601_v17 = vmax.f32 %v473_v5, 0.0 }
  0x3b   : > { %3865 = vmatmul.mubr.msk.f32.gmra.mrb[8].mxu0 %vm659_vm0, %v529_v28  ;;  %v475_v18 = vadd.f32 %v4521_v52, %v4357_v26  ;;  %v476_v32 = vadd.f32 %v4521_v52, %v4362_v27  ;;  %v413_v39 = vadd.f32 %v4511_v13, %v4385_v38  ;;  %v414_v43 = vadd.f32 %v4511_v13, %v4394_v42 }
  0x3c   : > { %3867 = vmatprep.mubr.msk.f32.mxu0 %vm659_vm0, %v530_v31  ;;  %v4563_v28 = vadd.f32 %v4553_v11, %v4334_v21  ;;  %v4567_v29 = vadd.f32 %v4553_v11, %v4339_v22  ;;  %v602_v31 = vmax.f32 %v474_v6, 0.0  ;;  %v4578_v35 = vadd.f32 %v4553_v11, %v4357_v26 }
  0x3d   : > { %3961 = vmatmul.mubr.msk.f32.gmra.mrb[8].mxu1 %vm659_vm0, %v593_v34  ;;  %v4574_v34 = vadd.f32 %v4553_v11, %v4352_v25  ;;  %v477_v45 = vadd.f32 %v4521_v52, %v4385_v38  ;;  %v4595_v48 = vadd.f32 %v4553_v11, %v4385_v38  ;;  %v478_v50 = vadd.f32 %v4521_v52, %v4394_v42 }
  0x3e   : > { %3963 = vmatprep.mubr.msk.f32.mxu1 %vm659_vm0, %v594_v37  ;;  %v539_v37 = vmax.f32 %v411_v8, 0.0  ;;  %v415_v55 = vadd.f32 %v4511_v13, %v4409_v51  ;;  %v416_v57 = vadd.f32 %v4511_v13, %v4417_v54  ;;  %v4612_v59 = vadd.f32 %v4553_v11, %v4409_v51 }
  0x3f   : > { %3868 = vmatmul.mubr.msk.f32.gmra.mrb[10].mxu0 %vm659_vm0, %v531_v41  ;;  %v540_v41 = vmax.f32 %v412_v15, 0.0  ;;  %v479_v62 = vadd.f32 %v4521_v52, %v4409_v51  ;;  %v4619_v23 = vadd.f32 %v4553_v11, %v4417_v54  ;;  %v606_v1 = vmax.f32 %v478_v50, 0.0 }
  0x40   : > { %3870 = vmatprep.mubr.msk.f32.mxu0 %vm659_vm0, %v532_v44  ;;  %v603_v44 = vmax.f32 %v475_v18, 0.0  ;;  %v334_v30 = vcombine.high %v4482_v33, %v4482_v33  ;;  %v417_v5 = vadd.f32 %v4511_v13, %v4431_v61  ;;  %v418_v6 = vadd.f32 %v4511_v13, %v4439_v0 }
  0x41   : > { %3964 = vmatmul.mubr.msk.f32.gmra.mrb[10].mxu1 %vm659_vm0, %v595_v47  ;;  %v4591_v47 = vadd.f32 %v4553_v11, %v4362_v27  ;;  %v4640_v8 = vadd.f32 %v4553_v11, %v4439_v0  ;;  %v4644_v33 = vadd.f32 %v4553_v11, %v4455_v9  ;;  %v4649_v15 = vadd.f32 %v4553_v11, %v4463_v14 }
  0x42   : > { %3966 = vmatprep.mubr.msk.f32.mxu1 %vm659_vm0, %v596_v49  ;;  %v604_v49 = vmax.f32 %v476_v32, 0.0  ;;  %v335_v18 = vcombine.high %v4496_v40, %v4496_v40  ;;  %v419_v32 = vadd.f32 %v4511_v13, %v4455_v9  ;;  %v546_v40 = vmax.f32 %v418_v6, 0.0 }
  0x43   : > { %3871 = vmatmul.mubr.msk.f32.gmra.mrb[12].mxu0 %vm659_vm0, %v533_v53  ;;  %v541_v53 = vmax.f32 %v413_v39, 0.0  ;;  %v4663_v39 = vrot.slane %v334_v30, %v4322_v16  ;;  %v421_v30 = vadd.f32 %v4511_v13, %v4479_v20 }
  0x44   : > { %3873 = vmatprep.mubr.msk.f32.mxu0 %vm659_vm0, %v534_v56  ;;  %v542_v56 = vmax.f32 %v414_v43, 0.0  ;;  %v545_v43 = vmax.f32 %v417_v5, 0.0 }
  0x45   : > { %3967 = vmatmul.mubr.msk.f32.gmra.mrb[12].mxu1 %vm659_vm0, %v597_v58  ;;  %v4608_v58 = vadd.f32 %v4553_v11, %v4394_v42  ;;  %v4675_v50 = vadd.f32 %v4663_v39, %v4334_v21 }
  0x46   : > { %3969 = vmatprep.mubr.msk.f32.mxu1 %vm659_vm0, %v598_v60  ;;  %v605_v60 = vmax.f32 %v477_v45, 0.0  ;;  %v483_v45 = vadd.f32 %v4521_v52, %v4455_v9 }
  0x47   : > { %3874 = vmatmul.mubr.msk.f32.gmra.mrb[14].mxu0 %vm659_vm0, %v535_v63  ;;  %v4623_v63 = vadd.f32 %v4553_v11, %v4431_v61 }
  0x48   : > { %3876 = vmatprep.mubr.msk.f32.mxu0 %vm659_vm0, %v536_v2  ;;  %v480_v2 = vadd.f32 %v4521_v52, %v4417_v54 }
  0x49   : > { %3970 = vmatmul.mubr.msk.f32.gmra.mrb[14].mxu1 %vm659_vm0, %v599_v3  ;;  %v543_v3 = vmax.f32 %v415_v55, 0.0  ;;  %v4687_v55 = vadd.f32 %v4663_v39, %v4352_v25 }
  0x4a   : > { %3972 = vmatprep.mubr.msk.f32.mxu1 %vm659_vm0, %v600_v24  ;;  %v481_v24 = vadd.f32 %v4521_v52, %v4431_v61 }
  0x4b   : > { %3877 = vmatmul.mubr.msk.f32.gmra.mrb[16].mxu0 %vm659_vm0, %v537_v7  ;;  %v544_v7 = vmax.f32 %v416_v57, 0.0  ;;  %v4695_v57 = vadd.f32 %v4663_v39, %v4362_v27 }
  0x4c   : > { %3879 = vmatprep.mubr.msk.f32.mxu0 %vm659_vm0, %v538_v12  ;;  %v607_v12 = vmax.f32 %v479_v62, 0.0 }
  0x4d   : > { %3973 = vmatmul.mubr.msk.f32.gmra.mrb[16].mxu1 %vm659_vm0, %v601_v17  ;;  %v4653_v17 = vadd.f32 %v4553_v11, %v4479_v20 }
  0x4e   : > { %3975 = vmatprep.mubr.msk.f32.mxu1 %vm659_vm0, %v602_v31  ;;  %v608_v31 = vmax.f32 %v480_v2, 0.0  ;;  %v4702_v2 = vadd.f32 %v4663_v39, %v4385_v38 }
  0x4f   : > { %3880 = vmatmul.mubr.msk.f32.gmra.mrb[18].mxu0 %vm659_vm0, %v539_v37  ;;  %v482_v37 = vadd.f32 %v4521_v52, %v4439_v0 }
  0x50   : > { %3882 = vmatprep.mubr.msk.f32.mxu0 %vm659_vm0, %v540_v41  ;;  %v332_v41 = vcombine.high %v4326_v19, %v4326_v19  ;;  %v4679_v19 = vadd.f32 %v4663_v39, %v4339_v22 }
  0x51   : > { %3976 = vmatmul.mubr.msk.f32.gmra.mrb[18].mxu1 %vm659_vm0, %v603_v44  ;;  %v609_v44 = vmax.f32 %v481_v24, 0.0  ;;  %v610_v62 = vmax.f32 %v482_v37, 0.0  ;;  %v4734_v37 = vadd.f32 %v4663_v39, %v4394_v42 }
  0x52   : > { %3978 = vmatprep.mubr.msk.f32.mxu1 %vm659_vm0, %v604_v49  ;;  %v420_v49 = vadd.f32 %v4511_v13, %v4463_v14 }
  0x53   : > { %3883 = vmatmul.mubr.msk.f32.gmra.mrb[20].mxu0 %vm659_vm0, %v541_v53  ;;  %v4683_v53 = vrot.slane %v335_v18, %v4322_v16 }
  0x54   : > { %3885 = vmatprep.mubr.msk.f32.mxu0 %vm659_vm0, %v542_v56  ;;  %v4691_v56 = vadd.f32 %v4663_v39, %v4357_v26  ;;  %v548_v6 = vmax.f32 %v420_v49, 0.0  ;;  %v423_v49 = vadd.f32 %v4511_v13, %v4507_v46 }
  0x55   : > { %3979 = vmatmul.mubr.msk.f32.gmra.mrb[20].mxu1 %vm659_vm0, %v605_v60  ;;  %v547_v60 = vmax.f32 %v419_v32, 0.0  ;;  %v4711_v5 = vadd.f32 %v4683_v53, %v4334_v21  ;;  %v4715_v24 = vadd.f32 %v4683_v53, %v4339_v22  ;;  %v4727_v18 = vadd.f32 %v4683_v53, %v4357_v26 }
  0x56   : > { %3981 = vmatprep.mubr.msk.f32.mxu1 %vm659_vm0, %v606_v1  ;;  %v484_v1 = vadd.f32 %v4521_v52, %v4463_v14  ;;  %v485_v32 = vadd.f32 %v4521_v52, %v4479_v20 }
  0x57   : > { %3886 = vmatmul.mubr.msk.f32.gmra.mrb[22].mxu0 %vm659_vm0, %v543_v3  ;;  %v422_v3 = vadd.f32 %v4511_v13, %v4490_v36  ;;  %v4771_v13 = vadd.f32 %v4683_v53, %v4409_v51 }
  0x58   : > { %3888 = vmatprep.mubr.msk.f32.mxu0 %vm659_vm0, %v544_v7  ;;  %v4719_v7 = vrot.slane %v332_v41, %v4322_v16  ;;  %v4738_v16 = vadd.f32 %v4683_v53, %v4362_v27  ;;  %v612_v41 = vmax.f32 %v484_v1, 0.0  ;;  %v4760_v1 = vadd.f32 %v4683_v53, %v4394_v42 }
  0x59   : > { %3982 = vmatmul.mubr.msk.f32.gmra.mrb[22].mxu1 %vm659_vm0, %v607_v12  ;;  %v4723_v12 = vadd.f32 %v4683_v53, %v4352_v25  ;;  %v550_v4 = vmax.f32 %v422_v3, 0.0  ;;  %v4778_v3 = vadd.f32 %v4683_v53, %v4417_v54 }
  0x5a   : > { %3984 = vmatprep.mubr.msk.f32.mxu1 %vm659_vm0, %v608_v31  ;;  %v611_v31 = vmax.f32 %v483_v45, 0.0  ;;  %v549_v45 = vmax.f32 %v421_v30, 0.0  ;;  %v424_v10 = vadd.f32 %v4719_v7, %v4334_v21  ;;  %v613_v30 = vmax.f32 %v485_v32, 0.0 }
  0x5b   : > { %3889 = vmatmul.mubr.msk.f32.gmra.mrb[24].mxu0 %vm659_vm0, %v545_v43  ;;  %v486_v43 = vadd.f32 %v4521_v52, %v4490_v36  ;;  %v4782_v21 = vadd.f32 %v4683_v53, %v4431_v61  ;;  %v425_v32 = vadd.f32 %v4719_v7, %v4339_v22  ;;  %v4813_v22 = vadd.f32 %v4663_v39, %v4479_v20 }
  0x5c   : > { %3891 = vmatprep.mubr.msk.f32.mxu0 %vm659_vm0, %v546_v40  ;;  %v4749_v40 = vadd.f32 %v4683_v53, %v4385_v38 }
  0x5d   : > { %3985 = vmatmul.mubr.msk.f32.gmra.mrb[24].mxu1 %vm659_vm0, %v609_v44  ;;  %v4745_v44 = vadd.f32 %v4663_v39, %v4409_v51  ;;  %6298 = vst [vmem:[#allocation9_spill] sm:$0xff] %v4782_v21  ;;  %v4798_v21 = vadd.f32 %v4683_v53, %v4439_v0  ;;  %6301 = vst [vmem:[#allocation12_spill] sm:$0xff] %v4813_v22  ;;  %v427_v22 = vadd.f32 %v4719_v7, %v4357_v26 }
  0x5e   : > { %3987 = vmatprep.mubr.msk.f32.mxu1 %vm659_vm0, %v610_v62  ;;  %v4756_v62 = vadd.f32 %v4663_v39, %v4417_v54  ;;  %v429_v26 = vadd.f32 %v4719_v7, %v4385_v38  ;;  %v431_v38 = vadd.f32 %v4719_v7, %v4409_v51  ;;  %v433_v51 = vadd.f32 %v4719_v7, %v4431_v61 }
  0x5f   : > { %3892 = vmatmul.mubr.msk.f32.gmra.mrb[26].mxu0 %vm659_vm0, %v547_v60  ;;  %v4767_v60 = vadd.f32 %v4663_v39, %v4431_v61  ;;  %v435_v61 = vadd.f32 %v4719_v7, %v4455_v9 }
  0x60   : > { %6296 = vst [vmem:[#allocation7_spill] sm:$0xff] %v4756_v62  ;;  %3894 = vmatprep.mubr.msk.f32.mxu0 %vm659_vm0, %v548_v6  ;;  %v487_v62 = vadd.f32 %v4521_v52, %v4507_v46  ;;  %v614_v6 = vmax.f32 %v486_v43, 0.0  ;;  %v551_v52 = vmax.f32 %v423_v49, 0.0  ;;  %v552_v43 = vmax.f32 %v424_v10, 0.0 }
  0x61   : > { %6297 = vst [vmem:[#allocation8_spill] sm:$0xff] %v4767_v60  ;;  %3988 = vmatmul.mubr.msk.f32.gmra.mrb[26].mxu1 %vm659_vm0, %v611_v31  ;;  %v4787_v60 = vadd.f32 %v4663_v39, %v4439_v0  ;;  %v4791_v31 = vadd.f32 %v4663_v39, %v4455_v9  ;;  %v616_v10 = vmax.f32 %v4563_v28, 0.0  ;;  %v618_v28 = vmax.f32 %v4574_v34, 0.0 }
  0x62   : > { %3990 = vmatprep.mubr.msk.f32.mxu1 %vm659_vm0, %v612_v41  ;;  %v4802_v41 = vadd.f32 %v4683_v53, %v4455_v9  ;;  %v615_v49 = vmax.f32 %v487_v62, 0.0  ;;  %v620_v34 = vmax.f32 %v4591_v47, 0.0  ;;  %v622_v47 = vmax.f32 %v4608_v58, 0.0 }
  0x63   : > { %6299 = vst [vmem:[#allocation10_spill] sm:$0xff] %v4791_v31  ;;  %3895 = vmatmul.mubr.msk.f32.gmra.mrb[28].mxu0 %vm659_vm0, %v549_v45  ;;  %v426_v31 = vadd.f32 %v4719_v7, %v4352_v25  ;;  %v4809_v45 = vadd.f32 %v4663_v39, %v4463_v14  ;;  %v553_v25 = vmax.f32 %v425_v32, 0.0  ;;  %v624_v58 = vmax.f32 %v4619_v23, 0.0 }
  0x64   : > { %6300 = vst [vmem:[#allocation11_spill] sm:$0xff] %v4802_v41  ;;  %3897 = vmatprep.mubr.msk.f32.mxu0 %vm659_vm0, %v550_v4  ;;  %v4818_v41 = vadd.f32 %v4683_v53, %v4463_v14  ;;  %v4822_v4 = vadd.f32 %v4683_v53, %v4479_v20  ;;  %v626_v23 = vmax.f32 %v4640_v8, 0.0  ;;  %v437_v9 = vadd.f32 %v4719_v7, %v4479_v20 }
  0x65   : > { %3991 = vmatmul.mubr.msk.f32.gmra.mrb[28].mxu1 %vm659_vm0, %v613_v30  ;;  %v554_v62 = vmax.f32 %v426_v31, 0.0  ;;  %v428_v30 = vadd.f32 %v4719_v7, %v4362_v27  ;;  %v430_v27 = vadd.f32 %v4719_v7, %v4394_v42  ;;  %v432_v42 = vadd.f32 %v4719_v7, %v4417_v54 }
  0x66   : > { %6302 = vst [vmem:[#allocation13_spill] sm:$0xff] %v4822_v4  ;;  %3993 = vmatprep.mubr.msk.f32.mxu1 %vm659_vm0, %v614_v6  ;;  %v617_v4 = vmax.f32 %v4567_v29, 0.0  ;;  %v555_v6 = vmax.f32 %v427_v22, 0.0  ;;  %v619_v29 = vmax.f32 %v4578_v35, 0.0  ;;  %v621_v35 = vmax.f32 %v4595_v48, 0.0 }
  0x67   : > { %3898 = vmatmul.mubr.msk.f32.gmra.mrb[30].mxu0 %vm659_vm0, %v551_v52  ;;  %v556_v31 = vmax.f32 %v428_v30, 0.0  ;;  %v557_v52 = vmax.f32 %v429_v26, 0.0  ;;  %v558_v32 = vmax.f32 %v430_v27, 0.0  ;;  %v560_v22 = vmax.f32 %v432_v42, 0.0 }
  0x68   : > { %3900 = vmatprep.mubr.msk.f32.mxu0 %vm659_vm0, %v552_v43  ;;  %v559_v43 = vmax.f32 %v431_v38, 0.0  ;;  %v434_v54 = vadd.f32 %v4719_v7, %v4439_v0  ;;  %v623_v48 = vmax.f32 %v4612_v59, 0.0  ;;  %v436_v0 = vadd.f32 %v4719_v7, %v4463_v14  ;;  %v6305_v38 = vld [vmem:[#allocation9_spill] sm:$0xff] }
  0x69   : > { %3994 = vmatmul.mubr.msk.f32.gmra.mrb[30].mxu1 %vm659_vm0, %v615_v49  ;;  %v561_v49 = vmax.f32 %v433_v51, 0.0  ;;  %v625_v59 = vmax.f32 %v4623_v63, 0.0  ;;  %v438_v14 = vadd.f32 %v4719_v7, %v4490_v36  ;;  %v627_v63 = vmax.f32 %v4644_v33, 0.0 }
  0x6a   : > { %3996 = vmatprep.mubr.msk.f32.mxu1 %vm659_vm0, %v616_v10  ;;  %v563_v10 = vmax.f32 %v435_v61, 0.0  ;;  %v628_v8 = vmax.f32 %v4649_v15, 0.0  ;;  %v565_v20 = vmax.f32 %v437_v9, 0.0  ;;  %v439_v30 = vadd.f32 %v4719_v7, %v4507_v46  ;;  %v6306_v42 = vld [vmem:[#allocation10_spill] sm:$0xff] }
  0x6b   : > { %3901 = vmatmul.mubr.msk.f32.gmra.mrb[32].mxu0 %vm659_vm0, %v553_v25  ;;  %v564_v25 = vmax.f32 %v436_v0, 0.0  ;;  %v629_v33 = vmax.f32 %v4653_v17, 0.0  ;;  %v568_v7 = vmax.f32 %v4675_v50, 0.0  ;;  %v632_v17 = vmax.f32 %v4711_v5, 0.0 }
  0x6c   : > { %3903 = vmatprep.mubr.msk.f32.mxu0 %vm659_vm0, %v554_v62  ;;  %v502_v62 = vadd.f32 %v4553_v11, %v4490_v36  ;;  %v567_v26 = vmax.f32 %v439_v30, 0.0  ;;  %v570_v27 = vmax.f32 %v4687_v55, 0.0  ;;  %v634_v50 = vmax.f32 %v4723_v12, 0.0 }
  0x6d   : > { %3997 = vmatmul.mubr.msk.f32.gmra.mrb[32].mxu1 %vm659_vm0, %v617_v4  ;;  %v562_v4 = vmax.f32 %v434_v54, 0.0  ;;  %v571_v5 = vmax.f32 %v4691_v56, 0.0  ;;  %v635_v55 = vmax.f32 %v4727_v18, 0.0  ;;  %v573_v12 = vmax.f32 %v4702_v2, 0.0 }
  0x6e   : > { %3999 = vmatprep.mubr.msk.f32.mxu1 %vm659_vm0, %v618_v28  ;;  %v566_v28 = vmax.f32 %v438_v14, 0.0  ;;  %v630_v15 = vmax.f32 %v502_v62, 0.0  ;;  %v574_v56 = vmax.f32 %v4734_v37, 0.0  ;;  %v638_v18 = vmax.f32 %v4760_v1, 0.0 }
  0x6f   : > { %3904 = vmatmul.mubr.msk.f32.gmra.mrb[34].mxu0 %vm659_vm0, %v555_v6  ;;  %v503_v6 = vadd.f32 %v4553_v11, %v4507_v46  ;;  %v569_v11 = vmax.f32 %v4679_v19, 0.0  ;;  %v572_v19 = vmax.f32 %v4695_v57, 0.0  ;;  %v637_v57 = vmax.f32 %v4749_v40, 0.0 }
  0x70   : > { %3906 = vmatprep.mubr.msk.f32.mxu0 %vm659_vm0, %v556_v31  ;;  %v639_v37 = vmax.f32 %v4771_v13, 0.0  ;;  %v640_v40 = vmax.f32 %v4778_v3, 0.0  ;;  %v642_v13 = vmax.f32 %v4798_v21, 0.0  ;;  %v579_v3 = vmax.f32 %v6306_v42, 0.0 }
  0x71   : > { %4000 = vmatmul.mubr.msk.f32.gmra.mrb[34].mxu1 %vm659_vm0, %v619_v29  ;;  %v631_v31 = vmax.f32 %v503_v6, 0.0  ;;  %v633_v29 = vmax.f32 %v4715_v24, 0.0  ;;  %v636_v24 = vmax.f32 %v4738_v16, 0.0  ;;  %v575_v16 = vmax.f32 %v4745_v44, 0.0 }
  0x72   : > { %4002 = vmatprep.mubr.msk.f32.mxu1 %vm659_vm0, %v620_v34  ;;  %v6303_v34 = vld [vmem:[#allocation7_spill] sm:$0xff]  ;;  %v578_v44 = vmax.f32 %v4787_v60, 0.0  ;;  %v644_v51 = vmax.f32 %v4818_v41, 0.0  ;;  %v518_v21 = vadd.f32 %v4683_v53, %v4490_v36  ;;  %v519_v41 = vadd.f32 %v4683_v53, %v4507_v46 }
  0x73   : > { %3907 = vmatmul.mubr.msk.f32.gmra.mrb[36].mxu0 %vm659_vm0, %v557_v52  ;;  %v576_v2 = vmax.f32 %v6303_v34, 0.0  ;;  %v6304_v52 = vld [vmem:[#allocation8_spill] sm:$0xff]  ;;  %v6307_v60 = vld [vmem:[#allocation11_spill] sm:$0xff] }
  0x74   : > { %3909 = vmatprep.mubr.msk.f32.mxu0 %vm659_vm0, %v558_v32  ;;  %v577_v1 = vmax.f32 %v6304_v52, 0.0  ;;  %v641_v32 = vmax.f32 %v6305_v38, 0.0 }
  0x75   : > { %4003 = vmatmul.mubr.msk.f32.gmra.mrb[36].mxu1 %vm659_vm0, %v621_v35  ;;  %v580_v35 = vmax.f32 %v4809_v45, 0.0  ;;  %v455_v45 = vadd.f32 %v4663_v39, %v4507_v46  ;;  %v4974_v46 = vld [vmem:[%s6285_s3] ss:$0 sm:$0xff] }
  0x76   : > { %4005 = vmatprep.mubr.msk.f32.mxu1 %vm659_vm0, %v622_v47  ;;  %v454_v47 = vadd.f32 %v4663_v39, %v4490_v36  ;;  %v646_v36 = vmax.f32 %v518_v21, 0.0  ;;  %v647_v39 = vmax.f32 %v519_v41, 0.0 }
  0x77   : > { %3910 = vmatmul.mubr.msk.f32.gmra.mrb[38].mxu0 %vm659_vm0, %v559_v43  ;;  %v643_v43 = vmax.f32 %v6307_v60, 0.0  ;;  %v583_v61 = vmax.f32 %v455_v45, 0.0 }
  0x78   : > { %3912 = vmatprep.mubr.msk.f32.mxu0 %vm659_vm0, %v560_v22  ;;  %v6308_v22 = vld [vmem:[#allocation12_spill] sm:$0xff] }
  0x79   : > { %4006 = vmatmul.mubr.msk.f32.gmra.mrb[38].mxu1 %vm659_vm0, %v623_v48  ;;  %v581_v54 = vmax.f32 %v6308_v22, 0.0  ;;  %v582_v48 = vmax.f32 %v454_v47, 0.0 }
  0x7a   : > { %4008 = vmatprep.mubr.msk.f32.mxu1 %vm659_vm0, %v624_v58  ;;  %v6309_v58 = vld [vmem:[#allocation13_spill] sm:$0xff] }
  0x7b   : > { %3913 = vmatmul.mubr.msk.f32.gmra.mrb[40].mxu0 %vm659_vm0, %v561_v49  ;;  %v645_v49 = vmax.f32 %v6309_v58, 0.0 }
  0x7c   : > { %3915 = vmatprep.mubr.msk.f32.mxu0 %vm659_vm0, %v562_v4 }
  0x7d   : > { %4009 = vmatmul.mubr.msk.f32.gmra.mrb[40].mxu1 %vm659_vm0, %v625_v59 }
  0x7e   : > { %4011 = vmatprep.mubr.msk.f32.mxu1 %vm659_vm0, %v626_v23 }
  0x7f   : > { %3916 = vmatmul.mubr.msk.f32.gmra.mrb[42].mxu0 %vm659_vm0, %v563_v10  ;;  %v4981_v10 = vld [vmem:[%s6286_s4] ss:$0 sm:$0xff] }
  0x80   : > { %3918 = vmatprep.mubr.msk.f32.mxu0 %vm659_vm0, %v564_v25 }
  0x81   : > { %4012 = vmatmul.mubr.msk.f32.gmra.mrb[42].mxu1 %vm659_vm0, %v627_v63 }
  0x82   : > { %4014 = vmatprep.mubr.msk.f32.mxu1 %vm659_vm0, %v628_v8 }
  0x83   : > { %3919 = vmatmul.mubr.msk.f32.gmra.mrb[44].mxu0 %vm659_vm0, %v565_v20 }
  0x84   : > { %3921 = vmatprep.mubr.msk.f32.mxu0 %vm659_vm0, %v566_v28 }
  0x85   : > { %4015 = vmatmul.mubr.msk.f32.gmra.mrb[44].mxu1 %vm659_vm0, %v629_v33 }
  0x86   : > { %4017 = vmatprep.mubr.msk.f32.mxu1 %vm659_vm0, %v630_v15 }
  0x87   : > { %3922 = vmatmul.mubr.msk.f32.gmra.mrb[46].mxu0 %vm659_vm0, %v567_v26 }
  0x88   : > { %3924 = vmatprep.mubr.msk.f32.mxu0 %vm659_vm0, %v568_v7 }
  0x89   : > { %4018 = vmatmul.mubr.msk.f32.gmra.mrb[46].mxu1 %vm659_vm0, %v631_v31 }
  0x8a   : > { %4020 = vmatprep.mubr.msk.f32.mxu1 %vm659_vm0, %v632_v17 }
  0x8b   : > { %3925 = vmatmul.mubr.msk.f32.gmra.mrb[48].mxu0 %vm659_vm0, %v569_v11 }
  0x8c   : > { %3927 = vmatprep.mubr.msk.f32.mxu0 %vm659_vm0, %v570_v27 }
  0x8d   : > { %4021 = vmatmul.mubr.msk.f32.gmra.mrb[48].mxu1 %vm659_vm0, %v633_v29 }
  0x8e   : > { %4023 = vmatprep.mubr.msk.f32.mxu1 %vm659_vm0, %v634_v50 }
  0x8f   : > { %3928 = vmatmul.mubr.msk.f32.gmra.mrb[50].mxu0 %vm659_vm0, %v571_v5 }
  0x90   : > { %3930 = vmatprep.mubr.msk.f32.mxu0 %vm659_vm0, %v572_v19 }
  0x91   : > { %4024 = vmatmul.mubr.msk.f32.gmra.mrb[50].mxu1 %vm659_vm0, %v635_v55 }
  0x92   : > { %4026 = vmatprep.mubr.msk.f32.mxu1 %vm659_vm0, %v636_v24 }
  0x93   : > { %3931 = vmatmul.mubr.msk.f32.gmra.mrb[52].mxu0 %vm659_vm0, %v573_v12 }
  0x94   : > { %3933 = vmatprep.mubr.msk.f32.mxu0 %vm659_vm0, %v574_v56 }
  0x95   : > { %4027 = vmatmul.mubr.msk.f32.gmra.mrb[52].mxu1 %vm659_vm0, %v637_v57 }
  0x96   : > { %4029 = vmatprep.mubr.msk.f32.mxu1 %vm659_vm0, %v638_v18 }
  0x97   : > { %3934 = vmatmul.mubr.msk.f32.gmra.mrb[54].mxu0 %vm659_vm0, %v575_v16 }
  0x98   : > { %3936 = vmatprep.mubr.msk.f32.mxu0 %vm659_vm0, %v576_v2 }
  0x99   : > { %4030 = vmatmul.mubr.msk.f32.gmra.mrb[54].mxu1 %vm659_vm0, %v639_v37 }
  0x9a   : > { %4032 = vmatprep.mubr.msk.f32.mxu1 %vm659_vm0, %v640_v40 }
  0x9b   : > { %3937 = vmatmul.mubr.msk.f32.gmra.mrb[56].mxu0 %vm659_vm0, %v577_v1 }
  0x9c   : > { %3939 = vmatprep.mubr.msk.f32.mxu0 %vm659_vm0, %v578_v44 }
  0x9d   : > { %4033 = vmatmul.mubr.msk.f32.gmra.mrb[56].mxu1 %vm659_vm0, %v641_v32 }
  0x9e   : > { %4035 = vmatprep.mubr.msk.f32.mxu1 %vm659_vm0, %v642_v13 }
  0x9f   : > { %3940 = vmatmul.mubr.msk.f32.gmra.mrb[58].mxu0 %vm659_vm0, %v579_v3 }
  0xa0   : > { %3942 = vmatprep.mubr.msk.f32.mxu0 %vm659_vm0, %v580_v35 }
  0xa1   : > { %4036 = vmatmul.mubr.msk.f32.gmra.mrb[58].mxu1 %vm659_vm0, %v643_v43 }
  0xa2   : > { %4038 = vmatprep.mubr.msk.f32.mxu1 %vm659_vm0, %v644_v51 }
  0xa3   : > { %3943 = vmatmul.mubr.msk.f32.gmra.mrb[60].mxu0 %vm659_vm0, %v581_v54 }
  0xa4   : > { %3945 = vmatprep.mubr.msk.f32.mxu0 %vm659_vm0, %v582_v48 }
  0xa5   : > { %4039 = vmatmul.mubr.msk.f32.gmra.mrb[60].mxu1 %vm659_vm0, %v645_v49 }
  0xa6   : > { %4041 = vmatprep.mubr.msk.f32.mxu1 %vm659_vm0, %v646_v36 }
  0xa7   : > { %3946 = vmatmul.mubr.msk.f32.gmra.mrb[62].mxu0 %vm659_vm0, %v583_v61 }
  0xa9   : > { %4042 = vmatmul.mubr.msk.f32.gmra.mrb[62].mxu1 %vm659_vm0, %v647_v39  ;;  %vm2900_vm0 = vcmask 1048512  }
  0xfe   : > { %v3854_v53 = vpop.f32.mrb[0].mxu0 }
  0xff   : > { %v1116_v4 = vadd.f32 %v3854_v53, %v4974_v46  ;;  %v1110_v0 = vpop.f32.mrb[1].mxu0 }
 0x100   : > { %v1111_v59 = vadd.f32 %v4974_v46, %v1110_v0  ;;  %v3950_v23 = vpop.f32.mrb[0].mxu1 }
 0x101   : > { %v1750_v9 = vmax.f32 %v1116_v4, 0.0  ;;  %v1436_v25 = vadd.f32 %v3950_v23, %v4974_v46  ;;  %v1430_v14 = vpop.f32.mrb[1].mxu1 }
 0x102   : > { %v1749_v63 = vmax.f32 %v1111_v59, 0.0  ;;  %v1431_v8 = vadd.f32 %v4974_v46, %v1430_v14  ;;  %v3857_v62 = vpop.f32.mrb[2].mxu0 }
 0x103   : > { %v1814_v20 = vmax.f32 %v1436_v25, 0.0  ;;  %v1126_v30 = vadd.f32 %v3857_v62, %v4974_v46  ;;  %v1120_v28 = vpop.f32.mrb[3].mxu0  ;;  %v1885_v33 = vmul.f32 %v4981_v10, %v1750_v9 }
 0x104   : > { %v1813_v6 = vmax.f32 %v1431_v8, 0.0  ;;  %v1121_v15 = vadd.f32 %v4974_v46, %v1120_v28  ;;  %v3953_v26 = vpop.f32.mrb[2].mxu1  ;;  %v1884_v7 = vmul.f32 %v4981_v10, %v1749_v63 }
 0x105   : > { %v1752_v31 = vmax.f32 %v1126_v30, 0.0  ;;  %v2016_v17 = vsel %vm2012_vm1, %v1885_v33, 0.0  ;;  %v1949_v11 = vmul.f32 %v4981_v10, %v1814_v20  ;;  %v1446_v27 = vadd.f32 %v3953_v26, %v4974_v46  ;;  %v1440_v29 = vpop.f32.mrb[3].mxu1 }
 0x106   : > { %v1751_v50 = vmax.f32 %v1121_v15, 0.0  ;;  %2017 = vadd.xlane.f32.xlu0 %v2016_v17  ;;  %v1441_v5 = vadd.f32 %v4974_v46, %v1440_v29  ;;  %v3860_v19 = vpop.f32.mrb[4].mxu0  ;;  %v2013_v56 = vsel %vm2012_vm1, %v1884_v7, 0.0  ;;  %v1948_v40 = vmul.f32 %v4981_v10, %v1813_v6 }
 0x107   : > { %v2208_v55 = vsel %vm2012_vm1, %v1949_v11, 0.0  ;;  %v1887_v24 = vmul.f32 %v4981_v10, %v1752_v31  ;;  %v1130_v12 = vpop.f32.mrb[5].mxu0  ;;  %v1816_v34 = vmax.f32 %v1446_v27, 0.0  ;;  %v1136_v37 = vadd.f32 %v3860_v19, %v4974_v46 }
 0x108   : > { %2209 = vadd.xlane.f32.xlu1 %v2208_v55  ;;  %v1815_v57 = vmax.f32 %v1441_v5, 0.0  ;;  %v1131_v18 = vadd.f32 %v4974_v46, %v1130_v12  ;;  %v3956_v16 = vpop.f32.mrb[4].mxu1  ;;  %v1886_v1 = vmul.f32 %v4981_v10, %v1751_v50  ;;  %v2205_v47 = vsel %vm2012_vm1, %v1948_v40, 0.0 }
 0x109   : > { %v2022_v2 = vsel %vm2012_vm1, %v1887_v24, 0.0  ;;  %v1450_v52 = vpop.f32.mrb[5].mxu1  ;;  %v1754_v35 = vmax.f32 %v1136_v37, 0.0  ;;  %v1456_v60 = vadd.f32 %v3956_v16, %v4974_v46  ;;  %v1951_v43 = vmul.f32 %v4981_v10, %v1816_v34 }
 0x10a   : > { %2014 = vadd.xlane.f32.xlu0 %v2013_v56  ;;  %v3863_v44 = vpop.f32.mrb[6].mxu0  ;;  %v1753_v38 = vmax.f32 %v1131_v18, 0.0  ;;  %v1451_v32 = vadd.f32 %v4974_v46, %v1450_v52  ;;  %v1950_v13 = vmul.f32 %v4981_v10, %v1815_v57  ;;  %v2019_v21 = vsel %vm2012_vm1, %v1886_v1, 0.0 }
 0x10b   : > { %v1140_v42 = vpop.f32.mrb[7].mxu0  ;;  %v1818_v36 = vmax.f32 %v1456_v60, 0.0  ;;  %v2214_v61 = vsel %vm2012_vm1, %v1951_v43, 0.0  ;;  %v1146_v39 = vadd.f32 %v3863_v44, %v4974_v46  ;;  %v1889_v53 = vmul.f32 %v4981_v10, %v1754_v35 }
 0x10c   : > { %2023 = vadd.xlane.f32.xlu1 %v2022_v2  ;;  %v3959_v3 = vpop.f32.mrb[6].mxu1  ;;  %v1817_v54 = vmax.f32 %v1451_v32, 0.0  ;;  %v2211_v45 = vsel %vm2012_vm1, %v1950_v13, 0.0  ;;  %v1141_v48 = vadd.f32 %v4974_v46, %v1140_v42  ;;  %v1888_v58 = vmul.f32 %v4981_v10, %v1753_v38 }
 0x10d   : > { %v1460_v51 = vpop.f32.mrb[7].mxu1  ;;  %v1756_v8 = vmax.f32 %v1146_v39, 0.0  ;;  %v2028_v62 = vsel %vm2012_vm1, %v1889_v53, 0.0  ;;  %v1466_v20 = vadd.f32 %v3959_v3, %v4974_v46  ;;  %v1953_v30 = vmul.f32 %v4981_v10, %v1818_v36 }
 0x10e   : > { %2206 = vadd.xlane.f32.xlu0 %v2205_v47  ;;  %v3866_v22 = vpop.f32.mrb[8].mxu0  ;;  %v1755_v59 = vmax.f32 %v1141_v48, 0.0  ;;  %v2025_v23 = vsel %vm2012_vm1, %v1888_v58, 0.0  ;;  %v1461_v9 = vadd.f32 %v4974_v46, %v1460_v51  ;;  %v1952_v25 = vmul.f32 %v4981_v10, %v1817_v54 }
 0x10f   : > { %v1150_v49 = vpop.f32.mrb[9].mxu0  ;;  %v1820_v11 = vmax.f32 %v1466_v20, 0.0  ;;  %v2220_v27 = vsel %vm2012_vm1, %v1953_v30, 0.0  ;;  %v1156_v29 = vadd.f32 %v3866_v22, %v4974_v46  ;;  %v1891_v50 = vmul.f32 %v4981_v10, %v1756_v8 }
 0x110   : > { %2020 = vadd.xlane.f32.xlu1 %v2019_v21  ;;  %v3962_v41 = vpop.f32.mrb[8].mxu1  ;;  %v1819_v6 = vmax.f32 %v1461_v9, 0.0  ;;  %v2217_v15 = vsel %vm2012_vm1, %v1952_v25, 0.0  ;;  %v1151_v26 = vadd.f32 %v4974_v46, %v1150_v49  ;;  %v1890_v7 = vmul.f32 %v4981_v10, %v1755_v59 }
 0x111   : > { %v1470_v4 = vpop.f32.mrb[9].mxu1  ;;  %v1758_v16 = vmax.f32 %v1156_v29, 0.0  ;;  %v2034_v34 = vsel %vm2012_vm1, %v1891_v50, 0.0  ;;  %v1476_v2 = vadd.f32 %v3962_v41, %v4974_v46  ;;  %v1955_v37 = vmul.f32 %v4981_v10, %v1820_v11 }
 0x112   : > { %2212 = vadd.xlane.f32.xlu0 %v2211_v45  ;;  %v3869_v0 = vpop.f32.mrb[10].mxu0  ;;  %v1757_v55 = vmax.f32 %v1151_v26, 0.0  ;;  %v2031_v24 = vsel %vm2012_vm1, %v1890_v7, 0.0  ;;  %v1471_v12 = vadd.f32 %v4974_v46, %v1470_v4  ;;  %v1954_v56 = vmul.f32 %v4981_v10, %v1819_v6 }
 0x113   : > { %v1160_v14 = vpop.f32.mrb[11].mxu0  ;;  %v1822_v3 = vmax.f32 %v1476_v2, 0.0  ;;  %v2226_v35 = vsel %vm2012_vm1, %v1955_v37, 0.0  ;;  %v1166_v47 = vadd.f32 %v3869_v0, %v4974_v46  ;;  %v1893_v60 = vmul.f32 %v4981_v10, %v1758_v16 }
 0x114   : > { %2215 = vadd.xlane.f32.xlu1 %v2214_v61  ;;  %v3965_v63 = vpop.f32.mrb[10].mxu1  ;;  %v1821_v1 = vmax.f32 %v1471_v12, 0.0  ;;  %v2223_v44 = vsel %vm2012_vm1, %v1954_v56, 0.0  ;;  %v1161_v38 = vadd.f32 %v4974_v46, %v1160_v14  ;;  %v1892_v32 = vmul.f32 %v4981_v10, %v1757_v55 }
 0x115   : > { %v1480_v28 = vpop.f32.mrb[11].mxu1  ;;  %v1760_v49 = vmax.f32 %v1166_v47, 0.0  ;;  %v2040_v41 = vsel %vm2012_vm1, %v1893_v60, 0.0  ;;  %v1486_v36 = vadd.f32 %v3965_v63, %v4974_v46  ;;  %v1957_v61 = vmul.f32 %v4981_v10, %v1822_v3 }
 0x116   : > { %2026 = vadd.xlane.f32.xlu0 %v2025_v23  ;;  %v5019_v33 = vpop.f32.mrb[12].mxu0  ;;  %v1759_v21 = vmax.f32 %v1161_v38, 0.0  ;;  %v2037_v22 = vsel %vm2012_vm1, %v1892_v32, 0.0  ;;  %v1481_v54 = vadd.f32 %v4974_v46, %v1480_v28  ;;  %v1956_v45 = vmul.f32 %v4981_v10, %v1821_v1 }
 0x117   : > { %v1170_v31 = vpop.f32.mrb[13].mxu0  ;;  %v1824_v14 = vmax.f32 %v1486_v36, 0.0  ;;  %v2232_v63 = vsel %vm2012_vm1, %v1957_v61, 0.0  ;;  %v1176_v8 = vadd.f32 %v5019_v33, %v4974_v46 }
 0x118   : > { %2029 = vadd.xlane.f32.xlu1 %v2028_v62  ;;  %v5024_v17 = vpop.f32.mrb[12].mxu1  ;;  %v1823_v4 = vmax.f32 %v1481_v54, 0.0  ;;  %v2229_v0 = vsel %vm2012_vm1, %v1956_v45, 0.0  ;;  %v1171_v59 = vadd.f32 %v4974_v46, %v1170_v31  ;;  %v1894_v23 = vmul.f32 %v4981_v10, %v1759_v21 }
 0x119   : > { %v1490_v5 = vpop.f32.mrb[13].mxu1  ;;  %v1895_v62 = vmul.f32 %v4981_v10, %v1760_v49  ;;  %v1762_v33 = vmax.f32 %v1176_v8, 0.0  ;;  %v1959_v29 = vmul.f32 %v4981_v10, %v1824_v14 }
 0x11a   : > { %2218 = vadd.xlane.f32.xlu0 %v2217_v15  ;;  %v5029_v19 = vpop.f32.mrb[14].mxu0  ;;  %v1761_v28 = vmax.f32 %v1171_v59, 0.0  ;;  %v2043_v6 = vsel %vm2012_vm1, %v1894_v23, 0.0  ;;  %v1491_v15 = vadd.f32 %v4974_v46, %v1490_v5  ;;  %v1958_v26 = vmul.f32 %v4981_v10, %v1823_v4 }
 0x11b   : > { %v5034_v57 = vpop.f32.mrb[15].mxu0  ;;  %v2046_v11 = vsel %vm2012_vm1, %v1895_v62, 0.0  ;;  %v2238_v2 = vsel %vm2012_vm1, %v1959_v29, 0.0  ;;  %v1186_v37 = vadd.f32 %v5029_v19, %v4974_v46  ;;  %v1897_v1 = vmul.f32 %v4981_v10, %v1762_v33 }
 0x11c   : > { %2221 = vadd.xlane.f32.xlu1 %v2220_v27  ;;  %v5036_v18 = vpop.f32.mrb[14].mxu1  ;;  %v1496_v27 = vadd.f32 %v5024_v17, %v4974_v46  ;;  %v1825_v5 = vmax.f32 %v1491_v15, 0.0  ;;  %v1181_v12 = vadd.f32 %v4974_v46, %v5034_v57  ;;  %v1896_v56 = vmul.f32 %v4981_v10, %v1761_v28 }
 0x11d   : > { %v5041_v40 = vpop.f32.mrb[15].mxu1  ;;  %v1764_v19 = vmax.f32 %v1186_v37, 0.0  ;;  %v2052_v21 = vsel %vm2012_vm1, %v1897_v1, 0.0 }
 0x11e   : > { %2032 = vadd.xlane.f32.xlu0 %v2031_v24  ;;  %v5043_v52 = vpop.f32.mrb[16].mxu0  ;;  %v2235_v24 = vsel %vm2012_vm1, %v1958_v26, 0.0  ;;  %v1826_v17 = vmax.f32 %v1496_v27, 0.0  ;;  %v1763_v57 = vmax.f32 %v1181_v12, 0.0  ;;  %v2049_v32 = vsel %vm2012_vm1, %v1896_v56, 0.0 }
 0x11f   : > { %v5048_v13 = vpop.f32.mrb[17].mxu0  ;;  %v1501_v3 = vadd.f32 %v4974_v46, %v5041_v40  ;;  %v1196_v23 = vadd.f32 %v5043_v52, %v4974_v46  ;;  %v1899_v14 = vmul.f32 %v4981_v10, %v1764_v19 }
 0x120   : > { %2035 = vadd.xlane.f32.xlu1 %v2034_v34  ;;  %v5050_v42 = vpop.f32.mrb[16].mxu1  ;;  %v1961_v54 = vmul.f32 %v4981_v10, %v1826_v17  ;;  %v1191_v36 = vadd.f32 %v4974_v46, %v5048_v13  ;;  %v1898_v61 = vmul.f32 %v4981_v10, %v1763_v57 }
 0x121   : > { %v5055_v43 = vpop.f32.mrb[17].mxu1  ;;  %v1827_v40 = vmax.f32 %v1501_v3, 0.0  ;;  %v1766_v52 = vmax.f32 %v1196_v23, 0.0  ;;  %v2058_v33 = vsel %vm2012_vm1, %v1899_v14, 0.0 }
 0x122   : > { %2224 = vadd.xlane.f32.xlu0 %v2223_v44  ;;  %v5057_v51 = vpop.f32.mrb[18].mxu0  ;;  %v2244_v59 = vsel %vm2012_vm1, %v1961_v54, 0.0  ;;  %v1765_v13 = vmax.f32 %v1191_v36, 0.0  ;;  %v2055_v62 = vsel %vm2012_vm1, %v1898_v61, 0.0 }
 0x123   : > { %v5062_v48 = vpop.f32.mrb[19].mxu0  ;;  %v1962_v28 = vmul.f32 %v4981_v10, %v1827_v40  ;;  %v1206_v1 = vadd.f32 %v5057_v51, %v4974_v46  ;;  %v1901_v57 = vmul.f32 %v4981_v10, %v1766_v52 }
 0x124   : > { %2227 = vadd.xlane.f32.xlu1 %v2226_v35  ;;  %v5064_v58 = vpop.f32.mrb[18].mxu1  ;;  %v1960_v35 = vmul.f32 %v4981_v10, %v1825_v5  ;;  %v1201_v12 = vadd.f32 %v4974_v46, %v5062_v48  ;;  %v1900_v56 = vmul.f32 %v4981_v10, %v1765_v13 }
 0x125   : > { %v5069_v39 = vpop.f32.mrb[19].mxu1  ;;  %v1768_v51 = vmax.f32 %v1206_v1, 0.0  ;;  %v2064_v40 = vsel %vm2012_vm1, %v1901_v57, 0.0 }
 0x126   : > { %2038 = vadd.xlane.f32.xlu0 %v2037_v22  ;;  %v5071_v53 = vpop.f32.mrb[20].mxu0  ;;  %v1506_v22 = vadd.f32 %v5036_v18, %v4974_v46  ;;  %v1767_v48 = vmax.f32 %v1201_v12, 0.0  ;;  %v1521_v19 = vadd.f32 %v4974_v46, %v5069_v39 }
 0x127   : > { %v5076_v9 = vpop.f32.mrb[21].mxu0  ;;  %v1903_v52 = vmul.f32 %v4981_v10, %v1768_v51 }
 0x128   : > { %2041 = vadd.xlane.f32.xlu1 %v2040_v41  ;;  %v5078_v25 = vpop.f32.mrb[20].mxu1  ;;  %v2241_v41 = vsel %vm2012_vm1, %v1960_v35, 0.0  ;;  %v1828_v18 = vmax.f32 %v1506_v22, 0.0  ;;  %v2061_v35 = vsel %vm2012_vm1, %v1900_v56, 0.0  ;;  %v1831_v39 = vmax.f32 %v1521_v19, 0.0 }
 0x129   : > { %v5084_v20 = vpop.f32.mrb[21].mxu1  ;;  %v1211_v23 = vadd.f32 %v4974_v46, %v5076_v9  ;;  %v1902_v14 = vmul.f32 %v4981_v10, %v1767_v48 }
 0x12a   : > { %2230 = vadd.xlane.f32.xlu0 %v2229_v0  ;;  %v5086_v30 = vpop.f32.mrb[22].mxu0  ;;  %v1963_v27 = vmul.f32 %v4981_v10, %v1828_v18 }
 0x12b   : > { %v5091_v7 = vpop.f32.mrb[23].mxu0  ;;  %v1769_v9 = vmax.f32 %v1211_v23, 0.0 }
 0x12c   : > { %2233 = vadd.xlane.f32.xlu1 %v2232_v63  ;;  %v5093_v31 = vpop.f32.mrb[22].mxu1  ;;  %v2250_v37 = vsel %vm2012_vm1, %v1963_v27, 0.0  ;;  %v2067_v27 = vsel %vm2012_vm1, %v1902_v14, 0.0  ;;  %v1221_v19 = vadd.f32 %v4974_v46, %v5091_v7 }
 0x12d   : > { %v5099_v50 = vpop.f32.mrb[23].mxu1 }
 0x12e   : > { %2044 = vadd.xlane.f32.xlu0 %v2043_v6  ;;  %v5101_v55 = vpop.f32.mrb[24].mxu0  ;;  %v1511_v6 = vadd.f32 %v4974_v46, %v5055_v43  ;;  %v2247_v43 = vsel %vm2012_vm1, %v1962_v28, 0.0  ;;  %v1771_v7 = vmax.f32 %v1221_v19, 0.0 }
 0x12f   : > { %v5107_v16 = vpop.f32.mrb[25].mxu0 }
 0x130   : > { %2047 = vadd.xlane.f32.xlu1 %v2046_v11  ;;  %v5109_v34 = vpop.f32.mrb[24].mxu1  ;;  %v1516_v11 = vadd.f32 %v5050_v42, %v4974_v46 }
 0x131   : > { %v5115_v44 = vpop.f32.mrb[25].mxu1 }
 0x132   : > { %2236 = vadd.xlane.f32.xlu0 %v2235_v24  ;;  %v5117_v38 = vpop.f32.mrb[26].mxu0  ;;  %v1829_v24 = vmax.f32 %v1511_v6, 0.0  ;;  %v1830_v42 = vmax.f32 %v1516_v11, 0.0  ;;  %v1216_v6 = vadd.f32 %v5071_v53, %v4974_v46 }
 0x133   : > { %v5123_v47 = vpop.f32.mrb[27].mxu0 }
 0x134   : > { %2239 = vadd.xlane.f32.xlu1 %v2238_v2  ;;  %v5125_v60 = vpop.f32.mrb[26].mxu1  ;;  %v1965_v36 = vmul.f32 %v4981_v10, %v1830_v42  ;;  %v1770_v53 = vmax.f32 %v1216_v6, 0.0  ;;  %v2070_v42 = vsel %vm2012_vm1, %v1903_v52, 0.0 }
 0x135   : > { %v5131_v45 = vpop.f32.mrb[27].mxu1 }
 0x136   : > { %2050 = vadd.xlane.f32.xlu0 %v2049_v32  ;;  %v5133_v49 = vpop.f32.mrb[28].mxu0  ;;  %v2256_v28 = vsel %vm2012_vm1, %v1965_v36, 0.0  ;;  %v1226_v36 = vadd.f32 %v5086_v30, %v4974_v46 }
 0x137   : > { %v5139_v4 = vpop.f32.mrb[29].mxu0 }
 0x138   : > { %2053 = vadd.xlane.f32.xlu1 %v2052_v21  ;;  %v5141_v0 = vpop.f32.mrb[28].mxu1  ;;  %v1964_v21 = vmul.f32 %v4981_v10, %v1829_v24  ;;  %v1966_v24 = vmul.f32 %v4981_v10, %v1831_v39  ;;  %v1905_v39 = vmul.f32 %v4981_v10, %v1770_v53  ;;  %v1772_v30 = vmax.f32 %v1226_v36, 0.0 }
 0x139   : > { %v5147_v63 = vpop.f32.mrb[29].mxu1 }
 0x13a   : > { %2242 = vadd.xlane.f32.xlu0 %v2241_v41  ;;  %v5149_v8 = vpop.f32.mrb[30].mxu0  ;;  %v1526_v41 = vadd.f32 %v5064_v58, %v4974_v46 }
 0x13b   : > { %v5155_v15 = vpop.f32.mrb[31].mxu0 }
 0x13c   : > { %2245 = vadd.xlane.f32.xlu1 %v2244_v59  ;;  %v5157_v26 = vpop.f32.mrb[30].mxu1  ;;  %v2253_v59 = vsel %vm2012_vm1, %v1964_v21, 0.0  ;;  %v1832_v58 = vmax.f32 %v1526_v41, 0.0  ;;  %v1904_v21 = vmul.f32 %v4981_v10, %v1769_v9  ;;  %v2076_v9 = vsel %vm2012_vm1, %v1905_v39, 0.0 }
 0x13d   : > { %v5163_v29 = vpop.f32.mrb[31].mxu1 }
 0x13e   : > { %2056 = vadd.xlane.f32.xlu0 %v2055_v62  ;;  %v5165_v5 = vpop.f32.mrb[32].mxu0  ;;  %v1967_v1 = vmul.f32 %v4981_v10, %v1832_v58  ;;  %v2073_v14 = vsel %vm2012_vm1, %v1904_v21, 0.0  ;;  %v1541_v58 = vadd.f32 %v4974_v46, %v5099_v50  ;;  %v1236_v21 = vadd.f32 %v5101_v55, %v4974_v46 }
 0x13f   : > { %v5171_v17 = vpop.f32.mrb[33].mxu0 }
 0x140   : > { %2059 = vadd.xlane.f32.xlu1 %v2058_v33  ;;  %v5173_v2 = vpop.f32.mrb[32].mxu1  ;;  %v2262_v41 = vsel %vm2012_vm1, %v1967_v1, 0.0  ;;  %v1835_v50 = vmax.f32 %v1541_v58, 0.0  ;;  %v1906_v1 = vmul.f32 %v4981_v10, %v1771_v7  ;;  %v1551_v7 = vadd.f32 %v4974_v46, %v5115_v44 }
 0x141   : > { %v5179_v32 = vpop.f32.mrb[33].mxu1  ;;  %v1774_v55 = vmax.f32 %v1236_v21, 0.0 }
 0x142   : > { %2248 = vadd.xlane.f32.xlu0 %v2247_v43  ;;  %v5181_v3 = vpop.f32.mrb[34].mxu0  ;;  %v1531_v43 = vadd.f32 %v4974_v46, %v5084_v20  ;;  %v2079_v39 = vsel %vm2012_vm1, %v1906_v1, 0.0  ;;  %v1837_v44 = vmax.f32 %v1551_v7, 0.0 }
 0x143   : > { %v5187_v22 = vpop.f32.mrb[35].mxu0 }
 0x144   : > { %2251 = vadd.xlane.f32.xlu1 %v2250_v37  ;;  %v5189_v54 = vpop.f32.mrb[34].mxu1  ;;  %v1536_v37 = vadd.f32 %v5078_v25, %v4974_v46  ;;  %v1833_v20 = vmax.f32 %v1531_v43, 0.0 }
 0x145   : > { %v5195_v61 = vpop.f32.mrb[35].mxu1 }
 0x146   : > { %2062 = vadd.xlane.f32.xlu0 %v2061_v35  ;;  %v5197_v18 = vpop.f32.mrb[36].mxu0  ;;  %v2259_v35 = vsel %vm2012_vm1, %v1966_v24, 0.0  ;;  %v1834_v25 = vmax.f32 %v1536_v37, 0.0  ;;  %v1231_v37 = vadd.f32 %v4974_v46, %v5107_v16 }
 0x147   : > { %v5203_v13 = vpop.f32.mrb[37].mxu0 }
 0x148   : > { %2065 = vadd.xlane.f32.xlu1 %v2064_v40  ;;  %v5205_v62 = vpop.f32.mrb[36].mxu1  ;;  %v1969_v43 = vmul.f32 %v4981_v10, %v1834_v25  ;;  %v1907_v25 = vmul.f32 %v4981_v10, %v1772_v30  ;;  %v1773_v16 = vmax.f32 %v1231_v37, 0.0  ;;  %v1241_v37 = vadd.f32 %v4974_v46, %v5123_v47 }
 0x149   : > { %v5211_v33 = vpop.f32.mrb[37].mxu1 }
 0x14a   : > { %2254 = vadd.xlane.f32.xlu0 %v2253_v59  ;;  %v5213_v11 = vpop.f32.mrb[38].mxu0  ;;  %v2268_v19 = vsel %vm2012_vm1, %v1969_v43, 0.0  ;;  %v2082_v30 = vsel %vm2012_vm1, %v1907_v25, 0.0  ;;  %v1908_v1 = vmul.f32 %v4981_v10, %v1773_v16  ;;  %v1246_v25 = vadd.f32 %v5117_v38, %v4974_v46 }
 0x14b   : > { %v5219_v12 = vpop.f32.mrb[39].mxu0  ;;  %v1775_v47 = vmax.f32 %v1241_v37, 0.0 }
 0x14c   : > { %2257 = vadd.xlane.f32.xlu1 %v2256_v28  ;;  %v5221_v56 = vpop.f32.mrb[38].mxu1  ;;  %v1968_v28 = vmul.f32 %v4981_v10, %v1833_v20  ;;  %v2085_v16 = vsel %vm2012_vm1, %v1908_v1, 0.0  ;;  %v1776_v38 = vmax.f32 %v1246_v25, 0.0 }
 0x14d   : > { %v5227_v57 = vpop.f32.mrb[39].mxu1  ;;  %v1910_v25 = vmul.f32 %v4981_v10, %v1775_v47 }
 0x14e   : > { %2068 = vadd.xlane.f32.xlu0 %v2067_v27  ;;  %v5229_v48 = vpop.f32.mrb[40].mxu0  ;;  %v1546_v27 = vadd.f32 %v5093_v31, %v4974_v46 }
 0x14f   : > { %v5235_v51 = vpop.f32.mrb[41].mxu0  ;;  %v2091_v47 = vsel %vm2012_vm1, %v1910_v25, 0.0 }
 0x150   : > { %2071 = vadd.xlane.f32.xlu1 %v2070_v42  ;;  %v5237_v40 = vpop.f32.mrb[40].mxu1  ;;  %v2265_v42 = vsel %vm2012_vm1, %v1968_v28, 0.0  ;;  %v1836_v31 = vmax.f32 %v1546_v27, 0.0 }
 0x151   : > { %v5243_v59 = vpop.f32.mrb[41].mxu1 }
 0x152   : > { %2260 = vadd.xlane.f32.xlu0 %v2259_v35  ;;  %v5245_v23 = vpop.f32.mrb[42].mxu0  ;;  %v1971_v27 = vmul.f32 %v4981_v10, %v1836_v31 }
 0x153   : > { %v5251_v6 = vpop.f32.mrb[43].mxu0 }
 0x154   : > { %2263 = vadd.xlane.f32.xlu1 %v2262_v41  ;;  %v5253_v52 = vpop.f32.mrb[42].mxu1  ;;  %v2274_v31 = vsel %vm2012_vm1, %v1971_v27, 0.0 }
 0x155   : > { %v5259_v24 = vpop.f32.mrb[43].mxu1 }
 0x156   : > { %2074 = vadd.xlane.f32.xlu0 %v2073_v14  ;;  %v5261_v53 = vpop.f32.mrb[44].mxu0  ;;  %v1970_v14 = vmul.f32 %v4981_v10, %v1835_v50 }
 0x157   : > { %v5267_v20 = vpop.f32.mrb[45].mxu0 }
 0x158   : > { %2077 = vadd.xlane.f32.xlu1 %v2076_v9  ;;  %v5269_v35 = vpop.f32.mrb[44].mxu1  ;;  %v1556_v9 = vadd.f32 %v5109_v34, %v4974_v46  ;;  %v2271_v50 = vsel %vm2012_vm1, %v1970_v14, 0.0 }
 0x159   : > { %v5275_v41 = vpop.f32.mrb[45].mxu1 }
 0x15a   : > { %2266 = vadd.xlane.f32.xlu0 %v2265_v42  ;;  %v5277_v36 = vpop.f32.mrb[46].mxu0  ;;  %v1838_v34 = vmax.f32 %v1556_v9, 0.0  ;;  %v1972_v9 = vmul.f32 %v4981_v10, %v1837_v44 }
 0x15b   : > { %v5283_v58 = vpop.f32.mrb[47].mxu0 }
 0x15c   : > { %2269 = vadd.xlane.f32.xlu1 %v2268_v19  ;;  %v5285_v28 = vpop.f32.mrb[46].mxu1  ;;  %v1973_v37 = vmul.f32 %v4981_v10, %v1838_v34  ;;  %v2277_v44 = vsel %vm2012_vm1, %v1972_v9, 0.0 }
 0x15d   : > { %v5291_v43 = vpop.f32.mrb[47].mxu1 }
 0x15e   : > { %2080 = vadd.xlane.f32.xlu0 %v2079_v39  ;;  %v5293_v42 = vpop.f32.mrb[48].mxu0  ;;  %v1909_v39 = vmul.f32 %v4981_v10, %v1774_v55  ;;  %v2280_v34 = vsel %vm2012_vm1, %v1973_v37, 0.0 }
 0x15f   : > { %v5299_v19 = vpop.f32.mrb[49].mxu0 }
 0x160   : > { %2083 = vadd.xlane.f32.xlu1 %v2082_v30  ;;  %v5301_v21 = vpop.f32.mrb[48].mxu1  ;;  %v1561_v30 = vadd.f32 %v4974_v46, %v5131_v45  ;;  %v2088_v55 = vsel %vm2012_vm1, %v1909_v39, 0.0 }
 0x161   : > { %6310 = vst [vmem:[#allocation7_spill] sm:$0xff] %v5301_v21  ;;  %v5307_v7 = vpop.f32.mrb[49].mxu1 }
 0x162   : > { %2272 = vadd.xlane.f32.xlu0 %v2271_v50  ;;  %v5309_v14 = vpop.f32.mrb[50].mxu0  ;;  %v1566_v50 = vadd.f32 %v5125_v60, %v4974_v46  ;;  %v1839_v45 = vmax.f32 %v1561_v30, 0.0  ;;  %v1911_v30 = vmul.f32 %v4981_v10, %v1776_v38 }
 0x163   : > { %6311 = vst [vmem:[#allocation8_spill] sm:$0xff] %v5309_v14  ;;  %v5315_v21 = vpop.f32.mrb[51].mxu0 }
 0x164   : > { %2275 = vadd.xlane.f32.xlu1 %v2274_v31  ;;  %v5317_v27 = vpop.f32.mrb[50].mxu1  ;;  %v1251_v31 = vadd.f32 %v4974_v46, %v5139_v4  ;;  %v1840_v60 = vmax.f32 %v1566_v50, 0.0  ;;  %v1974_v50 = vmul.f32 %v4981_v10, %v1839_v45  ;;  %v2094_v38 = vsel %vm2012_vm1, %v1911_v30, 0.0 }
 0x165   : > { %6312 = vst [vmem:[#allocation9_spill] sm:$0xff] %v5317_v27  ;;  %v5323_v14 = vpop.f32.mrb[51].mxu1 }
 0x166   : > { %2086 = vadd.xlane.f32.xlu0 %v2085_v16  ;;  %v5325_v1 = vpop.f32.mrb[52].mxu0  ;;  %v1256_v16 = vadd.f32 %v5133_v49, %v4974_v46  ;;  %v1777_v4 = vmax.f32 %v1251_v31, 0.0  ;;  %v1975_v31 = vmul.f32 %v4981_v10, %v1840_v60  ;;  %v2283_v45 = vsel %vm2012_vm1, %v1974_v50, 0.0 }
 0x167   : > { %6313 = vst [vmem:[#allocation10_spill] sm:$0xff] %v5325_v1  ;;  %v5331_v27 = vpop.f32.mrb[53].mxu0 }
 0x168   : > { %2089 = vadd.xlane.f32.xlu1 %v2088_v55  ;;  %v5333_v39 = vpop.f32.mrb[52].mxu1  ;;  %v1261_v55 = vadd.f32 %v4974_v46, %v5155_v15  ;;  %v1778_v49 = vmax.f32 %v1256_v16, 0.0  ;;  %v1912_v16 = vmul.f32 %v4981_v10, %v1777_v4  ;;  %v2286_v60 = vsel %vm2012_vm1, %v1975_v31, 0.0 }
 0x169   : > { %6314 = vst [vmem:[#allocation11_spill] sm:$0xff] %v5333_v39  ;;  %v5339_v1 = vpop.f32.mrb[53].mxu1  ;;  %v1266_v31 = vadd.f32 %v5149_v8, %v4974_v46 }
 0x16a   : > { %6315 = vst [vmem:[#allocation12_spill] sm:$0xff] %v5339_v1  ;;  %2278 = vadd.xlane.f32.xlu0 %v2277_v44  ;;  %v5341_v9 = vpop.f32.mrb[54].mxu0  ;;  %v1576_v44 = vadd.f32 %v5141_v0, %v4974_v46  ;;  %v1779_v15 = vmax.f32 %v1261_v55, 0.0  ;;  %v1571_v55 = vadd.f32 %v4974_v46, %v5147_v63  ;;  %v2097_v4 = vsel %vm2012_vm1, %v1912_v16, 0.0 }
 0x16b   : > { %6316 = vst [vmem:[#allocation13_spill] sm:$0xff] %v5341_v9  ;;  %v5347_v39 = vpop.f32.mrb[55].mxu0 }
 0x16c   : > { %2281 = vadd.xlane.f32.xlu1 %v2280_v34  ;;  %v5349_v37 = vpop.f32.mrb[54].mxu1  ;;  %v1586_v34 = vadd.f32 %v5157_v26, %v4974_v46  ;;  %v1842_v0 = vmax.f32 %v1576_v44, 0.0  ;;  %v1914_v44 = vmul.f32 %v4981_v10, %v1779_v15  ;;  %v1841_v16 = vmax.f32 %v1571_v55, 0.0 }
 0x16d   : > { %6317 = vst [vmem:[#allocation14_spill] sm:$0xff] %v5349_v37  ;;  %v5355_v9 = vpop.f32.mrb[55].mxu1  ;;  %v1581_v55 = vadd.f32 %v4974_v46, %v5163_v29  ;;  %v1276_v29 = vadd.f32 %v5165_v5, %v4974_v46  ;;  %v1606_v5 = vadd.f32 %v5189_v54, %v4974_v46 }
 0x16e   : > { %6318 = vst [vmem:[#allocation15_spill] sm:$0xff] %v5355_v9  ;;  %2092 = vadd.xlane.f32.xlu0 %v2091_v47  ;;  %v5357_v25 = vpop.f32.mrb[56].mxu0  ;;  %v1913_v47 = vmul.f32 %v4981_v10, %v1778_v49  ;;  %v1844_v26 = vmax.f32 %v1586_v34, 0.0  ;;  %v2103_v15 = vsel %vm2012_vm1, %v1914_v44, 0.0 }
 0x16f   : > { %6319 = vst [vmem:[#allocation16_spill] sm:$0xff] %v5357_v25  ;;  %v5363_v37 = vpop.f32.mrb[57].mxu0  ;;  %v1848_v54 = vmax.f32 %v1606_v5, 0.0 }
 0x170   : > { %2095 = vadd.xlane.f32.xlu1 %v2094_v38  ;;  %v5365_v30 = vpop.f32.mrb[56].mxu1  ;;  %v1271_v38 = vadd.f32 %v4974_v46, %v5171_v17  ;;  %v2100_v63 = vsel %vm2012_vm1, %v1913_v47, 0.0  ;;  %v1979_v25 = vmul.f32 %v4981_v10, %v1844_v26 }
 0x171   : > { %6320 = vst [vmem:[#allocation17_spill] sm:$0xff] %v5365_v30  ;;  %v5369_v9 = vpop.f32.mrb[57].mxu1  ;;  %v1983_v5 = vmul.f32 %v4981_v10, %v1848_v54 }
 0x172   : > { %2284 = vadd.xlane.f32.xlu0 %v2283_v45  ;;  %v5373_v50 = vpop.f32.mrb[58].mxu0  ;;  %v1977_v45 = vmul.f32 %v4981_v10, %v1842_v0  ;;  %v1781_v17 = vmax.f32 %v1271_v38, 0.0  ;;  %v1780_v0 = vmax.f32 %v1266_v31, 0.0  ;;  %v1976_v38 = vmul.f32 %v4981_v10, %v1841_v16 }
 0x173   : > { %6321 = vst [vmem:[#allocation18_spill] sm:$0xff] %v5373_v50  ;;  %v5379_v30 = vpop.f32.mrb[59].mxu0  ;;  %v2298_v26 = vsel %vm2012_vm1, %v1979_v25, 0.0 }
 0x174   : > { %2287 = vadd.xlane.f32.xlu1 %v2286_v60  ;;  %v5381_v49 = vpop.f32.mrb[58].mxu1  ;;  %v1596_v60 = vadd.f32 %v5173_v2, %v4974_v46  ;;  %v2292_v47 = vsel %vm2012_vm1, %v1977_v45, 0.0  ;;  %v1916_v31 = vmul.f32 %v4981_v10, %v1781_v17  ;;  %v1915_v16 = vmul.f32 %v4981_v10, %v1780_v0 }
 0x175   : > { %v5387_v34 = vpop.f32.mrb[59].mxu1  ;;  %v1286_v0 = vadd.f32 %v5181_v3, %v4974_v46 }
 0x176   : > { %6322 = vst [vmem:[#allocation19_spill] sm:$0xff] %v5387_v34  ;;  %2098 = vadd.xlane.f32.xlu0 %v2097_v4  ;;  %v5389_v50 = vpop.f32.mrb[60].mxu0  ;;  %v1846_v2 = vmax.f32 %v1596_v60, 0.0  ;;  %v1591_v60 = vadd.f32 %v4974_v46, %v5179_v32  ;;  %v2106_v32 = vsel %vm2012_vm1, %v1915_v16, 0.0 }
 0x177   : > { %6323 = vst [vmem:[#allocation20_spill] sm:$0xff] %v5389_v50  ;;  %v5395_v1 = vpop.f32.mrb[61].mxu0  ;;  %v1784_v3 = vmax.f32 %v1286_v0, 0.0 }
 0x178   : > { %2101 = vadd.xlane.f32.xlu1 %v2100_v63  ;;  %v5397_v8 = vpop.f32.mrb[60].mxu1  ;;  %v1281_v63 = vadd.f32 %v4974_v46, %v5187_v22  ;;  %v2289_v22 = vsel %vm2012_vm1, %v1976_v38, 0.0  ;;  %v1291_v38 = vadd.f32 %v4974_v46, %v5203_v13  ;;  %v1296_v13 = vadd.f32 %v5197_v18, %v4974_v46 }
 0x179   : > { %v5402_v4 = vpop.f32.mrb[61].mxu1  ;;  %v1616_v18 = vadd.f32 %v5205_v62, %v4974_v46  ;;  %v1611_v62 = vadd.f32 %v4974_v46, %v5211_v33  ;;  %v5481_v33 = vadd.f32 %v4974_v46, %v5227_v57  ;;  %v5497_v57 = vld [vmem:[%s6285_s3] ss:$0 sm:$0xff] }
 0x17a   : > { %6324 = vst [vmem:[#allocation21_spill] sm:$0xff] %v5402_v4  ;;  %2104 = vadd.xlane.f32.xlu0 %v2103_v15  ;;  %v5405_v44 = vpop.f32.mrb[62].mxu0  ;;  %v1843_v15 = vmax.f32 %v1581_v55, 0.0  ;;  %v1783_v17 = vmax.f32 %v1281_v63, 0.0  ;;  %v1845_v55 = vmax.f32 %v1591_v60, 0.0  ;;  %v1601_v63 = vadd.f32 %v4974_v46, %v5195_v61 }
 0x17b   : > { %6325 = vst [vmem:[#allocation22_spill] sm:$0xff] %v5405_v44  ;;  %v5411_v50 = vpop.f32.mrb[63].mxu0  ;;  %v2109_v44 = vsel %vm2012_vm1, %v1916_v31, 0.0  ;;  %v1301_v61 = vadd.f32 %v4974_v46, %v5219_v12  ;;  %v1785_v60 = vmax.f32 %v1291_v38, 0.0  ;;  %v1786_v12 = vmax.f32 %v1296_v13, 0.0 }
 0x17c   : > { %2293 = vadd.xlane.f32.xlu1 %v2292_v47  ;;  %v5415_v45 = vpop.f32.mrb[62].mxu1  ;;  %v1981_v47 = vmul.f32 %v4981_v10, %v1846_v2  ;;  %v1918_v31 = vmul.f32 %v4981_v10, %v1783_v17  ;;  %v1311_v38 = vadd.f32 %v4974_v46, %v5235_v51  ;;  %v5474_v51 = vadd.f32 %v5221_v56, %v4974_v46 }
 0x17d   : > { %6326 = vst [vmem:[#allocation23_spill] sm:$0xff] %v5415_v45  ;;  %v5420_v25 = vpop.f32.mrb[63].mxu1  ;;  %v1782_v45 = vmax.f32 %v1276_v29, 0.0  ;;  %v6327_v29 = vlaneseq  ;;  %v1920_v54 = vmul.f32 %v4981_v10, %v1785_v60  ;;  %v1321_v60 = vadd.f32 %v4974_v46, %v5251_v6 }
 0x17e   : > { %2299 = vadd.xlane.f32.xlu0 %v2298_v26  ;;  %v1978_v26 = vmul.f32 %v4981_v10, %v1843_v15  ;;  %v2304_v2 = vsel %vm2012_vm1, %v1981_v47, 0.0  ;;  %v1980_v15 = vmul.f32 %v4981_v10, %v1845_v55  ;;  %v2115_v17 = vsel %vm2012_vm1, %v1918_v31, 0.0 }
 0x17f   : > { %v1917_v16 = vmul.f32 %v4981_v10, %v1782_v45  ;;  %v1847_v47 = vmax.f32 %v1601_v63, 0.0  ;;  %v5459_v63 = vadd.f32 %v5213_v11, %v4974_v46  ;;  %v1789_v56 = vmax.f32 %v1311_v38, 0.0 }
 0x180   : > { %2290 = vadd.xlane.f32.xlu1 %v2289_v22  ;;  %v5438_v22 = vand.u32 127, %v6327_v29  ;;  %v2301_v55 = vsel %vm2012_vm1, %v1980_v15, 0.0  ;;  %v2310_v29 = vsel %vm2012_vm1, %v1983_v5, 0.0  ;;  %v5487_v15 = vadd.f32 %v5229_v48, %v4974_v46 }
 0x181   : > { %v2112_v45 = vsel %vm2012_vm1, %v1917_v16, 0.0  ;;  %v1982_v11 = vmul.f32 %v4981_v10, %v1847_v47  ;;  %v2121_v47 = vsel %vm2012_vm1, %v1920_v54, 0.0  ;;  %v5501_v48 = vadd.f32 %v5497_v57, %v5237_v40 }
 0x182   : > { %2110 = vadd.xlane.f32.xlu0 %v2109_v44  ;;  %v2295_v44 = vsel %vm2012_vm1, %v1978_v26, 0.0  ;;  %v2797_v0 = vadd.s32 4294967288, %v5438_v22  ;;  %v1787_v26 = vmax.f32 %v1301_v61, 0.0  ;;  %v2811_v13 = vadd.s32 4294967272, %v5438_v22  ;;  %v5483_v61 = vpop.permute.xlu0 %2404 }
 0x183   : > { %v2307_v46 = vsel %vm2012_vm1, %v1982_v11, 0.0  ;;  %v1921_v6 = vmul.f32 %v4981_v10, %v1786_v12  ;;  %v5517_v40 = vadd.f32 %v5497_v57, %v5243_v59  ;;  %v5524_v12 = vld [vmem:[%s6286_s4] ss:$0 sm:$0xff]  ;;  %v1331_v59 = vadd.f32 %v5497_v57, %v5267_v20 }
 0x184   : > { %2107 = vadd.xlane.f32.xlu1 %v2106_v32  ;;  %v1919_v32 = vmul.f32 %v4981_v10, %v1784_v3 }
 0x186   : > { %2305 = vadd.xlane.f32.xlu0 %v2304_v2  ;;  %v6328_v2 = vld [vmem:[#allocation6_spill] sm:$0xff]  ;;  %v2118_v16 = vsel %vm2012_vm1, %v1919_v32, 0.0  ;;  %v2804_v32 = vadd.s32 4294967280, %v5438_v22 }
 0x187   : > { %v5464_v31 = vsub.s32 %v5438_v22, %v6328_v2  ;;  %v5470_v3 = vsub.s32 %v2797_v0, %v6328_v2  ;;  %v1849_v0 = vmax.f32 %v1611_v62, 0.0  ;;  %v1791_v62 = vmax.f32 %v1321_v60, 0.0 }
 0x188   : > { %2296 = vadd.xlane.f32.xlu1 %v2295_v44  ;;  %v1850_v44 = vmax.f32 %v1616_v18, 0.0  ;;  %v5509_v18 = vadd.f32 %v5497_v57, %v5245_v23  ;;  %v1924_v23 = vmul.f32 %v5524_v12, %v1789_v56  ;;  %v5535_v60 = vadd.f32 %v5497_v57, %v5253_v52 }
 0x189   : > { %v5539_v56 = vsub.s32 %v2804_v32, %v6328_v2  ;;  %v1926_v32 = vmul.f32 %v5524_v12, %v1791_v62  ;;  %v1984_v38 = vmul.f32 %v5524_v12, %v1849_v0 }
 0x18a   : > { %2116 = vadd.xlane.f32.xlu0 %v2115_v17  ;;  %v1922_v17 = vmul.f32 %v4981_v10, %v1787_v26  ;;  %v5512_v26 = vsub.s32 %v2811_v13, %v6328_v2  ;;  %v1985_v11 = vmul.f32 %v5524_v12, %v1850_v44  ;;  %v2133_v54 = vsel %vm2012_vm1, %v1924_v23, 0.0 }
 0x18b   : > { %v2825_v44 = vadd.s32 4294967256, %v5438_v22  ;;  %v1346_v23 = vadd.f32 %v5497_v57, %v5277_v36  ;;  %v1341_v36 = vadd.f32 %v5497_v57, %v5283_v58  ;;  %v6329_v58 = vmax.f32 %v5459_v63, 0.0 }
 0x18c   : > { %2113 = vadd.xlane.f32.xlu1 %v2112_v45  ;;  %v2127_v10 = vsel %vm2012_vm1, %v1922_v17, 0.0  ;;  %v2124_v17 = vsel %vm2012_vm1, %v1921_v6, 0.0  ;;  %v1656_v6 = vadd.f32 %v5497_v57, %v5269_v35  ;;  %v2316_v20 = vsel %vm2012_vm1, %v1985_v11, 0.0 }
 0x18d   : > { %v1651_v35 = vadd.f32 %v5497_v57, %v5275_v41  ;;  %v2832_v63 = vadd.s32 4294967248, %v5438_v22 }
 0x18e   : > { %2311 = vadd.xlane.f32.xlu0 %v2310_v29  ;;  %v5547_v29 = vadd.f32 %v5497_v57, %v5259_v24  ;;  %v1858_v11 = vmax.f32 %v1656_v6, 0.0  ;;  %v2139_v24 = vsel %vm2012_vm1, %v1926_v32, 0.0  ;;  %v1796_v6 = vmax.f32 %v1346_v23, 0.0 }
 0x18f   : > { %v1857_v32 = vmax.f32 %v1651_v35, 0.0  ;;  %v5588_v23 = vadd.f32 %v5497_v57, %v5285_v28  ;;  %v5601_v28 = vadd.f32 %v5497_v57, %v5291_v43  ;;  %v1671_v43 = vadd.f32 %v5497_v57, %v5307_v7 }
 0x190   : > { %2302 = vadd.xlane.f32.xlu1 %v2301_v55  ;;  %v1336_v55 = vadd.f32 %v5497_v57, %v5261_v53  ;;  %v2818_v53 = vadd.s32 4294967264, %v5438_v22  ;;  %v1993_v34 = vmul.f32 %v5524_v12, %v1858_v11  ;;  %v1351_v11 = vadd.f32 %v5497_v57, %v5299_v19 }
 0x192   : > { %2122 = vadd.xlane.f32.xlu0 %v2121_v47  ;;  %v5560_v5 = vsub.s32 %v2818_v53, %v6328_v2  ;;  %v2313_v53 = vsel %vm2012_vm1, %v1984_v38, 0.0  ;;  %v1923_v38 = vmul.f32 %v5524_v12, %v6329_v58  ;;  %v2340_v19 = vsel %vm2012_vm1, %v1993_v34, 0.0 }
 0x193   : > { %v2018_v13 = vpop.xlane.xlu0 %2017  ;;  %v5619_v34 = vsub.s32 %v2832_v63, %v6328_v2 }
 0x194   : > { %v2408_v47 = vadd.f32 %v5483_v61, %v2018_v13  ;;  %2119 = vadd.xlane.f32.xlu1 %v2118_v16  ;;  %v1794_v16 = vmax.f32 %v1336_v55, 0.0  ;;  %v1793_v13 = vmax.f32 %v1331_v59, 0.0 }
 0x195   : > { %v2210_v52 = vpop.xlane.xlu1 %2209 }
 0x196   : > { %2128 = vadd.xlane.f32.xlu0 %v2127_v10  ;;  %v2536_v0 = vmul.f32 %v2408_v47, %v2408_v47  ;;  %v2472_v62 = vadd.f32 %v5483_v61, %v2210_v52  ;;  %v5572_v41 = vmul.f32 %v5524_v12, %v1794_v16 }
 0x197   : > { %v2015_v45 = vpop.xlane.xlu0 %2014 }
 0x198   : > { %v2407_v10 = vadd.f32 %v5483_v61, %v2015_v45  ;;  %2308 = vadd.xlane.f32.xlu1 %v2307_v46  ;;  %v1928_v45 = vmul.f32 %v5524_v12, %v1793_v13  ;;  %v5576_v46 = vsub.s32 %v2825_v44, %v6328_v2  ;;  %v2600_v16 = vmul.f32 %v2472_v62, %v2472_v62 }
 0x199   : > { %v2024_v59 = vpop.xlane.xlu1 %2023  ;;  %v1795_v44 = vmax.f32 %v1341_v36, 0.0  ;;  %v5597_v36 = vmul.f32 %v5524_v12, %v1857_v32 }
 0x19a   : > { %v2535_v4 = vmul.f32 %v2407_v10, %v2407_v10  ;;  %2134 = vadd.xlane.f32.xlu0 %v2133_v54  ;;  %v2410_v47 = vadd.f32 %v5483_v61, %v2024_v59  ;;  %v2801_v10 = vrot.slane %v2536_v0, %v5470_v3 }
 0x19b   : > { %v2207_v52 = vpop.xlane.xlu0 %2206  ;;  %v1930_v32 = vmul.f32 %v5524_v12, %v1795_v44 }
 0x19c   : > { %v2796_v54 = vrot.slane %v2535_v4, %v5464_v31  ;;  %v2471_v55 = vadd.f32 %v5483_v61, %v2207_v52  ;;  %2125 = vadd.xlane.f32.xlu1 %v2124_v17  ;;  %v2145_v4 = vsel %vm2012_vm1, %v1928_v45, 0.0  ;;  %v2538_v62 = vmul.f32 %v2410_v47, %v2410_v47 }
 0x19d   : > { %v2021_v13 = vpop.xlane.xlu1 %2020  ;;  %v5607_v47 = vmul.f32 %v5524_v12, %v1796_v6 }
 0x19e   : > { %v2803_v35 = vsel %vm2802_vm2, %v2801_v10, %v2796_v54  ;;  %v2599_v59 = vmul.f32 %v2471_v55, %v2471_v55  ;;  %v2409_v0 = vadd.f32 %v5483_v61, %v2021_v13  ;;  %2140 = vadd.xlane.f32.xlu0 %v2139_v24  ;;  %v3146_v55 = vrot.slane %v2600_v16, %v5470_v3 }
 0x19f   : > { %v2213_v17 = vpop.xlane.xlu0 %2212 }
 0x1a0   : > { %v3142_v52 = vrot.slane %v2599_v59, %v5464_v31  ;;  %v2537_v24 = vmul.f32 %v2409_v0, %v2409_v0  ;;  %v2473_v45 = vadd.f32 %v5483_v61, %v2213_v17  ;;  %2317 = vadd.xlane.f32.xlu1 %v2316_v20  ;;  %v2815_v20 = vrot.slane %v2538_v62, %v5512_v26 }
 0x1a1   : > { %v2216_v58 = vpop.xlane.xlu1 %2215  ;;  %v1797_v59 = vmax.f32 %v1351_v11, 0.0  ;;  %v2130_v0 = vsel %vm2012_vm1, %v1923_v38, 0.0  ;;  %v2151_v62 = vsel %vm2012_vm1, %v1930_v32, 0.0  ;;  %v6330_v11 = vmax.f32 %v5474_v51, 0.0 }
 0x1a2   : > { %v3147_v10 = vsel %vm2802_vm2, %v3146_v55, %v3142_v52  ;;  %v2808_v16 = vrot.slane %v2537_v24, %v5539_v56  ;;  %v2601_v54 = vmul.f32 %v2473_v45, %v2473_v45  ;;  %v2474_v13 = vadd.f32 %v5483_v61, %v2216_v58  ;;  %2146 = vadd.xlane.f32.xlu0 %v2145_v4 }
 0x1a3   : > { %v2027_v6 = vpop.xlane.xlu0 %2026  ;;  %v1861_v24 = vmax.f32 %v1671_v43, 0.0  ;;  %v1987_v38 = vmul.f32 %v5524_v12, %v6330_v11  ;;  %v1361_v32 = vadd.f32 %v5497_v57, %v5315_v21  ;;  %v1932_v43 = vmul.f32 %v5524_v12, %v1797_v59 }
 0x1a4   : > { %v2810_v44 = vsel %vm2809_vm3, %v2808_v16, %v2803_v35  ;;  %v3151_v7 = vrot.slane %v2601_v54, %v5539_v56  ;;  %v2602_v17 = vmul.f32 %v2474_v13, %v2474_v13  ;;  %v2411_v55 = vadd.f32 %v5483_v61, %v2027_v6  ;;  %2314 = vadd.xlane.f32.xlu1 %v2313_v53 }
 0x1a5   : > { %v2817_v52 = vsel %vm2816_vm4, %v2815_v20, %v2810_v44  ;;  %v2030_v4 = vpop.xlane.xlu1 %2029  ;;  %v2839_v53 = vadd.s32 4294967240, %v5438_v22  ;;  %v6331_v51 = vmax.f32 %v5481_v33, 0.0  ;;  %v2322_v44 = vsel %vm2012_vm1, %v1987_v38, 0.0 }
 0x1a6   : > { %v3152_v63 = vsel %vm2809_vm3, %v3151_v7, %v3147_v10  ;;  %v3156_v35 = vrot.slane %v2602_v17, %v5512_v26  ;;  %v2539_v45 = vmul.f32 %v2411_v55, %v2411_v55  ;;  %v2412_v58 = vadd.f32 %v5483_v61, %v2030_v4  ;;  %2341 = vadd.xlane.f32.xlu0 %v2340_v19 }
 0x1a7   : > { %v2219_v16 = vpop.xlane.xlu0 %2218  ;;  %v1986_v54 = vmul.f32 %v5524_v12, %v6331_v51  ;;  %v1371_v21 = vadd.f32 %v5497_v57, %v5331_v27  ;;  %v1996_v59 = vmul.f32 %v5524_v12, %v1861_v24  ;;  %v2846_v33 = vadd.s32 4294967232, %v5438_v22 }
 0x1a8   : > { %v3157_v10 = vsel %vm2816_vm4, %v3156_v35, %v3152_v63  ;;  %v2822_v13 = vrot.slane %v2539_v45, %v5560_v5  ;;  %v2540_v20 = vmul.f32 %v2412_v58, %v2412_v58  ;;  %v2475_v19 = vadd.f32 %v5483_v61, %v2219_v16  ;;  %2131 = vadd.xlane.f32.xlu1 %v2130_v0 }
 0x1a9   : > { %v2222_v6 = vpop.xlane.xlu1 %2221  ;;  %v5651_v11 = vsub.s32 %v2839_v53, %v6328_v2  ;;  %v1799_v38 = vmax.f32 %v1361_v32, 0.0  ;;  %v2157_v63 = vsel %vm2012_vm1, %v1932_v43, 0.0  ;;  %v2319_v27 = vsel %vm2012_vm1, %v1986_v54, 0.0 }
 0x1aa   : > { %v2824_v7 = vsel %vm2823_vm5, %v2822_v13, %v2817_v52  ;;  %v2829_v17 = vrot.slane %v2540_v20, %v5576_v46  ;;  %v2603_v55 = vmul.f32 %v2475_v19, %v2475_v19  ;;  %v2476_v4 = vadd.f32 %v5483_v61, %v2222_v6  ;;  %2152 = vadd.xlane.f32.xlu0 %v2151_v62 }
 0x1ab   : > { %v2033_v0 = vpop.xlane.xlu0 %2032  ;;  %v1801_v16 = vmax.f32 %v1371_v21, 0.0  ;;  %v2349_v62 = vsel %vm2012_vm1, %v1996_v59, 0.0  ;;  %v5660_v53 = vsub.s32 %v2846_v33, %v6328_v2  ;;  %v6332_v32 = vmax.f32 %v5487_v15, 0.0 }
 0x1ac   : > { %v2831_v24 = vsel %vm2830_vm6, %v2829_v17, %v2824_v7  ;;  %v3161_v35 = vrot.slane %v2603_v55, %v5560_v5  ;;  %v2604_v52 = vmul.f32 %v2476_v4, %v2476_v4  ;;  %v2413_v45 = vadd.f32 %v5483_v61, %v2033_v0  ;;  %2323 = vadd.xlane.f32.xlu1 %v2322_v44 }
 0x1ad   : > { %v2036_v58 = vpop.xlane.xlu1 %2035  ;;  %v1925_v43 = vmul.f32 %v5524_v12, %v6332_v32  ;;  %v2853_v6 = vadd.s32 4294967224, %v5438_v22  ;;  %v1381_v44 = vadd.f32 %v5497_v57, %v5347_v39  ;;  %v1934_v21 = vmul.f32 %v5524_v12, %v1799_v38 }
 0x1ae   : > { %v3162_v51 = vsel %vm2823_vm5, %v3161_v35, %v3157_v10  ;;  %v3166_v54 = vrot.slane %v2604_v52, %v5576_v46  ;;  %v2541_v13 = vmul.f32 %v2413_v45, %v2413_v45  ;;  %v2414_v20 = vadd.f32 %v5483_v61, %v2036_v58  ;;  %2158 = vadd.xlane.f32.xlu0 %v2157_v63 }
 0x1af   : > { %v2225_v19 = vpop.xlane.xlu0 %2224  ;;  %v2136_v17 = vsel %vm2012_vm1, %v1925_v43, 0.0  ;;  %v6333_v55 = vmax.f32 %v5501_v48, 0.0  ;;  %v1936_v39 = vmul.f32 %v5524_v12, %v1801_v16  ;;  %v1803_v45 = vmax.f32 %v1381_v44, 0.0 }
 0x1b0   : > { %v3167_v15 = vsel %vm2830_vm6, %v3166_v54, %v3162_v51  ;;  %v2836_v59 = vrot.slane %v2541_v13, %v5619_v34  ;;  %v2542_v10 = vmul.f32 %v2414_v20, %v2414_v20  ;;  %v2477_v33 = vadd.f32 %v5483_v61, %v2225_v19  ;;  %2320 = vadd.xlane.f32.xlu1 %v2319_v27 }
 0x1b1   : > { %v2228_v7 = vpop.xlane.xlu1 %2227  ;;  %v1989_v4 = vmul.f32 %v5524_v12, %v6333_v55  ;;  %v5684_v27 = vsub.s32 %v2853_v6, %v6328_v2  ;;  %v2163_v58 = vsel %vm2012_vm1, %v1934_v21, 0.0  ;;  %v1391_v48 = vadd.f32 %v5497_v57, %v5363_v37 }
 0x1b2   : > { %v2838_v0 = vsel %vm2837_vm7, %v2836_v59, %v2831_v24  ;;  %v2843_v38 = vrot.slane %v2542_v10, %v5651_v11  ;;  %v2605_v63 = vmul.f32 %v2477_v33, %v2477_v33  ;;  %v2478_v35 = vadd.f32 %v5483_v61, %v2228_v7  ;;  %2350 = vadd.xlane.f32.xlu0 %v2349_v62 }
 0x1b3   : > { %v2039_v52 = vpop.xlane.xlu0 %2038  ;;  %v2328_v62 = vsel %vm2012_vm1, %v1989_v4, 0.0  ;;  %v2169_v54 = vsel %vm2012_vm1, %v1936_v39, 0.0  ;;  %v2860_v13 = vadd.s32 4294967216, %v5438_v22  ;;  %v6334_v20 = vmax.f32 %v5517_v40, 0.0 }
 0x1b4   : > { %v2845_v16 = vsel %vm2844_vm8, %v2843_v38, %v2838_v0  ;;  %v3171_v24 = vrot.slane %v2605_v63, %v5619_v34  ;;  %v2606_v32 = vmul.f32 %v2478_v35, %v2478_v35  ;;  %v2415_v43 = vadd.f32 %v5483_v61, %v2039_v52  ;;  %2137 = vadd.xlane.f32.xlu1 %v2136_v17 }
 0x1b5   : > { %v2042_v51 = vpop.xlane.xlu1 %2041  ;;  %v1988_v19 = vmul.f32 %v5524_v12, %v6334_v20  ;;  %v1805_v10 = vmax.f32 %v1391_v48, 0.0  ;;  %v2867_v33 = vadd.s32 4294967208, %v5438_v22  ;;  %v1711_v7 = vadd.f32 %v5497_v57, %v5369_v9 }
 0x1b6   : > { %v3172_v37 = vsel %vm2837_vm7, %v3171_v24, %v3167_v15  ;;  %v3176_v6 = vrot.slane %v2606_v32, %v5651_v11  ;;  %v2543_v44 = vmul.f32 %v2415_v43, %v2415_v43  ;;  %v2416_v21 = vadd.f32 %v5483_v61, %v2042_v51  ;;  %2164 = vadd.xlane.f32.xlu0 %v2163_v58 }
 0x1b7   : > { %v2231_v59 = vpop.xlane.xlu0 %2230  ;;  %v1938_v40 = vmul.f32 %v5524_v12, %v1803_v45  ;;  %v5709_v0 = vsub.s32 %v2860_v13, %v6328_v2  ;;  %v2325_v38 = vsel %vm2012_vm1, %v1988_v19, 0.0  ;;  %v6335_v63 = vmax.f32 %v5509_v18, 0.0 }
 0x1b8   : > { %v3177_v17 = vsel %vm2844_vm8, %v3176_v6, %v3172_v37  ;;  %v2850_v15 = vrot.slane %v2543_v44, %v5660_v53  ;;  %v2544_v55 = vmul.f32 %v2416_v21, %v2416_v21  ;;  %v2479_v4 = vadd.f32 %v5483_v61, %v2231_v59  ;;  %2329 = vadd.xlane.f32.xlu1 %v2328_v62 }
 0x1b9   : > { %v2234_v39 = vpop.xlane.xlu1 %2233  ;;  %v1927_v9 = vmul.f32 %v5524_v12, %v6335_v63  ;;  %v1401_v35 = vadd.f32 %v5497_v57, %v5379_v30  ;;  %v5721_v32 = vsub.s32 %v2867_v33, %v6328_v2  ;;  %v1869_v43 = vmax.f32 %v1711_v7, 0.0 }
 0x1ba   : > { %v2852_v52 = vsel %vm2851_vm9, %v2850_v15, %v2845_v16  ;;  %v2857_v45 = vrot.slane %v2544_v55, %v5684_v27  ;;  %v2607_v58 = vmul.f32 %v2479_v4, %v2479_v4  ;;  %v2480_v48 = vadd.f32 %v5483_v61, %v2234_v39  ;;  %2170 = vadd.xlane.f32.xlu0 %v2169_v54 }
 0x1bb   : > { %v2045_v24 = vpop.xlane.xlu0 %2044  ;;  %v2175_v18 = vsel %vm2012_vm1, %v1938_v40, 0.0  ;;  %v1940_v51 = vmul.f32 %v5524_v12, %v1805_v10  ;;  %v2142_v54 = vsel %vm2012_vm1, %v1927_v9, 0.0  ;;  %v1807_v19 = vmax.f32 %v1401_v35, 0.0 }
 0x1bc   : > { %v2859_v62 = vsel %vm2858_vm10, %v2857_v45, %v2852_v52  ;;  %v3181_v30 = vrot.slane %v2607_v58, %v5660_v53  ;;  %v2608_v16 = vmul.f32 %v2480_v48, %v2480_v48  ;;  %v2417_v13 = vadd.f32 %v5483_v61, %v2045_v24  ;;  %2326 = vadd.xlane.f32.xlu1 %v2325_v38 }
 0x1bd   : > { %v2048_v20 = vpop.xlane.xlu1 %2047  ;;  %v2874_v37 = vadd.s32 4294967200, %v5438_v22  ;;  %v6336_v6 = vmax.f32 %v5535_v60, 0.0  ;;  %v2004_v7 = vmul.f32 %v5524_v12, %v1869_v43  ;;  %v2181_v15 = vsel %vm2012_vm1, %v1940_v51, 0.0 }
 0x1be   : > { %v3182_v21 = vsel %vm2851_vm9, %v3181_v30, %v3177_v17  ;;  %v3186_v59 = vrot.slane %v2608_v16, %v5684_v27  ;;  %v2545_v10 = vmul.f32 %v2417_v13, %v2417_v13  ;;  %v2418_v33 = vadd.f32 %v5483_v61, %v2048_v20  ;;  %2176 = vadd.xlane.f32.xlu0 %v2175_v18 }
 0x1bf   : > { %v1991_v44 = vmul.f32 %v5524_v12, %v6336_v6  ;;  %v2237_v40 = vpop.xlane.xlu0 %2236  ;;  %v1726_v55 = vadd.f32 %v5497_v57, %v5381_v49  ;;  %v1942_v63 = vmul.f32 %v5524_v12, %v1807_v19  ;;  %v5745_v9 = vsub.s32 %v2874_v37, %v6328_v2 }
 0x1c0   : > { %v3187_v60 = vsel %vm2858_vm10, %v3186_v59, %v3182_v21  ;;  %v2864_v4 = vrot.slane %v2545_v10, %v5709_v0  ;;  %v2546_v17 = vmul.f32 %v2418_v33, %v2418_v33  ;;  %v2481_v39 = vadd.f32 %v5483_v61, %v2237_v40  ;;  %2143 = vadd.xlane.f32.xlu1 %v2142_v54 }
 0x1c1   : > { %v2240_v38 = vpop.xlane.xlu1 %2239  ;;  %v2334_v35 = vsel %vm2012_vm1, %v1991_v44, 0.0  ;;  %v2881_v52 = vadd.s32 4294967192, %v5438_v22  ;;  %v1872_v43 = vmax.f32 %v1726_v55, 0.0  ;;  %v2373_v18 = vsel %vm2012_vm1, %v2004_v7, 0.0 }
 0x1c2   : > { %v2866_v49 = vsel %vm2865_vm11, %v2864_v4, %v2859_v62  ;;  %v2871_v45 = vrot.slane %v2546_v17, %v5721_v32  ;;  %v2609_v58 = vmul.f32 %v2481_v39, %v2481_v39  ;;  %v2482_v48 = vadd.f32 %v5483_v61, %v2240_v38  ;;  %2182 = vadd.xlane.f32.xlu0 %v2181_v15 }
 0x1c3   : > { %v2051_v24 = vpop.xlane.xlu0 %2050  ;;  %v6337_v51 = vmax.f32 %v5547_v29, 0.0  ;;  %v1411_v16 = vadd.f32 %v5497_v57, %v5395_v1  ;;  %v5762_v19 = vsub.s32 %v2881_v52, %v6328_v2  ;;  %v2187_v29 = vsel %vm2012_vm1, %v1942_v63, 0.0 }
 0x1c4   : > { %v2873_v13 = vsel %vm6292_vm12, %v2871_v45, %v2866_v49  ;;  %v3191_v62 = vrot.slane %v2609_v58, %v5709_v0  ;;  %v2610_v20 = vmul.f32 %v2482_v48, %v2482_v48  ;;  %v2419_v54 = vadd.f32 %v5483_v61, %v2051_v24  ;;  %2335 = vadd.xlane.f32.xlu1 %v2334_v35 }
 0x1c5   : > { %v1990_v30 = vmul.f32 %v5524_v12, %v6337_v51  ;;  %v2054_v37 = vpop.xlane.xlu1 %2053  ;;  %v2888_v6 = vadd.s32 4294967184, %v5438_v22  ;;  %v2007_v10 = vmul.f32 %v5524_v12, %v1872_v43  ;;  %v1809_v40 = vmax.f32 %v1411_v16, 0.0 }
 0x1c6   : > { %v3192_v44 = vsel %vm2865_vm11, %v3191_v62, %v3187_v60  ;;  %v3196_v1 = vrot.slane %v2610_v20, %v5721_v32  ;;  %v2547_v21 = vmul.f32 %v2419_v54, %v2419_v54  ;;  %v2420_v59 = vadd.f32 %v5483_v61, %v2054_v37  ;;  %2374 = vadd.xlane.f32.xlu0 %v2373_v18 }
 0x1c7   : > { %v2243_v33 = vpop.xlane.xlu0 %2242  ;;  %v2331_v7 = vsel %vm2012_vm1, %v1990_v30, 0.0  ;;  %v1736_v15 = vadd.f32 %v5497_v57, %v5397_v8  ;;  %v5777_v38 = vsub.s32 %v2888_v6, %v6328_v2  ;;  %v2148_v63 = vsel %vm2012_vm1, %v5572_v41, 0.0 }
 0x1c8   : > { %v3197_v55 = vsel %vm6292_vm12, %v3196_v1, %v3192_v44  ;;  %v2878_v4 = vrot.slane %v2547_v21, %v5745_v9  ;;  %v2548_v60 = vmul.f32 %v2420_v59, %v2420_v59  ;;  %v2483_v17 = vadd.f32 %v5483_v61, %v2243_v33  ;;  %2332 = vadd.xlane.f32.xlu1 %v2331_v7 }
 0x1c9   : > { %v2246_v39 = vpop.xlane.xlu1 %2245  ;;  %v2895_v35 = vadd.s32 4294967176, %v5438_v22  ;;  %v1944_v58 = vmul.f32 %v5524_v12, %v1809_v40  ;;  %v1874_v24 = vmax.f32 %v1736_v15, 0.0  ;;  %v2382_v43 = vsel %vm2012_vm1, %v2007_v10, 0.0 }
 0x1ca   : > { %v2880_v8 = vsel %vm2879_vm13, %v2878_v4, %v2873_v13  ;;  %v2885_v52 = vrot.slane %v2548_v60, %v5762_v19  ;;  %v2611_v49 = vmul.f32 %v2483_v17, %v2483_v17  ;;  %v2484_v45 = vadd.f32 %v5483_v61, %v2246_v39  ;;  %2188 = vadd.xlane.f32.xlu0 %v2187_v29 }
 0x1cb   : > { %v2057_v48 = vpop.xlane.xlu0 %2056  ;;  %v1421_v18 = vadd.f32 %v5497_v57, %v5411_v50  ;;  %v1860_v16 = vmax.f32 %v5588_v23, 0.0  ;;  %v5794_v13 = vsub.s32 %v2895_v35, %v6328_v2  ;;  %v2337_v20 = vsel %vm2012_vm1, %v5597_v36, 0.0 }
 0x1cc   : > { %v2887_v41 = vsel %vm2886_vm14, %v2885_v52, %v2880_v8  ;;  %v3201_v22 = vrot.slane %v2611_v49, %v5745_v9  ;;  %v2612_v51 = vmul.f32 %v2484_v45, %v2484_v45  ;;  %v2421_v30 = vadd.f32 %v5483_v61, %v2057_v48  ;;  %2149 = vadd.xlane.f32.xlu1 %v2148_v63 }
 0x1cd   : > { %v2060_v62 = vpop.xlane.xlu1 %2059  ;;  %v2009_v6 = vmul.f32 %v5524_v12, %v1874_v24  ;;  %v1811_v23 = vmax.f32 %v1421_v18, 0.0  ;;  %v2193_v1 = vsel %vm2012_vm1, %v1944_v58, 0.0  ;;  %v1741_v2 = vadd.f32 %v5497_v57, %v5420_v25  ;;  %v6338_v58 = vld [vmem:[#allocation7_spill] sm:$0xff] }
 0x1ce   : > { %v3202_v50 = vsel %vm2879_vm13, %v3201_v22, %v3197_v55  ;;  %v3206_v54 = vrot.slane %v2612_v51, %v5762_v19  ;;  %v2549_v37 = vmul.f32 %v2421_v30, %v2421_v30  ;;  %v2422_v29 = vadd.f32 %v5483_v61, %v2060_v62  ;;  %2383 = vadd.xlane.f32.xlu0 %v2382_v43 }
 0x1cf   : > { %v2249_v44 = vpop.xlane.xlu0 %2248  ;;  %v1356_v33 = vadd.f32 %v5497_v57, %v5293_v42  ;;  %v1995_v7 = vmul.f32 %v5524_v12, %v1860_v16  ;;  %v2154_v15 = vsel %vm2012_vm1, %v5607_v47, 0.0  ;;  %v1859_v17 = vmax.f32 %v5601_v28, 0.0 }
 0x1d0   : > { %v3207_v21 = vsel %vm2886_vm14, %v3206_v54, %v3202_v50  ;;  %v2892_v36 = vrot.slane %v2549_v37, %v5777_v38  ;;  %v2550_v59 = vmul.f32 %v2422_v29, %v2422_v29  ;;  %v2485_v10 = vadd.f32 %v5483_v61, %v2249_v44  ;;  %2338 = vadd.xlane.f32.xlu1 %v2337_v20 }
 0x1d1   : > { %v2252_v40 = vpop.xlane.xlu1 %2251  ;;  %v1946_v39 = vmul.f32 %v5524_v12, %v1811_v23  ;;  %v1875_v63 = vmax.f32 %v1741_v2, 0.0  ;;  %v2388_v35 = vsel %vm2012_vm1, %v2009_v6, 0.0  ;;  %v1798_v45 = vmax.f32 %v1356_v33, 0.0  ;;  %v6339_v6 = vld [vmem:[#allocation8_spill] sm:$0xff] }
 0x1d2   : > { %v2894_v25 = vsel %vm2893_vm15, %v2892_v36, %v2887_v41  ;;  %v2899_v55 = vrot.slane %v2550_v59, %v5794_v13  ;;  %v2613_v4 = vmul.f32 %v2485_v10, %v2485_v10  ;;  %v2486_v60 = vadd.f32 %v5483_v61, %v2252_v40  ;;  %2194 = vadd.xlane.f32.xlu0 %v2193_v1 }
 0x1d3   : > { %v2063_v42 = vpop.xlane.xlu0 %2062  ;;  %v1676_v48 = vadd.f32 %v5497_v57, %v6338_v58  ;;  %v2346_v24 = vsel %vm2012_vm1, %v1995_v7, 0.0  ;;  %v1994_v51 = vmul.f32 %v5524_v12, %v1859_v17  ;;  %v2010_v30 = vmul.f32 %v5524_v12, %v1875_v63 }
 0x1d4   : > { %v5820_v8 = vsel %vm2900_vm0, %v2899_v55, %v2894_v25  ;;  %v3211_v47 = vrot.slane %v2613_v4, %v5777_v38  ;;  %v2614_v52 = vmul.f32 %v2486_v60, %v2486_v60  ;;  %v2423_v49 = vadd.f32 %v5483_v61, %v2063_v42  ;;  %2155 = vadd.xlane.f32.xlu1 %v2154_v15  ;;  %v6340_v4 = vld [vmem:[#allocation9_spill] sm:$0xff] }
 0x1d5   : > { %v2066_v28 = vpop.xlane.xlu1 %2065  ;;  %v2199_v62 = vsel %vm2012_vm1, %v1946_v39, 0.0  ;;  %v1933_v37 = vmul.f32 %v5524_v12, %v1798_v45  ;;  %v1862_v29 = vmax.f32 %v1676_v48, 0.0  ;;  %v1366_v44 = vadd.f32 %v5497_v57, %v6339_v6  ;;  %v6341_v6 = vld [vmem:[#allocation10_spill] sm:$0xff] }
 0x1d6   : > { %v3212_v43 = vsel %vm2893_vm15, %v3211_v47, %v3207_v21  ;;  %v3216_v18 = vrot.slane %v2614_v52, %v5794_v13  ;;  %v2551_v41 = vmul.f32 %v2423_v49, %v2423_v49  ;;  %v2424_v22 = vadd.f32 %v5483_v61, %v2066_v28  ;;  %2389 = vadd.xlane.f32.xlu0 %v2388_v35 }
 0x1d7   : > { %v2255_v16 = vpop.xlane.xlu0 %2254  ;;  %v2343_v10 = vsel %vm2012_vm1, %v1994_v51, 0.0  ;;  %v2391_v33 = vsel %vm2012_vm1, %v2010_v30, 0.0  ;;  %v1997_v25 = vmul.f32 %v5524_v12, %v1862_v29  ;;  %v1800_v55 = vmax.f32 %v1366_v44, 0.0 }
 0x1d8   : > { %v5834_v20 = vsel %vm2900_vm0, %v3216_v18, %v3212_v43  ;;  %v2552_v50 = vmul.f32 %v2424_v22, %v2424_v22  ;;  %v2487_v54 = vadd.f32 %v5483_v61, %v2255_v16  ;;  %2347 = vadd.xlane.f32.xlu1 %v2346_v24  ;;  %v2905_v1 = vrot.slane %v2551_v41, %v5464_v31 }
 0x1d9   : > { %v2258_v23 = vpop.xlane.xlu1 %2257  ;;  %v1686_v60 = vadd.f32 %v5497_v57, %v6340_v4  ;;  %v2160_v39 = vsel %vm2012_vm1, %v1933_v37, 0.0  ;;  %v1935_v28 = vmul.f32 %v5524_v12, %v1800_v55  ;;  %v2352_v18 = vsel %vm2012_vm1, %v1997_v25, 0.0  ;;  %v6342_v4 = vld [vmem:[#allocation11_spill] sm:$0xff] }
 0x1da   : > { %v2909_v2 = vrot.slane %v2552_v50, %v5470_v3  ;;  %v2615_v21 = vmul.f32 %v2487_v54, %v2487_v54  ;;  %v2488_v36 = vadd.f32 %v5483_v61, %v2258_v23  ;;  %2200 = vadd.xlane.f32.xlu0 %v2199_v62  ;;  %v1681_v16 = vadd.f32 %v5497_v57, %v5323_v14 }
 0x1db   : > { %v2069_v59 = vpop.xlane.xlu0 %2068  ;;  %v1864_v24 = vmax.f32 %v1686_v60, 0.0  ;;  %v1376_v44 = vadd.f32 %v5497_v57, %v6341_v6  ;;  %v1696_v60 = vadd.f32 %v5497_v57, %v6342_v4 }
 0x1dc   : > { %v2910_v7 = vsel %vm2802_vm2, %v2909_v2, %v2905_v1  ;;  %v2616_v40 = vmul.f32 %v2488_v36, %v2488_v36  ;;  %v2425_v15 = vadd.f32 %v5483_v61, %v2069_v59  ;;  %2344 = vadd.xlane.f32.xlu1 %v2343_v10  ;;  %v3221_v42 = vrot.slane %v2615_v21, %v5464_v31 }
 0x1dd   : > { %v2072_v17 = vpop.xlane.xlu1 %2071  ;;  %v1999_v23 = vmul.f32 %v5524_v12, %v1864_v24  ;;  %v2166_v2 = vsel %vm2012_vm1, %v1935_v28, 0.0  ;;  %v1863_v10 = vmax.f32 %v1681_v16, 0.0  ;;  %v1802_v55 = vmax.f32 %v1376_v44, 0.0  ;;  %v6343_v16 = vld [vmem:[#allocation12_spill] sm:$0xff] }
 0x1de   : > { %v3225_v63 = vrot.slane %v2616_v40, %v5470_v3  ;;  %v2553_v35 = vmul.f32 %v2425_v15, %v2425_v15  ;;  %v2426_v47 = vadd.f32 %v5483_v61, %v2072_v17  ;;  %2392 = vadd.xlane.f32.xlu0 %v2391_v33 }
 0x1df   : > { %v2261_v52 = vpop.xlane.xlu0 %2260  ;;  %v1937_v24 = vmul.f32 %v5524_v12, %v1802_v55 }
 0x1e0   : > { %v3226_v49 = vsel %vm2802_vm2, %v3225_v63, %v3221_v42  ;;  %v2914_v45 = vrot.slane %v2553_v35, %v5539_v56  ;;  %v2554_v58 = vmul.f32 %v2426_v47, %v2426_v47  ;;  %v2489_v48 = vadd.f32 %v5483_v61, %v2261_v52  ;;  %2161 = vadd.xlane.f32.xlu1 %v2160_v39 }
 0x1e1   : > { %v2264_v43 = vpop.xlane.xlu1 %2263  ;;  %v2358_v39 = vsel %vm2012_vm1, %v1999_v23, 0.0  ;;  %v1998_v52 = vmul.f32 %v5524_v12, %v1863_v10  ;;  %v6344_v23 = vld [vmem:[#allocation13_spill] sm:$0xff] }
 0x1e2   : > { %v2915_v41 = vsel %vm2809_vm3, %v2914_v45, %v2910_v7  ;;  %v2919_v22 = vrot.slane %v2554_v58, %v5512_v26  ;;  %v2617_v51 = vmul.f32 %v2489_v48, %v2489_v48  ;;  %v2490_v30 = vadd.f32 %v5483_v61, %v2264_v43 }
 0x1e3   : > { %v2075_v62 = vpop.xlane.xlu0 %2074  ;;  %v1866_v43 = vmax.f32 %v1696_v60, 0.0 }
 0x1e4   : > { %v2920_v50 = vsel %vm2816_vm4, %v2919_v22, %v2915_v41  ;;  %v3230_v54 = vrot.slane %v2617_v51, %v5539_v56  ;;  %v2618_v37 = vmul.f32 %v2490_v30, %v2490_v30  ;;  %v2427_v29 = vadd.f32 %v5483_v61, %v2075_v62  ;;  %2353 = vadd.xlane.f32.xlu1 %v2352_v18 }
 0x1e5   : > { %v2078_v1 = vpop.xlane.xlu1 %2077  ;;  %v1691_v62 = vadd.f32 %v5497_v57, %v6343_v16 }
 0x1e6   : > { %v3231_v21 = vsel %vm2809_vm3, %v3230_v54, %v3226_v49  ;;  %v3235_v14 = vrot.slane %v2618_v37, %v5512_v26  ;;  %v2555_v36 = vmul.f32 %v2427_v29, %v2427_v29  ;;  %v2428_v59 = vadd.f32 %v5483_v61, %v2078_v1 }
 0x1e7   : > { %v2267_v33 = vpop.xlane.xlu0 %2266  ;;  %v2355_v54 = vsel %vm2012_vm1, %v1998_v52, 0.0  ;;  %v1386_v1 = vadd.f32 %v5497_v57, %v6344_v23 }
 0x1e8   : > { %v3236_v7 = vsel %vm2816_vm4, %v3235_v14, %v3231_v21  ;;  %v2924_v40 = vrot.slane %v2555_v36, %v5560_v5  ;;  %v2556_v15 = vmul.f32 %v2428_v59, %v2428_v59  ;;  %v2491_v25 = vadd.f32 %v5483_v61, %v2267_v33  ;;  %2167 = vadd.xlane.f32.xlu1 %v2166_v2 }
 0x1e9   : > { %v2270_v17 = vpop.xlane.xlu1 %2269  ;;  %v2001_v2 = vmul.f32 %v5524_v12, %v1866_v43  ;;  %v2172_v14 = vsel %vm2012_vm1, %v1937_v24, 0.0  ;;  %v1804_v60 = vmax.f32 %v1386_v1, 0.0 }
 0x1ea   : > { %v2925_v42 = vsel %vm2823_vm5, %v2924_v40, %v2920_v50  ;;  %v2929_v63 = vrot.slane %v2556_v15, %v5576_v46  ;;  %v2619_v35 = vmul.f32 %v2491_v25, %v2491_v25  ;;  %v2492_v47 = vadd.f32 %v5483_v61, %v2270_v17  ;;  %v6345_v17 = vld [vmem:[#allocation14_spill] sm:$0xff] }
 0x1eb   : > { %v2081_v49 = vpop.xlane.xlu0 %2080 }
 0x1ec   : > { %v2930_v45 = vsel %vm2830_vm6, %v2929_v63, %v2925_v42  ;;  %v3240_v58 = vrot.slane %v2619_v35, %v5560_v5  ;;  %v2620_v48 = vmul.f32 %v2492_v47, %v2492_v47  ;;  %v2429_v28 = vadd.f32 %v5483_v61, %v2081_v49  ;;  %2359 = vadd.xlane.f32.xlu1 %v2358_v39 }
 0x1ed   : > { %v2084_v18 = vpop.xlane.xlu1 %2083  ;;  %v1706_v39 = vadd.f32 %v5497_v57, %v6345_v17  ;;  %v2364_v63 = vsel %vm2012_vm1, %v2001_v2, 0.0 }
 0x1ee   : > { %v3241_v41 = vsel %vm2823_vm5, %v3240_v58, %v3236_v7  ;;  %v3245_v22 = vrot.slane %v2620_v48, %v5576_v46  ;;  %v2557_v51 = vmul.f32 %v2429_v28, %v2429_v28  ;;  %v2430_v30 = vadd.f32 %v5483_v61, %v2084_v18 }
 0x1ef   : > { %v2273_v50 = vpop.xlane.xlu0 %2272  ;;  %v1865_v7 = vmax.f32 %v1691_v62, 0.0  ;;  %v1939_v18 = vmul.f32 %v5524_v12, %v1804_v60 }
 0x1f0   : > { %v3246_v37 = vsel %vm2830_vm6, %v3245_v22, %v3241_v41  ;;  %v2934_v29 = vrot.slane %v2557_v51, %v5619_v34  ;;  %v2558_v6 = vmul.f32 %v2430_v30, %v2430_v30  ;;  %v2493_v44 = vadd.f32 %v5483_v61, %v2273_v50  ;;  %2356 = vadd.xlane.f32.xlu1 %v2355_v54  ;;  %v6346_v50 = vld [vmem:[#allocation15_spill] sm:$0xff] }
 0x1f1   : > { %v2276_v21 = vpop.xlane.xlu1 %2275  ;;  %v1868_v41 = vmax.f32 %v1706_v39, 0.0  ;;  %v1701_v54 = vadd.f32 %v5497_v57, %v6346_v50 }
 0x1f2   : > { %v2935_v36 = vsel %vm2837_vm7, %v2934_v29, %v2930_v45  ;;  %v2939_v59 = vrot.slane %v2558_v6, %v5651_v11  ;;  %v2621_v10 = vmul.f32 %v2493_v44, %v2493_v44  ;;  %v2494_v33 = vadd.f32 %v5483_v61, %v2276_v21 }
 0x1f3   : > { %v2087_v40 = vpop.xlane.xlu0 %2086  ;;  %v2000_v45 = vmul.f32 %v5524_v12, %v1865_v7  ;;  %v2003_v2 = vmul.f32 %v5524_v12, %v1868_v41  ;;  %v6347_v7 = vld [vmem:[#allocation16_spill] sm:$0xff] }
 0x1f4   : > { %v2940_v15 = vsel %vm2844_vm8, %v2939_v59, %v2935_v36  ;;  %v3250_v25 = vrot.slane %v2621_v10, %v5619_v34  ;;  %v2622_v55 = vmul.f32 %v2494_v33, %v2494_v33  ;;  %v2431_v4 = vadd.f32 %v5483_v61, %v2087_v40  ;;  %2173 = vadd.xlane.f32.xlu1 %v2172_v14  ;;  %v5935_v33 = vld [vmem:[%s6285_s3] ss:$0 sm:$0xff] }
 0x1f5   : > { %v2090_v42 = vpop.xlane.xlu1 %2089  ;;  %v2361_v29 = vsel %vm2012_vm1, %v2000_v45, 0.0  ;;  %v2178_v14 = vsel %vm2012_vm1, %v1939_v18, 0.0  ;;  %v1396_v40 = vadd.f32 %v5935_v33, %v6347_v7  ;;  %v2370_v39 = vsel %vm2012_vm1, %v2003_v2, 0.0 }
 0x1f6   : > { %v3251_v35 = vsel %vm2837_vm7, %v3250_v25, %v3246_v37  ;;  %v3255_v47 = vrot.slane %v2622_v55, %v5651_v11  ;;  %v2559_v52 = vmul.f32 %v2431_v4, %v2431_v4  ;;  %v2432_v49 = vadd.f32 %v5483_v61, %v2090_v42 }
 0x1f7   : > { %v2279_v58 = vpop.xlane.xlu0 %2278 }
 0x1f8   : > { %v3256_v48 = vsel %vm2844_vm8, %v3255_v47, %v3251_v35  ;;  %v2944_v28 = vrot.slane %v2559_v52, %v5660_v53  ;;  %v2560_v24 = vmul.f32 %v2432_v49, %v2432_v49  ;;  %v2495_v43 = vadd.f32 %v5483_v61, %v2279_v58  ;;  %2365 = vadd.xlane.f32.xlu1 %v2364_v63  ;;  %v5949_v49 = vld [vmem:[%s6286_s4] ss:$0 sm:$0xff]  ;;  %v6348_v58 = vld [vmem:[#allocation17_spill] sm:$0xff] }
 0x1f9   : > { %v2282_v22 = vpop.xlane.xlu1 %2281  ;;  %v1806_v52 = vmax.f32 %v1396_v40, 0.0 }
 0x1fa   : > { %v2945_v51 = vsel %vm2851_vm9, %v2944_v28, %v2940_v15  ;;  %v2949_v30 = vrot.slane %v2560_v24, %v5684_v27  ;;  %v2623_v16 = vmul.f32 %v2495_v43, %v2495_v43  ;;  %v2496_v62 = vadd.f32 %v5483_v61, %v2282_v22 }
 0x1fb   : > { %v2093_v37 = vpop.xlane.xlu0 %2092  ;;  %v1867_v15 = vmax.f32 %v1701_v54, 0.0  ;;  %v1941_v50 = vmul.f32 %v5949_v49, %v1806_v52 }
 0x1fc   : > { %v2950_v6 = vsel %vm2858_vm10, %v2949_v30, %v2945_v51  ;;  %v3260_v44 = vrot.slane %v2623_v16, %v5660_v53  ;;  %v2624_v23 = vmul.f32 %v2496_v62, %v2496_v62  ;;  %v2433_v1 = vadd.f32 %v5483_v61, %v2093_v37  ;;  %2362 = vadd.xlane.f32.xlu1 %v2361_v29  ;;  %v6349_v37 = vld [vmem:[#allocation18_spill] sm:$0xff] }
 0x1fd   : > { %v2096_v21 = vpop.xlane.xlu1 %2095  ;;  %v2002_v45 = vmul.f32 %v5949_v49, %v1867_v15  ;;  %v1406_v29 = vadd.f32 %v5935_v33, %v6349_v37 }
 0x1fe   : > { %v3261_v36 = vsel %vm2851_vm9, %v3260_v44, %v3256_v48  ;;  %v3265_v57 = vrot.slane %v2624_v23, %v5684_v27  ;;  %v2561_v59 = vmul.f32 %v2433_v1, %v2433_v1  ;;  %v2434_v10 = vadd.f32 %v5483_v61, %v2096_v21 }
 0x1ff   : > { %v2285_v12 = vpop.xlane.xlu0 %2284  ;;  %v1716_v48 = vadd.f32 %v5935_v33, %v6348_v58  ;;  %v2367_v44 = vsel %vm2012_vm1, %v2002_v45, 0.0  ;;  %v1808_v15 = vmax.f32 %v1406_v29, 0.0 }
 0x200   : > { %v3266_v25 = vsel %vm2858_vm10, %v3265_v57, %v3261_v36  ;;  %v2954_v55 = vrot.slane %v2561_v59, %v5709_v0  ;;  %v2562_v4 = vmul.f32 %v2434_v10, %v2434_v10  ;;  %v2497_v60 = vadd.f32 %v5483_v61, %v2285_v12  ;;  %2179 = vadd.xlane.f32.xlu1 %v2178_v14  ;;  %v6350_v14 = vld [vmem:[#allocation19_spill] sm:$0xff] }
 0x201   : > { %v2288_v17 = vpop.xlane.xlu1 %2287  ;;  %v1870_v54 = vmax.f32 %v1716_v48, 0.0  ;;  %v1721_v36 = vadd.f32 %v5935_v33, %v6350_v14 }
 0x202   : > { %v2955_v42 = vsel %vm2865_vm11, %v2954_v55, %v2950_v6  ;;  %v2959_v63 = vrot.slane %v2562_v4, %v5721_v32  ;;  %v2625_v35 = vmul.f32 %v2497_v60, %v2497_v60  ;;  %v2498_v47 = vadd.f32 %v5483_v61, %v2288_v17 }
 0x203   : > { %v2099_v28 = vpop.xlane.xlu0 %2098  ;;  %v2005_v40 = vmul.f32 %v5949_v49, %v1870_v54  ;;  %v2184_v55 = vsel %vm2012_vm1, %v1941_v50, 0.0  ;;  %v1871_v17 = vmax.f32 %v1721_v36, 0.0 }
 0x204   : > { %v2960_v24 = vsel %vm6292_vm12, %v2959_v63, %v2955_v42  ;;  %v3270_v43 = vrot.slane %v2625_v35, %v5709_v0  ;;  %v2626_v18 = vmul.f32 %v2498_v47, %v2498_v47  ;;  %v2435_v41 = vadd.f32 %v5483_v61, %v2099_v28  ;;  %2371 = vadd.xlane.f32.xlu1 %v2370_v39  ;;  %v6351_v47 = vld [vmem:[#allocation20_spill] sm:$0xff] }
 0x205   : > { %v2102_v22 = vpop.xlane.xlu1 %2101  ;;  %v1943_v35 = vmul.f32 %v5949_v49, %v1808_v15  ;;  %v1416_v52 = vadd.f32 %v5935_v33, %v6351_v47  ;;  %v2376_v48 = vsel %vm2012_vm1, %v2005_v40, 0.0  ;;  %v6354_v47 = vld [vmem:[#allocation23_spill] sm:$0xff] }
 0x206   : > { %v3271_v51 = vsel %vm2865_vm11, %v3270_v43, %v3266_v25  ;;  %v3275_v30 = vrot.slane %v2626_v18, %v5721_v32  ;;  %v2563_v16 = vmul.f32 %v2435_v41, %v2435_v41  ;;  %v2436_v62 = vadd.f32 %v5483_v61, %v2102_v22  ;;  %v6352_v43 = vld [vmem:[#allocation21_spill] sm:$0xff] }
 0x207   : > { %v2105_v6 = vpop.xlane.xlu0 %2104  ;;  %v1731_v18 = vadd.f32 %v5935_v33, %v6352_v43  ;;  %v2190_v54 = vsel %vm2012_vm1, %v1943_v35, 0.0 }
 0x208   : > { %v3276_v23 = vsel %vm6292_vm12, %v3275_v30, %v3271_v51  ;;  %v2964_v1 = vrot.slane %v2563_v16, %v5745_v9  ;;  %v2564_v2 = vmul.f32 %v2436_v62, %v2436_v62  ;;  %v2437_v21 = vadd.f32 %v5483_v61, %v2105_v6  ;;  %2368 = vadd.xlane.f32.xlu1 %v2367_v44  ;;  %v6353_v6 = vld [vmem:[#allocation22_spill] sm:$0xff] }
 0x209   : > { %v2294_v57 = vpop.xlane.xlu1 %2293  ;;  %v1810_v30 = vmax.f32 %v1416_v52, 0.0  ;;  %v1426_v44 = vadd.f32 %v5935_v33, %v6353_v6  ;;  %vm3455_vm12 = vcmask 1041409  }
 0x20a   : > { %v2965_v59 = vsel %vm2879_vm13, %v2964_v1, %v2960_v24  ;;  %v2969_v10 = vrot.slane %v2564_v2, %v5762_v19  ;;  %v2565_v7 = vmul.f32 %v2437_v21, %v2437_v21  ;;  %v2500_v12 = vadd.f32 %v5483_v61, %v2294_v57 }
 0x20b   : > { %v2300_v25 = vpop.xlane.xlu0 %2299  ;;  %v2006_v24 = vmul.f32 %v5949_v49, %v1871_v17  ;;  %v1873_v1 = vmax.f32 %v1731_v18, 0.0 }
 0x20c   : > { %v2970_v4 = vsel %vm2886_vm14, %v2969_v10, %v2965_v59  ;;  %v2974_v60 = vrot.slane %v2565_v7, %v5777_v38  ;;  %2185 = vadd.xlane.f32.xlu1 %v2184_v55  ;;  %v2628_v45 = vmul.f32 %v2500_v12, %v2500_v12  ;;  %v2502_v62 = vadd.f32 %v5483_v61, %v2300_v25 }
 0x20d   : > { %v2291_v39 = vpop.xlane.xlu1 %2290  ;;  %v2379_v14 = vsel %vm2012_vm1, %v2006_v24, 0.0  ;;  %v1812_v25 = vmax.f32 %v1426_v44, 0.0  ;;  %v2008_v55 = vmul.f32 %v5949_v49, %v1873_v1 }
 0x20e   : > { %v2975_v42 = vsel %vm2893_vm15, %v2974_v60, %v2970_v4  ;;  %v2499_v63 = vadd.f32 %v5483_v61, %v2291_v39  ;;  %v3285_v16 = vrot.slane %v2628_v45, %v5762_v19  ;;  %v2630_v10 = vmul.f32 %v2502_v62, %v2502_v62 }
 0x20f   : > { %v2111_v58 = vpop.xlane.xlu0 %2110  ;;  %v2385_v18 = vsel %vm2012_vm1, %v2008_v55, 0.0 }
 0x210   : > { %v2627_v28 = vmul.f32 %v2499_v63, %v2499_v63  ;;  %2377 = vadd.xlane.f32.xlu1 %v2376_v48  ;;  %v2439_v36 = vadd.f32 %v5483_v61, %v2111_v58  ;;  %v3295_v52 = vrot.slane %v2630_v10, %v5794_v13 }
 0x211   : > { %v2108_v41 = vpop.xlane.xlu1 %2107 }
 0x212   : > { %v3280_v22 = vrot.slane %v2627_v28, %v5745_v9  ;;  %v2438_v51 = vadd.f32 %v5483_v61, %v2108_v41  ;;  %v2567_v17 = vmul.f32 %v2439_v36, %v2439_v36 }
 0x213   : > { %v2306_v50 = vpop.xlane.xlu0 %2305 }
 0x214   : > { %v3281_v37 = vsel %vm2879_vm13, %v3280_v22, %v3276_v23  ;;  %v2566_v29 = vmul.f32 %v2438_v51, %v2438_v51  ;;  %2191 = vadd.xlane.f32.xlu1 %v2190_v54  ;;  %v1945_v23 = vmul.f32 %v5949_v49, %v1810_v30  ;;  %v2504_v39 = vadd.f32 %v5483_v61, %v2306_v50 }
 0x215   : > { %v2297_v2 = vpop.xlane.xlu1 %2296  ;;  %v3286_v21 = vsel %vm2886_vm14, %v3285_v16, %v3281_v37  ;;  %v2984_v41 = vrot.slane %v2567_v17, %v5464_v31  ;;  %v1947_v30 = vmul.f32 %v5949_v49, %v1812_v25 }
 0x216   : > { %v2979_v57 = vrot.slane %v2566_v29, %v5794_v13  ;;  %v2501_v59 = vadd.f32 %v5483_v61, %v2297_v2  ;;  %v2196_v58 = vsel %vm2012_vm1, %v1945_v23, 0.0  ;;  %v2632_v22 = vmul.f32 %v2504_v39, %v2504_v39 }
 0x217   : > { %v2117_v7 = vpop.xlane.xlu0 %2116  ;;  %v2202_v36 = vsel %vm2012_vm1, %v1947_v30, 0.0 }
 0x218   : > { %v2980_v40 = vsel %vm2900_vm0, %v2979_v57, %v2975_v42  ;;  %v2629_v15 = vmul.f32 %v2501_v59, %v2501_v59  ;;  %v2441_v12 = vadd.f32 %v5483_v61, %v2117_v7  ;;  %2380 = vadd.xlane.f32.xlu1 %v2379_v14  ;;  %v1746_v42 = vadd.f32 %v5935_v33, %v6354_v47 }
 0x219   : > { %v6003_v4 = vsel %vm3455_vm12, %v2980_v40, %v5820_v8  ;;  %v2114_v60 = vpop.xlane.xlu1 %2113  ;;  %v3304_v6 = vrot.slane %v2632_v22, %v5470_v3 }
 0x21a   : > { %v3290_v63 = vrot.slane %v2629_v15, %v5777_v38  ;;  %v2440_v35 = vadd.f32 %v5483_v61, %v2114_v60  ;;  %v2569_v45 = vmul.f32 %v2441_v12, %v2441_v12  ;;  %v1876_v16 = vmax.f32 %v1746_v42, 0.0 }
 0x21b   : > { %v2312_v28 = vpop.xlane.xlu0 %2311 }
 0x21c   : > { %v3291_v48 = vsel %vm2893_vm15, %v3290_v63, %v3286_v21  ;;  %v2568_v8 = vmul.f32 %v2440_v35, %v2440_v35  ;;  %2197 = vadd.xlane.f32.xlu1 %v2196_v58  ;;  %v2993_v62 = vrot.slane %v2569_v45, %v5539_v56  ;;  %v2011_v21 = vmul.f32 %v5949_v49, %v1876_v16 }
 0x21d   : > { %v6014_v24 = vsel %vm2900_vm0, %v3295_v52, %v3291_v48  ;;  %v2303_v43 = vpop.xlane.xlu1 %2302  ;;  %v2506_v14 = vadd.f32 %v5483_v61, %v2312_v28 }
 0x21e   : > { %v2988_v33 = vrot.slane %v2568_v8, %v5470_v3  ;;  %v2503_v51 = vadd.f32 %v5483_v61, %v2303_v43  ;;  %v2394_v12 = vsel %vm2012_vm1, %v2011_v21, 0.0  ;;  %vm6355_vm1 = vcmask 786112  }
 0x21f   : > { %v2123_v1 = vpop.xlane.xlu0 %2122  ;;  %v2634_v15 = vmul.f32 %v2506_v14, %v2506_v14  ;;  %vm6356_vm12 = vmmov %vm6355_vm1 }
 0x220   : > { %v2989_v50 = vsel %vm2802_vm2, %v2988_v33, %v2984_v41  ;;  %v2631_v54 = vmul.f32 %v2503_v51, %v2503_v51  ;;  %2386 = vadd.xlane.f32.xlu1 %v2385_v18  ;;  %v2443_v23 = vadd.f32 %v5483_v61, %v2123_v1 }
 0x221   : > { %v2120_v37 = vpop.xlane.xlu1 %2119  ;;  %v2994_v29 = vsel %vm2809_vm3, %v2993_v62, %v2989_v50  ;;  %v3314_v63 = vrot.slane %v2634_v15, %v5512_v26 }
 0x222   : > { %v3300_v44 = vrot.slane %v2631_v54, %v5464_v31  ;;  %v2442_v2 = vadd.f32 %v5483_v61, %v2120_v37  ;;  %v2571_v55 = vmul.f32 %v2443_v23, %v2443_v23 }
 0x223   : > { %v2129_v58 = vpop.xlane.xlu0 %2128 }
 0x224   : > { %v3305_v57 = vsel %vm2802_vm2, %v3304_v6, %v3300_v44  ;;  %v2570_v59 = vmul.f32 %v2442_v2, %v2442_v2  ;;  %2203 = vadd.xlane.f32.xlu1 %v2202_v36  ;;  %v3003_v42 = vrot.slane %v2571_v55, %v5560_v5  ;;  %v2445_v18 = vadd.f32 %v5483_v61, %v2129_v58 }
 0x225   : > { %v2309_v10 = vpop.xlane.xlu1 %2308 }
 0x226   : > { %v2998_v7 = vrot.slane %v2570_v59, %v5512_v26  ;;  %v2505_v40 = vadd.f32 %v5483_v61, %v2309_v10  ;;  %v2573_v30 = vmul.f32 %v2445_v18, %v2445_v18 }
 0x227   : > { %v2135_v2 = vpop.xlane.xlu0 %2134 }
 0x228   : > { %v2999_v49 = vsel %vm2816_vm4, %v2998_v7, %v2994_v29  ;;  %v2633_v25 = vmul.f32 %v2505_v40, %v2505_v40  ;;  %2395 = vadd.xlane.f32.xlu1 %v2394_v12  ;;  %v3013_v6 = vrot.slane %v2573_v30, %v5619_v34  ;;  %v2447_v59 = vadd.f32 %v5483_v61, %v2135_v2 }
 0x229   : > { %v2126_v60 = vpop.xlane.xlu1 %2125  ;;  %v3004_v8 = vsel %vm2823_vm5, %v3003_v42, %v2999_v49 }
 0x22a   : > { %v3309_v17 = vrot.slane %v2633_v25, %v5539_v56  ;;  %v2444_v39 = vadd.f32 %v5483_v61, %v2126_v60  ;;  %v2575_v15 = vmul.f32 %v2447_v59, %v2447_v59 }
 0x22c   : > { %v3310_v35 = vsel %vm2809_vm3, %v3309_v17, %v3305_v57  ;;  %v2572_v47 = vmul.f32 %v2444_v39, %v2444_v39  ;;  %v3023_v39 = vrot.slane %v2575_v15, %v5660_v53 }
 0x22d   : > { %v2318_v52 = vpop.xlane.xlu1 %2317  ;;  %v3315_v45 = vsel %vm2816_vm4, %v3314_v63, %v3310_v35 }
 0x22e   : > { %v3008_v48 = vrot.slane %v2572_v47, %v5576_v46  ;;  %v2508_v28 = vadd.f32 %v5483_v61, %v2318_v52  ;;  %v2141_v47 = vpop.xlane.xlu0 %2140 }
 0x230   : > { %v3009_v43 = vsel %vm2830_vm6, %v3008_v48, %v3004_v8  ;;  %v2636_v33 = vmul.f32 %v2508_v28, %v2508_v28  ;;  %v2449_v48 = vadd.f32 %v5483_v61, %v2141_v47 }
 0x231   : > { %v2315_v41 = vpop.xlane.xlu1 %2314  ;;  %v3014_v14 = vsel %vm2837_vm7, %v3013_v6, %v3009_v43 }
 0x232   : > { %v2507_v22 = vadd.f32 %v5483_v61, %v2315_v41  ;;  %v3324_v54 = vrot.slane %v2636_v33, %v5576_v46  ;;  %v2577_v41 = vmul.f32 %v2449_v48, %v2449_v48  ;;  %v2147_v33 = vpop.xlane.xlu0 %2146 }
 0x234   : > { %v2635_v51 = vmul.f32 %v2507_v22, %v2507_v22 }
 0x235   : > { %v2132_v16 = vpop.xlane.xlu1 %2131 }
 0x236   : > { %v3319_v62 = vrot.slane %v2635_v51, %v5560_v5  ;;  %v2446_v50 = vadd.f32 %v5483_v61, %v2132_v16  ;;  %v2342_v2 = vpop.xlane.xlu0 %2341 }
 0x238   : > { %v3320_v37 = vsel %vm2823_vm5, %v3319_v62, %v3315_v45  ;;  %v2574_v29 = vmul.f32 %v2446_v50, %v2446_v50 }
 0x239   : > { %v2324_v44 = vpop.xlane.xlu1 %2323  ;;  %v3325_v1 = vsel %vm2830_vm6, %v3324_v54, %v3320_v37  ;;  %v3033_v54 = vrot.slane %v2577_v41, %v5709_v0  ;;  %v2516_v41 = vadd.f32 %v5483_v61, %v2342_v2 }
 0x23a   : > { %v3018_v21 = vrot.slane %v2574_v29, %v5651_v11  ;;  %v2510_v36 = vadd.f32 %v5483_v61, %v2324_v44 }
 0x23c   : > { %v3019_v57 = vsel %vm2844_vm8, %v3018_v21, %v3014_v14  ;;  %v2638_v7 = vmul.f32 %v2510_v36, %v2510_v36  ;;  %v2451_v14 = vadd.f32 %v5483_v61, %v2147_v33 }
 0x23d   : > { %v2321_v23 = vpop.xlane.xlu1 %2320  ;;  %v3024_v52 = vsel %vm2851_vm9, %v3023_v39, %v3019_v57 }
 0x23e   : > { %v2509_v10 = vadd.f32 %v5483_v61, %v2321_v23  ;;  %v3334_v55 = vrot.slane %v2638_v7, %v5651_v11 }
 0x240   : > { %v2637_v40 = vmul.f32 %v2509_v10, %v2509_v10  ;;  %v2579_v10 = vmul.f32 %v2451_v14, %v2451_v14 }
 0x241   : > { %v2138_v12 = vpop.xlane.xlu1 %2137 }
 0x242   : > { %v3329_v49 = vrot.slane %v2637_v40, %v5619_v34  ;;  %v2448_v25 = vadd.f32 %v5483_v61, %v2138_v12  ;;  %v2153_v40 = vpop.xlane.xlu0 %2152 }
 0x244   : > { %v3330_v60 = vsel %vm2837_vm7, %v3329_v49, %v3325_v1  ;;  %v2576_v17 = vmul.f32 %v2448_v25, %v2448_v25 }
 0x245   : > { %v2330_v63 = vpop.xlane.xlu1 %2329  ;;  %v3335_v35 = vsel %vm2844_vm8, %v3334_v55, %v3330_v60  ;;  %v3043_v60 = vrot.slane %v2579_v10, %v5745_v9 }
 0x246   : > { %v3028_v42 = vrot.slane %v2576_v17, %v5684_v27  ;;  %v2512_v45 = vadd.f32 %v5483_v61, %v2330_v63  ;;  %v2453_v17 = vadd.f32 %v5483_v61, %v2153_v40 }
 0x248   : > { %v3029_v58 = vsel %vm2858_vm10, %v3028_v42, %v3024_v52  ;;  %v2640_v43 = vmul.f32 %v2512_v45, %v2512_v45 }
 0x249   : > { %v2327_v8 = vpop.xlane.xlu1 %2326  ;;  %v3034_v44 = vsel %vm2865_vm11, %v3033_v54, %v3029_v58  ;;  %v2581_v58 = vmul.f32 %v2453_v17, %v2453_v17  ;;  %v2644_v54 = vmul.f32 %v2516_v41, %v2516_v41 }
 0x24a   : > { %v2511_v28 = vadd.f32 %v5483_v61, %v2327_v8  ;;  %v3344_v16 = vrot.slane %v2640_v43, %v5684_v27 }
 0x24c   : > { %v2639_v18 = vmul.f32 %v2511_v28, %v2511_v28 }
 0x24d   : > { %v2144_v22 = vpop.xlane.xlu1 %2143 }
 0x24e   : > { %v3339_v51 = vrot.slane %v2639_v18, %v5660_v53  ;;  %v2450_v30 = vadd.f32 %v5483_v61, %v2144_v22  ;;  %v3053_v22 = vrot.slane %v2581_v58, %v5777_v38 }
 0x250   : > { %v3340_v62 = vsel %vm2851_vm9, %v3339_v51, %v3335_v35  ;;  %v2578_v50 = vmul.f32 %v2450_v30, %v2450_v30  ;;  %v2159_v51 = vpop.xlane.xlu0 %2158 }
 0x251   : > { %v2336_v37 = vpop.xlane.xlu1 %2335  ;;  %v3345_v29 = vsel %vm2858_vm10, %v3344_v16, %v3340_v62 }
 0x252   : > { %v3038_v6 = vrot.slane %v2578_v50, %v5721_v32  ;;  %v2514_v1 = vadd.f32 %v5483_v61, %v2336_v37 }
 0x254   : > { %v3039_v21 = vsel %vm6355_vm1, %v3038_v6, %v3034_v44  ;;  %v2642_v59 = vmul.f32 %v2514_v1, %v2514_v1  ;;  %vm3457_vm1 = vcmask 1042434   ;;  %v2351_v1 = vpop.xlane.xlu0 %2350 }
 0x255   : > { %v2333_v36 = vpop.xlane.xlu1 %2332  ;;  %v3044_v42 = vsel %vm2879_vm13, %v3043_v60, %v3039_v21  ;;  %v3364_v21 = vrot.slane %v2644_v54, %v5762_v19  ;;  %v2519_v41 = vadd.f32 %v5483_v61, %v2351_v1 }
 0x256   : > { %v2513_v57 = vadd.f32 %v5483_v61, %v2333_v36  ;;  %v3354_v49 = vrot.slane %v2642_v59, %v5721_v32 }
 0x258   : > { %v2641_v23 = vmul.f32 %v2513_v57, %v2513_v57 }
 0x259   : > { %v2150_v7 = vpop.xlane.xlu1 %2149 }
 0x25a   : > { %v3349_v15 = vrot.slane %v2641_v23, %v5709_v0  ;;  %v2452_v12 = vadd.f32 %v5483_v61, %v2150_v7  ;;  %v2165_v7 = vpop.xlane.xlu0 %2164 }
 0x25c   : > { %v3350_v25 = vsel %vm2865_vm11, %v3349_v15, %v3345_v29  ;;  %v2580_v55 = vmul.f32 %v2452_v12, %v2452_v12 }
 0x25d   : > { %v2339_v39 = vpop.xlane.xlu1 %2338  ;;  %v3355_v63 = vsel %vm6356_vm12, %v3354_v49, %v3350_v25 }
 0x25e   : > { %v3048_v35 = vrot.slane %v2580_v55, %v5762_v19  ;;  %v2515_v47 = vadd.f32 %v5483_v61, %v2339_v39  ;;  %v2171_v15 = vpop.xlane.xlu0 %2170 }
 0x260   : > { %v3049_v52 = vsel %vm2886_vm14, %v3048_v35, %v3044_v42  ;;  %v2643_v45 = vmul.f32 %v2515_v47, %v2515_v47  ;;  %v2455_v42 = vadd.f32 %v5483_v61, %v2159_v51 }
 0x261   : > { %v2156_v48 = vpop.xlane.xlu1 %2155  ;;  %v3054_v16 = vsel %vm2893_vm15, %v3053_v22, %v3049_v52 }
 0x262   : > { %v3359_v8 = vrot.slane %v2643_v45, %v5745_v9  ;;  %v2454_v28 = vadd.f32 %v5483_v61, %v2156_v48  ;;  %v2177_v25 = vpop.xlane.xlu0 %2176  ;;  %v2457_v45 = vadd.f32 %v5483_v61, %v2165_v7 }
 0x264   : > { %v3360_v43 = vsel %vm2879_vm13, %v3359_v8, %v3355_v63  ;;  %v2582_v18 = vmul.f32 %v2454_v28, %v2454_v28  ;;  %v2585_v22 = vmul.f32 %v2457_v45, %v2457_v45 }
 0x265   : > { %v2348_v33 = vpop.xlane.xlu1 %2347  ;;  %v3365_v59 = vsel %vm2886_vm14, %v3364_v21, %v3360_v43 }
 0x266   : > { %v3058_v30 = vrot.slane %v2582_v18, %v5794_v13  ;;  %v2518_v62 = vadd.f32 %v5483_v61, %v2348_v33  ;;  %v2183_v60 = vpop.xlane.xlu0 %2182  ;;  %v2583_v18 = vmul.f32 %v2455_v42, %v2455_v42  ;;  %v3072_v21 = vrot.slane %v2585_v22, %v5539_v56 }
 0x268   : > { %v3059_v50 = vsel %vm2900_vm0, %v3058_v30, %v3054_v16  ;;  %v2646_v44 = vmul.f32 %v2518_v62, %v2518_v62 }
 0x269   : > { %v6105_v37 = vsel %vm3457_vm1, %v3059_v50, %v6003_v4  ;;  %v2345_v29 = vpop.xlane.xlu1 %2344 }
 0x26a   : > { %v2517_v6 = vadd.f32 %v5483_v61, %v2345_v29  ;;  %v3374_v57 = vrot.slane %v2646_v44, %v5794_v13  ;;  %v6116_v63 = vpop.xlane.xlu0 %2374  ;;  %v2647_v44 = vmul.f32 %v2519_v41, %v2519_v41 }
 0x26c   : > { %v2645_v2 = vmul.f32 %v2517_v6, %v2517_v6  ;;  %v3063_v6 = vrot.slane %v2583_v18, %v5464_v31 }
 0x26d   : > { %v2162_v14 = vpop.xlane.xlu1 %2161 }
 0x26e   : > { %v3369_v36 = vrot.slane %v2645_v2, %v5777_v38  ;;  %v2456_v47 = vadd.f32 %v5483_v61, %v2162_v14  ;;  %v6120_v52 = vpop.xlane.xlu0 %2188  ;;  %v2459_v2 = vadd.f32 %v5483_v61, %v2171_v15  ;;  %v3379_v15 = vrot.slane %v2647_v44, %v5464_v31 }
 0x270   : > { %v3370_v23 = vsel %vm2893_vm15, %v3369_v36, %v3365_v59  ;;  %v2584_v48 = vmul.f32 %v2456_v47, %v2456_v47  ;;  %v2461_v36 = vadd.f32 %v5483_v61, %v2177_v25 }
 0x271   : > { %v2354_v10 = vpop.xlane.xlu1 %2353  ;;  %v6114_v4 = vsel %vm2900_vm0, %v3374_v57, %v3370_v23 }
 0x272   : > { %v2520_v8 = vadd.f32 %v5483_v61, %v2354_v10  ;;  %v6127_v30 = vpop.xlane.xlu0 %2383  ;;  %v3067_v51 = vrot.slane %v2584_v48, %v5470_v3  ;;  %v2589_v45 = vmul.f32 %v2461_v36, %v2461_v36  ;;  %v2463_v48 = vadd.f32 %v5483_v61, %v2183_v60 }
 0x274   : > { %v2648_v16 = vmul.f32 %v2520_v8, %v2520_v8  ;;  %v3068_v57 = vsel %vm2802_vm2, %v3067_v51, %v3063_v6 }
 0x275   : > { %v2168_v40 = vpop.xlane.xlu1 %2167  ;;  %v3073_v25 = vsel %vm2809_vm3, %v3072_v21, %v3068_v57 }
 0x276   : > { %v2458_v28 = vadd.f32 %v5483_v61, %v2168_v40  ;;  %v3383_v59 = vrot.slane %v2648_v16, %v5470_v3  ;;  %v3092_v16 = vrot.slane %v2589_v45, %v5619_v34  ;;  %v2530_v45 = vadd.f32 %v5483_v61, %v6127_v30 }
 0x278   : > { %v2586_v62 = vmul.f32 %v2458_v28, %v2458_v28 }
 0x279   : > { %v2360_v12 = vpop.xlane.xlu1 %2359 }
 0x27a   : > { %v2522_v1 = vadd.f32 %v5483_v61, %v2360_v12  ;;  %v3077_v23 = vrot.slane %v2586_v62, %v5512_v26  ;;  %v2587_v12 = vmul.f32 %v2459_v2, %v2459_v2  ;;  %v2591_v62 = vmul.f32 %v2463_v48, %v2463_v48 }
 0x27c   : > { %v3078_v8 = vsel %vm2816_vm4, %v3077_v23, %v3073_v25  ;;  %v3082_v18 = vrot.slane %v2587_v12, %v5560_v5 }
 0x27d   : > { %v2357_v49 = vpop.xlane.xlu1 %2356 }
 0x27e   : > { %v2521_v43 = vadd.f32 %v5483_v61, %v2357_v49 }
 0x280   : > { %v2649_v50 = vmul.f32 %v2521_v43, %v2521_v43 }
 0x281   : > { %v2174_v55 = vpop.xlane.xlu1 %2173 }
 0x282   : > { %v2460_v54 = vadd.f32 %v5483_v61, %v2174_v55  ;;  %v3388_v10 = vrot.slane %v2649_v50, %v5539_v56  ;;  %v2195_v55 = vpop.xlane.xlu0 %2194  ;;  %v3384_v56 = vsel %vm2802_vm2, %v3383_v59, %v3379_v15  ;;  %vm6357_vm2 = vmmov %vm6356_vm12 }
 0x284   : > { %v2588_v7 = vmul.f32 %v2460_v54, %v2460_v54  ;;  %v3083_v54 = vsel %vm2823_vm5, %v3082_v18, %v3078_v8 }
 0x285   : > { %v2366_v17 = vpop.xlane.xlu1 %2365 }
 0x286   : > { %v2524_v42 = vadd.f32 %v5483_v61, %v2366_v17  ;;  %v3087_v31 = vrot.slane %v2588_v7, %v5576_v46  ;;  %v2390_v50 = vpop.xlane.xlu0 %2389 }
 0x289   : > { %v2363_v39 = vpop.xlane.xlu1 %2362 }
 0x28a   : > { %v2523_v29 = vadd.f32 %v5483_v61, %v2363_v39  ;;  %v2650_v39 = vmul.f32 %v2522_v1, %v2522_v1 }
 0x28c   : > { %v2651_v40 = vmul.f32 %v2523_v29, %v2523_v29  ;;  %v3393_v41 = vrot.slane %v2650_v39, %v5512_v26  ;;  %v3088_v26 = vsel %vm2830_vm6, %v3087_v31, %v3083_v54 }
 0x28d   : > { %v2180_v35 = vpop.xlane.xlu1 %2179  ;;  %v3093_v59 = vsel %vm2837_vm7, %v3092_v16, %v3088_v26 }
 0x28e   : > { %v2462_v49 = vadd.f32 %v5483_v61, %v2180_v35  ;;  %v3389_v35 = vsel %vm2809_vm3, %v3388_v10, %v3384_v56  ;;  %v3398_v28 = vrot.slane %v2651_v40, %v5560_v5  ;;  %v2527_v5 = vadd.f32 %v5483_v61, %v6116_v63  ;;  %vm6358_vm3 = vmmov %vm6357_vm2 }
 0x28f   : > { %v3394_v29 = vsel %vm2816_vm4, %v3393_v41, %v3389_v35  ;;  %v3102_v10 = vrot.slane %v2591_v62, %v5660_v53  ;;  %vm3459_vm4 = vcmask 1043459  }
 0x290   : > { %v2590_v43 = vmul.f32 %v2462_v49, %v2462_v49  ;;  %v3399_v6 = vsel %vm2823_vm5, %v3398_v28, %v3394_v29  ;;  %v2655_v7 = vmul.f32 %v2527_v5, %v2527_v5  ;;  %v2201_v49 = vpop.xlane.xlu0 %2200  ;;  %vm3461_vm5 = vcmask 1044484  }
 0x291   : > { %v2372_v58 = vpop.xlane.xlu1 %2371  ;;  %v2469_v30 = vadd.f32 %v5483_v61, %v2201_v49 }
 0x292   : > { %v2526_v60 = vadd.f32 %v5483_v61, %v2372_v58  ;;  %v3097_v44 = vrot.slane %v2590_v43, %v5651_v11  ;;  %v3418_v56 = vrot.slane %v2655_v7, %v5660_v53 }
 0x293   : > { %v2597_v5 = vmul.f32 %v2469_v30, %v2469_v30 }
 0x294   : > { %v2654_v57 = vmul.f32 %v2526_v60, %v2526_v60 }
 0x295   : > { %v2369_v33 = vpop.xlane.xlu1 %2368 }
 0x296   : > { %v2525_v47 = vadd.f32 %v5483_v61, %v2369_v33  ;;  %v2652_v33 = vmul.f32 %v2524_v42, %v2524_v42  ;;  %v3413_v25 = vrot.slane %v2654_v57, %v5651_v11 }
 0x298   : > { %v2653_v17 = vmul.f32 %v2525_v47, %v2525_v47  ;;  %v3403_v36 = vrot.slane %v2652_v33, %v5576_v46  ;;  %v2467_v47 = vadd.f32 %v5483_v61, %v2195_v55  ;;  %v2393_v33 = vpop.xlane.xlu0 %2392 }
 0x299   : > { %v2186_v14 = vpop.xlane.xlu1 %2185 }
 0x29a   : > { %v2464_v22 = vadd.f32 %v5483_v61, %v2186_v14  ;;  %v3408_v58 = vrot.slane %v2653_v17, %v5619_v34  ;;  %v2465_v14 = vadd.f32 %v5483_v61, %v6120_v52  ;;  %v3098_v34 = vsel %vm2844_vm8, %v3097_v44, %v3093_v59 }
 0x29b   : > { %v3404_v40 = vsel %vm2830_vm6, %v3403_v36, %v3399_v6  ;;  %v3103_v35 = vsel %vm2851_vm9, %v3102_v10, %v3098_v34  ;;  %v2595_v18 = vmul.f32 %v2467_v47, %v2467_v47  ;;  %v2658_v17 = vmul.f32 %v2530_v45, %v2530_v45 }
 0x29c   : > { %v2592_v2 = vmul.f32 %v2464_v22, %v2464_v22  ;;  %v3409_v15 = vsel %vm2837_vm7, %v3408_v58, %v3404_v40  ;;  %v2593_v39 = vmul.f32 %v2465_v14, %v2465_v14  ;;  %v2532_v22 = vadd.f32 %v5483_v61, %v2390_v50 }
 0x29d   : > { %v2378_v3 = vpop.xlane.xlu1 %2377  ;;  %v3414_v8 = vsel %vm2844_vm8, %v3413_v25, %v3409_v15  ;;  %v2533_v50 = vadd.f32 %v5483_v61, %v2393_v33  ;;  %v3433_v44 = vrot.slane %v2658_v17, %v5721_v32  ;;  %vm3463_vm6 = vcmask 1045509  }
 0x29e   : > { %v2528_v1 = vadd.f32 %v5483_v61, %v2378_v3  ;;  %v3107_v52 = vrot.slane %v2592_v2, %v5684_v27  ;;  %v3112_v43 = vrot.slane %v2593_v39, %v5709_v0  ;;  %v2660_v58 = vmul.f32 %v2532_v22, %v2532_v22 }
 0x29f   : > { %v2661_v59 = vmul.f32 %v2533_v50, %v2533_v50  ;;  %vm3465_vm7 = vcmask 1046534   ;;  %vm3467_vm8 = vcmask 1047559  }
 0x2a0   : > { %v2656_v12 = vmul.f32 %v2528_v1, %v2528_v1  ;;  %v3108_v31 = vsel %vm2858_vm10, %v3107_v52, %v3103_v35 }
 0x2a1   : > { %v2192_v51 = vpop.xlane.xlu1 %2191  ;;  %v3448_v52 = vrot.slane %v2661_v59, %v5777_v38 }
 0x2a2   : > { %v2466_v21 = vadd.f32 %v5483_v61, %v2192_v51  ;;  %v3423_v28 = vrot.slane %v2656_v12, %v5684_v27  ;;  %v3419_v27 = vsel %vm2851_vm9, %v3418_v56, %v3414_v8  ;;  %v3113_v51 = vsel %vm2865_vm11, %v3112_v43, %v3108_v31 }
 0x2a4   : > { %v2594_v46 = vmul.f32 %v2466_v21, %v2466_v21  ;;  %v3424_v16 = vsel %vm2858_vm10, %v3423_v28, %v3419_v27 }
 0x2a5   : > { %v2381_v63 = vpop.xlane.xlu1 %2380 }
 0x2a6   : > { %v2529_v23 = vadd.f32 %v5483_v61, %v2381_v63  ;;  %v3117_v55 = vrot.slane %v2594_v46, %v5721_v32  ;;  %v3132_v63 = vrot.slane %v2597_v5, %v5777_v38 }
 0x2a8   : > { %v2657_v42 = vmul.f32 %v2529_v23, %v2529_v23  ;;  %v3118_v62 = vsel %vm6357_vm2, %v3117_v55, %v3113_v51  ;;  %v3443_v23 = vrot.slane %v2660_v58, %v5762_v19 }
 0x2a9   : > { %v2198_v3 = vpop.xlane.xlu1 %2197 }
 0x2aa   : > { %v2468_v48 = vadd.f32 %v5483_v61, %v2198_v3  ;;  %v3428_v41 = vrot.slane %v2657_v42, %v5709_v0  ;;  %v3122_v0 = vrot.slane %v2595_v18, %v5745_v9 }
 0x2ac   : > { %v2596_v11 = vmul.f32 %v2468_v48, %v2468_v48  ;;  %v3429_v26 = vsel %vm2865_vm11, %v3428_v41, %v3424_v16  ;;  %v3123_v21 = vsel %vm2879_vm13, %v3122_v0, %v3118_v62 }
 0x2ad   : > { %v2387_v53 = vpop.xlane.xlu1 %2386  ;;  %v3434_v36 = vsel %vm6358_vm3, %v3433_v44, %v3429_v26 }
 0x2ae   : > { %v2531_v60 = vadd.f32 %v5483_v61, %v2387_v53  ;;  %v3127_v54 = vrot.slane %v2596_v11, %v5762_v19 }
 0x2b0   : > { %v2659_v29 = vmul.f32 %v2531_v60, %v2531_v60  ;;  %v3128_v14 = vsel %vm2886_vm14, %v3127_v54, %v3123_v21 }
 0x2b1   : > { %v2204_v6 = vpop.xlane.xlu1 %2203  ;;  %v3133_v34 = vsel %vm2893_vm15, %v3132_v63, %v3128_v14 }
 0x2b2   : > { %v3438_v2 = vrot.slane %v2659_v29, %v5745_v9  ;;  %v2470_v1 = vadd.f32 %v5483_v61, %v2204_v6 }
 0x2b4   : > { %v2598_v57 = vmul.f32 %v2470_v1, %v2470_v1  ;;  %v3439_v32 = vsel %vm2879_vm13, %v3438_v2, %v3434_v36 }
 0x2b5   : > { %v2396_v9 = vpop.xlane.xlu1 %2395  ;;  %v3444_v40 = vsel %vm2886_vm14, %v3443_v23, %v3439_v32 }
 0x2b6   : > { %v3137_v10 = vrot.slane %v2598_v57, %v5794_v13  ;;  %v2534_v7 = vadd.f32 %v5483_v61, %v2396_v9  ;;  %v3449_v46 = vsel %vm2893_vm15, %v3448_v52, %v3444_v40 }
 0x2b8   : > { %v3138_v49 = vsel %vm2900_vm0, %v3137_v10, %v3133_v34  ;;  %v2662_v15 = vmul.f32 %v2534_v7, %v2534_v7 }
 0x2b9   : > { %v3460_v12 = vsel %vm3459_vm4, %v3138_v49, %v6105_v37 }
 0x2ba   : > { %v3453_v61 = vrot.slane %v2662_v15, %v5794_v13  ;;  %v3462_v19 = vsel %vm3461_vm5, %v5834_v20, %v3460_v12 }
 0x2bb   : > { %v3464_v39 = vsel %vm3463_vm6, %v6014_v24, %v3462_v19 }
 0x2bc   : > { %v3454_v47 = vsel %vm2900_vm0, %v3453_v61, %v3449_v46  ;;  %v3466_v38 = vsel %vm3465_vm7, %v6114_v4, %v3464_v39 }
 0x2bd   : > { %v3468_v13 = vsel %vm3467_vm8, %v3454_v47, %v3466_v38 }
 0x2be   : > { %3470 = vst [vmem:[%s274_s12] sm:$0xff] %v3468_v13 }
 0x2bf   : > { %4132 = shalt.err (!%p4129_p5)
}
 0x2c0   : > { %s4133_s21 = scalar_lea.hbm %s6233_s26, 128  ;;  %s4137_s29 = scalar_lea.hbm %s6288_s6, 256 }
 0x2c1   : > { %p4134_p6 = scmp.ne.s32.totalorder %s6233_s26, %s4133_s21  ;;  %p4138_p10 = scmp.lt.u32.totalorder %s6233_s26, %s6288_s6 }
 0x2c2   : > { %p4139_p11 = scmp.lt.u32.totalorder %s4137_s29, %s4133_s21  ;;  %p4141_p13 = scmp.lt.u32.totalorder %s4133_s21, %s6233_s26 }
 0x2c3   : > { %p4135_p7 = pnand %p4134_p6, %p4280_p4 }
 0x2c4   : > { %p4140_p12 = por %p4139_p11, %p4138_p10 }
 0x2c5   : > { %p4136_p9 = pneg %p4135_p7 }
 0x2c6   : > { %p4142_p0 = por %p4141_p13, %p4140_p12 }
 0x2c8   : > { %p4143_p1 = pnand %p4142_p0, %p4136_p9 }
 0x2ca   : > { %4146 = shalt.err (!%p4143_p1)
}
 0x2cb   : > { %4056 = dma.vmem_to_hbm [thread:$0]  (%p4280_p4), %s6235_s13, 128, %s6233_s26, %s3472_s16  }
 0x2cc PF: > { %p4062_p2 = scmp.ge.s32.totalorder %s4197_s28, 2  ;;  %s3498_s12 = sand.u32 1, %s4177_s23  }
 0x2cd   : > { %s3499_s14 = scalar_lea.sflag [#allocation4], %s3498_s12 }
 0x2ce   : > { %p4059_p3 = pnand %p4062_p2, %p4287_p8 }
 0x2d0   : > { %4172 = dma.done.wait (!%p4059_p3), %s3499_s14, 128  }
 0x2d1   : > { %4174 = vsyncadd (!%p4059_p3), %s3499_s14, 4294967168  ;;  %s21_s28 = sadd.s32 1, %s4197_s28   ;;  %s6359_s23 = smov %s4181_s24 }
 0x2d2   : > { %p18_p5 = scmp.ge.s32.totalorder %s21_s28, 4   ;;  %s6360_s24 = smov %s4185_s25 }
 0x2d3   : > { %s6361_s25 = smov %s4293_s11  ;;  %s6362_s26 = smov %s4193_s27 }
 0x2d4   : > { %s6363_s27 = smov %s6365_s30  ;;  %20 = sbr.rel (!%p18_p5) target bundleno = 7 (0x7), region = 82 }
 0x2db   :  { %3504 = vsyncpa [#allocation4], 1 }
 0x2dc   :  { %3506 = vsyncpa [#allocation4 + $0x1], 1 }

</bundles_post_ra>
